<compile_context>
chip_gen: v7x
topology: tpu7x:2x2x1
jax: 0.10.0
libtpu: 0.0.40
codegen_flags: <defaults>
</compile_context>

<pallas_src>
import functools

import jax
import jax.numpy as jnp
import numpy as np
from jax import lax
from jax.experimental import pallas as pl
from jax.experimental.pallas import tpu as pltpu


# -----------------------------------------------------------------------------
# Bilinear interpolation matrix (align_corners=True), built once in the wrapper.
# -----------------------------------------------------------------------------
def _interp_matrix(out_size, in_size):
    if in_size == 1:
        return jnp.ones((out_size, 1), jnp.float32)
    i = jnp.arange(out_size, dtype=jnp.float32)
    src = i * (in_size - 1) / max(out_size - 1, 1)
    lo = jnp.clip(jnp.floor(src).astype(jnp.int32), 0, in_size - 2)
    frac = src - lo.astype(jnp.float32)
    cols = jnp.arange(in_size)
    m = ((cols[None, :] == lo[:, None]).astype(jnp.float32) * (1.0 - frac)[:, None]
         + (cols[None, :] == (lo + 1)[:, None]).astype(jnp.float32) * frac[:, None])
    return m


# -----------------------------------------------------------------------------
# Kernel 1: fused down_h -> upsample -> concat -> flow_make (per batch).
# NOTE: specialized to the module default kernel_size=3 for flow_make.
# -----------------------------------------------------------------------------
def _make_flow_kernel(low_ref, hf_ref, wdl_ref, wdh_ref, wfl_ref, ah_ref, awt_ref,
                      flow_ref, catpad_ref, *, cin, cout, H, W, Hh, Wh):
    # zero the halo'd concat buffer (only the 1-px border strictly needs it)
    catpad_ref[...] = jnp.zeros_like(catpad_ref)

    ah = ah_ref[...]       # (H, Hh)
    awt = awt_ref[...]     # (Wh, W)

    # down_h (1x1 conv via SMEM-scalar FMA) + separable bilinear upsample
    # (align_corners=True) -> concat channels [0, cout)
    for co in range(cout):
        acc = hf_ref[0, 0] * wdh_ref[co, 0]
        for ci in range(1, cin):
            acc = acc + hf_ref[0, ci] * wdh_ref[co, ci]               # (Hh, Wh)
        t = jnp.dot(acc, awt, preferred_element_type=jnp.float32)     # (Hh, W)
        up = jnp.dot(ah, t, preferred_element_type=jnp.float32)       # (H, W)
        catpad_ref[co, 1:H + 1, 1:W + 1] = up

    # down_l (1x1 conv) -> concat channels [cout, 2*cout)
    for co in range(cout):
        acc = low_ref[0, 0] * wdl_ref[co, 0]
        for ci in range(1, cin):
            acc = acc + low_ref[0, ci] * wdl_ref[co, ci]              # (H, W)
        catpad_ref[cout + co, 1:H + 1, 1:W + 1] = acc

    # flow_make: 3x3 conv, padding=1 -- accumulate the 9 taps from the VMEM
    # halo buffer (no HBM im2col), tiny K so pure VPU broadcast-FMA.
    fx = jnp.zeros((H, W), jnp.float32)
    fy = jnp.zeros((H, W), jnp.float32)
    for c in range(2 * cout):
        for dy in range(3):
            for dx in range(3):
                s = catpad_ref[c, dy:dy + H, dx:dx + W]               # (H, W)
                k = c * 9 + dy * 3 + dx
                fx = fx + s * wfl_ref[0, k]
                fy = fy + s * wfl_ref[1, k]
    flow_ref[0, 0] = fx
    flow_ref[0, 1] = fy


def _make_flow(low_nchw, hf_nchw, w_dl, w_dh, w_fl, Ah, AwT):
    N, Cin, H, W = low_nchw.shape
    _, _, Hh, Wh = hf_nchw.shape
    Cout = w_dl.shape[0]
    kernel = functools.partial(_make_flow_kernel, cin=Cin, cout=Cout,
                               H=H, W=W, Hh=Hh, Wh=Wh)
    smem = pltpu.MemorySpace.SMEM
    return pl.pallas_call(
        kernel,
        grid=(N,),
        in_specs=[
            pl.BlockSpec((1, Cin, H, W), lambda b: (b, 0, 0, 0)),
            pl.BlockSpec((1, Cin, Hh, Wh), lambda b: (b, 0, 0, 0)),
            pl.BlockSpec((Cout, Cin), lambda b: (0, 0), memory_space=smem),
            pl.BlockSpec((Cout, Cin), lambda b: (0, 0), memory_space=smem),
            pl.BlockSpec((2, 2 * Cout * 9), lambda b: (0, 0), memory_space=smem),
            pl.BlockSpec((H, Hh), lambda b: (0, 0)),
            pl.BlockSpec((Wh, W), lambda b: (0, 0)),
        ],
        out_specs=pl.BlockSpec((1, 2, H, W), lambda b: (b, 0, 0, 0)),
        out_shape=jax.ShapeDtypeStruct((N, 2, H, W), jnp.float32),
        scratch_shapes=[pltpu.VMEM((2 * Cout, H + 2, W + 2), jnp.float32)],
        compiler_params=pltpu.CompilerParams(dimension_semantics=("parallel",)),
    )(low_nchw.astype(jnp.float32), hf_nchw.astype(jnp.float32),
      w_dl.astype(jnp.float32), w_dh.astype(jnp.float32),
      w_fl.astype(jnp.float32), Ah.astype(jnp.float32), AwT.astype(jnp.float32))


# -----------------------------------------------------------------------------
# Kernel 2: flow_warp == F.grid_sample(bilinear, zeros, align_corners=False),
# tiled over output pixels (TP lanes per grid step).
# -----------------------------------------------------------------------------
def _flow_warp_kernel(hf_ref, flow_ref, o_ref, *, H, W, Hh, Wh, TP):
    t = pl.program_id(1)
    Q = Hh * Wh

    # flat output-pixel indices handled by this step (lane dimension)
    p = lax.broadcasted_iota(jnp.int32, (1, TP), 1) + t * TP
    ix = (p % W).astype(jnp.float32)
    iy = (p // W).astype(jnp.float32)
    fx = flow_ref[0, 0:1, :]                                   # (1, TP)
    fy = flow_ref[0, 1:2, :]

    # base grid (linspace(-1, 1)) + flow / [out_w, out_h]
    gx = -1.0 + 2.0 * ix / float(max(W - 1, 1)) + fx / float(W)
    gy = -1.0 + 2.0 * iy / float(max(H - 1, 1)) + fy / float(H)

    # un-normalize, align_corners=False (grid_sample default)
    sx = ((gx + 1.0) * Wh - 1.0) * 0.5
    sy = ((gy + 1.0) * Hh - 1.0) * 0.5
    x0f = jnp.floor(sx)
    y0f = jnp.floor(sy)
    tx = sx - x0f
    ty = sy - y0f
    x0 = x0f.astype(jnp.int32)
    y0 = y0f.astype(jnp.int32)

    # Separable one-hot bilinear weights; corners outside [0,Wh)x[0,Hh) never
    # match a valid (qy, qx), so padding_mode='zeros' falls out automatically.
    qi = lax.broadcasted_iota(jnp.int32, (Q, TP), 0)
    qy = qi // Wh
    qx = qi % Wh
    wy = jnp.where(qy == y0, 1.0 - ty, 0.0) + jnp.where(qy == y0 + 1, ty, 0.0)
    wx = jnp.where(qx == x0, 1.0 - tx, 0.0) + jnp.where(qx == x0 + 1, tx, 0.0)
    m = wy * wx                                                # (Q, TP)

    # channel-major matmul -> lane-dense (Cin, TP) output block
    o_ref[0] = jnp.dot(hf_ref[0], m, preferred_element_type=jnp.float32)


def _flow_warp(hf_flat, flow_flat, H, W, Hh, Wh):
    N, Cin, Q = hf_flat.shape
    P = H * W
    if P % 512 == 0:
        TP = 512
    elif P % 256 == 0:
        TP = 256
    elif P % 128 == 0:
        TP = 128
    else:
        TP = P
    kernel = functools.partial(_flow_warp_kernel, H=H, W=W, Hh=Hh, Wh=Wh, TP=TP)
    return pl.pallas_call(
        kernel,
        grid=(N, P // TP),
        in_specs=[
            pl.BlockSpec((1, Cin, Q), lambda b, s: (b, 0, 0)),   # resident per batch
            pl.BlockSpec((1, 2, TP), lambda b, s: (b, 0, s)),
        ],
        out_specs=pl.BlockSpec((1, Cin, TP), lambda b, s: (b, 0, s)),
        out_shape=jax.ShapeDtypeStruct((N, Cin, P), jnp.float32),
        compiler_params=pltpu.CompilerParams(
            dimension_semantics=("parallel", "parallel")),
    )(hf_flat.astype(jnp.float32), flow_flat.astype(jnp.float32))


# -----------------------------------------------------------------------------
# AlignedModule forward
# -----------------------------------------------------------------------------
def aligned_module_forward(params, low_feature, h_feature):
    N, Cin, H, W = low_feature.shape
    _, _, Hh, Wh = h_feature.shape
    Cout = params["down_l"].shape[0]

    w_dl = params["down_l"][:, :, 0, 0]                      # (Cout, Cin)
    w_dh = params["down_h"][:, :, 0, 0]
    w_fl = params["flow_make"].reshape(2, 2 * Cout * 9)      # (2, 2*Cout*3*3)
    Ah = _interp_matrix(H, Hh)                                # (H, Hh)
    AwT = _interp_matrix(W, Wh).T                             # (Wh, W)

    flow = _make_flow(low_feature, h_feature, w_dl, w_dh, w_fl, Ah, AwT)
    out = _flow_warp(h_feature.reshape(N, Cin, Hh * Wh),
                     flow.reshape(N, 2, H * W), H, W, Hh, Wh)
    return out.reshape(N, Cin, H, W)


# -----------------------------------------------------------------------------
# numpy (float64) reference for a correctness check
# -----------------------------------------------------------------------------
def _reference(params, low, hf):
    low = np.asarray(low, np.float64)
    hf = np.asarray(hf, np.float64)
    wdl = np.asarray(params["down_l"], np.float64)[:, :, 0, 0]
    wdh = np.asarray(params["down_h"], np.float64)[:, :, 0, 0]
    wfl = np.asarray(params["flow_make"], np.float64)          # (2, 2C, 3, 3)
    N, Cin, H, W = low.shape
    _, _, Hh, Wh = hf.shape
    Cout = wdl.shape[0]

    lo = np.einsum("oc,nchw->nohw", wdl, low)
    hi = np.einsum("oc,nchw->nohw", wdh, hf)
    Ah = np.asarray(_interp_matrix(H, Hh), np.float64)
    Aw = np.asarray(_interp_matrix(W, Wh), np.float64)
    up = np.einsum("Hh,nchw,Ww->ncHW", Ah, hi, Aw)
    cat = np.concatenate([up, lo], axis=1)
    catp = np.pad(cat, ((0, 0), (0, 0), (1, 1), (1, 1)))
    flow = np.zeros((N, 2, H, W))
    for o in range(2):
        for c in range(2 * Cout):
            for dy in range(3):
                for dx in range(3):
                    flow[:, o] += wfl[o, c, dy, dx] * catp[:, c, dy:dy + H, dx:dx + W]

    out = np.zeros((N, Cin, H, W))
    ys, xs = np.meshgrid(np.arange(H), np.arange(W), indexing="ij")
    basex = -1.0 + 2.0 * xs / max(W - 1, 1)
    basey = -1.0 + 2.0 * ys / max(H - 1, 1)
    for n in range(N):
        gx = basex + flow[n, 0] / W
        gy = basey + flow[n, 1] / H
        sx = ((gx + 1.0) * Wh - 1.0) * 0.5
        sy = ((gy + 1.0) * Hh - 1.0) * 0.5
        x0 = np.floor(sx).astype(int)
        y0 = np.floor(sy).astype(int)
        tx = sx - x0
        ty = sy - y0
        for yi, xi, wgt in [(y0, x0, (1 - ty) * (1 - tx)), (y0, x0 + 1, (1 - ty) * tx),
                            (y0 + 1, x0, ty * (1 - tx)), (y0 + 1, x0 + 1, ty * tx)]:
            valid = (xi >= 0) & (xi < Wh) & (yi >= 0) & (yi < Hh)
            xc = np.clip(xi, 0, Wh - 1)
            yc = np.clip(yi, 0, Hh - 1)
            vals = hf[n][:, yc, xc]                            # (Cin, H, W)
            out[n] += np.where(valid[None], wgt[None] * vals, 0.0)
    return out


if __name__ == "__main__":
    key = jax.random.PRNGKey(0)
    k1, k2, k3, k4, k5 = jax.random.split(key, 5)

    inplane, outplane = 4, 4
    N, H, W = 2, 16, 16          # low_feature spatial size (output size)
    Hh, Wh = 8, 8                # h_feature spatial size

    params = {
        "down_h": 0.1 * jax.random.normal(k1, (outplane, inplane, 1, 1), jnp.float32),
        "down_l": 0.1 * jax.random.normal(k2, (outplane, inplane, 1, 1), jnp.float32),
        "flow_make": 0.1 * jax.random.normal(k3, (2, outplane * 2, 3, 3), jnp.float32),
    }
    low_feature = jax.random.normal(k4, (N, inplane, H, W), jnp.float32)
    h_feature = jax.random.normal(k5, (N, inplane, Hh, Wh), jnp.float32)

    out = aligned_module_forward(params, low_feature, h_feature)
    out = jax.block_until_ready(out)

    assert out.shape == (N, inplane, H, W), out.shape
    assert bool(jnp.all(jnp.isfinite(out)))

    ref = _reference(params, low_feature, h_feature)
    np.testing.assert_allclose(np.asarray(out), ref, rtol=1e-3, atol=1e-3)

    print("KERNEL_OK")
</pallas_src>

<mosaic_0001>
module attributes {stable_mosaic.version = 11 : i64} {
  func.func @_make_flow_kernel(%arg0: i32, %arg1: memref<1x4x16x16xf32, #tpu.memory_space<vmem>>, %arg2: memref<1x4x8x8xf32, #tpu.memory_space<vmem>>, %arg3: memref<4x4xf32, #tpu.memory_space<smem>>, %arg4: memref<4x4xf32, #tpu.memory_space<smem>>, %arg5: memref<2x72xf32, #tpu.memory_space<smem>>, %arg6: memref<16x8xf32, #tpu.memory_space<vmem>>, %arg7: memref<8x16xf32, #tpu.memory_space<vmem>>, %arg8: memref<1x2x16x16xf32, #tpu.memory_space<vmem>>, %arg9: memref<8x18x18xf32, #tpu.memory_space<vmem>>) attributes {dimension_semantics = [#tpu.dimension_semantics<parallel>], iteration_bounds = array<i64: 2>, scalar_prefetch = 0 : i64, scratch_operands = 1 : i64, tpu.core_type = #tpu.core_type<tc>, window_params = [{transform_indices = @transform_0, window_bounds = array<i64: 1, 4, 16, 16>}, {transform_indices = @transform_1, window_bounds = array<i64: 1, 4, 8, 8>}, {transform_indices = @transform_2, window_bounds = array<i64: 4, 4>}, {transform_indices = @transform_3, window_bounds = array<i64: 4, 4>}, {transform_indices = @transform_4, window_bounds = array<i64: 2, 72>}, {pipeline_mode = #tpu.pipeline_mode<synchronous>, transform_indices = @transform_5, window_bounds = array<i64: 16, 8>}, {pipeline_mode = #tpu.pipeline_mode<synchronous>, transform_indices = @transform_6, window_bounds = array<i64: 8, 16>}, {transform_indices = @transform_7, window_bounds = array<i64: 1, 2, 16, 16>}]} {
    %cst = arith.constant 0.000000e+00 : f32
    %0 = vector.broadcast %cst : f32 to vector<8x18x18xf32>
    %c0 = arith.constant 0 : index
    %c0_0 = arith.constant 0 : index
    %c0_1 = arith.constant 0 : index
    %1 = vector.load %arg9[%c0, %c0_0, %c0_1] : memref<8x18x18xf32, #tpu.memory_space<vmem>>, vector<8x18x18xf32>
    tpu.vector_store %arg9[%c0, %c0_0, %c0_1], %0 {strides = array<i32>} : memref<8x18x18xf32, #tpu.memory_space<vmem>>, vector<8x18x18xf32>,
    %c0_2 = arith.constant 0 : index
    %c0_3 = arith.constant 0 : index
    %2 = vector.load %arg6[%c0_2, %c0_3] : memref<16x8xf32, #tpu.memory_space<vmem>>, vector<16x8xf32>
    %c0_4 = arith.constant 0 : index
    %c0_5 = arith.constant 0 : index
    %3 = vector.load %arg7[%c0_4, %c0_5] : memref<8x16xf32, #tpu.memory_space<vmem>>, vector<8x16xf32>
    %c0_6 = arith.constant 0 : index
    %c0_7 = arith.constant 0 : index
    %c0_8 = arith.constant 0 : index
    %c0_9 = arith.constant 0 : index
    %4 = vector.load %arg2[%c0_6, %c0_7, %c0_8, %c0_9] : memref<1x4x8x8xf32, #tpu.memory_space<vmem>>, vector<1x1x8x8xf32>
    %5 = vector.shape_cast %4 : vector<1x1x8x8xf32> to vector<8x8xf32>
    %c0_10 = arith.constant 0 : index
    %c0_11 = arith.constant 0 : index
    %6 = memref.load %arg4[%c0_10, %c0_11] : memref<4x4xf32, #tpu.memory_space<smem>>
    %7 = vector.broadcast %6 : f32 to vector<8x8xf32>
    %8 = arith.mulf %5, %7 : vector<8x8xf32>
    %c0_12 = arith.constant 0 : index
    %c1 = arith.constant 1 : index
    %c0_13 = arith.constant 0 : index
    %c0_14 = arith.constant 0 : index
    %9 = vector.load %arg2[%c0_12, %c1, %c0_13, %c0_14] : memref<1x4x8x8xf32, #tpu.memory_space<vmem>>, vector<1x1x8x8xf32>
    %10 = vector.shape_cast %9 : vector<1x1x8x8xf32> to vector<8x8xf32>
    %c0_15 = arith.constant 0 : index
    %c1_16 = arith.constant 1 : index
    %11 = memref.load %arg4[%c0_15, %c1_16] : memref<4x4xf32, #tpu.memory_space<smem>>
    %12 = vector.broadcast %11 : f32 to vector<8x8xf32>
    %13 = arith.mulf %10, %12 : vector<8x8xf32>
    %14 = arith.addf %8, %13 : vector<8x8xf32>
    %c0_17 = arith.constant 0 : index
    %c2 = arith.constant 2 : index
    %c0_18 = arith.constant 0 : index
    %c0_19 = arith.constant 0 : index
    %15 = vector.load %arg2[%c0_17, %c2, %c0_18, %c0_19] : memref<1x4x8x8xf32, #tpu.memory_space<vmem>>, vector<1x1x8x8xf32>
    %16 = vector.shape_cast %15 : vector<1x1x8x8xf32> to vector<8x8xf32>
    %c0_20 = arith.constant 0 : index
    %c2_21 = arith.constant 2 : index
    %17 = memref.load %arg4[%c0_20, %c2_21] : memref<4x4xf32, #tpu.memory_space<smem>>
    %18 = vector.broadcast %17 : f32 to vector<8x8xf32>
    %19 = arith.mulf %16, %18 : vector<8x8xf32>
    %20 = arith.addf %14, %19 : vector<8x8xf32>
    %c0_22 = arith.constant 0 : index
    %c3 = arith.constant 3 : index
    %c0_23 = arith.constant 0 : index
    %c0_24 = arith.constant 0 : index
    %21 = vector.load %arg2[%c0_22, %c3, %c0_23, %c0_24] : memref<1x4x8x8xf32, #tpu.memory_space<vmem>>, vector<1x1x8x8xf32>
    %22 = vector.shape_cast %21 : vector<1x1x8x8xf32> to vector<8x8xf32>
    %c0_25 = arith.constant 0 : index
    %c3_26 = arith.constant 3 : index
    %23 = memref.load %arg4[%c0_25, %c3_26] : memref<4x4xf32, #tpu.memory_space<smem>>
    %24 = vector.broadcast %23 : f32 to vector<8x8xf32>
    %25 = arith.mulf %22, %24 : vector<8x8xf32>
    %26 = arith.addf %20, %25 : vector<8x8xf32>
    %cst_27 = arith.constant dense<0.000000e+00> : vector<8x16xf32>
    %27 = tpu.matmul %26, %3, %cst_27 {dimension_numbers = #tpu.dot_dimension_numbers<[1], [0], [0], [1], [0, 0, 1, 1], [], []>} : vector<8x8xf32>, vector<8x16xf32>, vector<8x16xf32> -> vector<8x16xf32>
    %cst_28 = arith.constant dense<0.000000e+00> : vector<16x16xf32>
    %28 = tpu.matmul %2, %27, %cst_28 {dimension_numbers = #tpu.dot_dimension_numbers<[1], [0], [0], [1], [0, 0, 1, 1], [], []>} : vector<16x8xf32>, vector<8x16xf32>, vector<16x16xf32> -> vector<16x16xf32>
    %c0_29 = arith.constant 0 : index
    %c1_30 = arith.constant 1 : index
    %c1_31 = arith.constant 1 : index
    %29 = vector.load %arg9[%c0_29, %c1_30, %c1_31] : memref<8x18x18xf32, #tpu.memory_space<vmem>>, vector<1x16x16xf32>
    %30 = vector.shape_cast %29 : vector<1x16x16xf32> to vector<16x16xf32>
    %31 = vector.shape_cast %28 : vector<16x16xf32> to vector<1x16x16xf32>
    tpu.vector_store %arg9[%c0_29, %c1_30, %c1_31], %31 {strides = array<i32>} : memref<8x18x18xf32, #tpu.memory_space<vmem>>, vector<1x16x16xf32>,
    %c0_32 = arith.constant 0 : index
    %c0_33 = arith.constant 0 : index
    %c0_34 = arith.constant 0 : index
    %c0_35 = arith.constant 0 : index
    %32 = vector.load %arg2[%c0_32, %c0_33, %c0_34, %c0_35] : memref<1x4x8x8xf32, #tpu.memory_space<vmem>>, vector<1x1x8x8xf32>
    %33 = vector.shape_cast %32 : vector<1x1x8x8xf32> to vector<8x8xf32>
    %c1_36 = arith.constant 1 : index
    %c0_37 = arith.constant 0 : index
    %34 = memref.load %arg4[%c1_36, %c0_37] : memref<4x4xf32, #tpu.memory_space<smem>>
    %35 = vector.broadcast %34 : f32 to vector<8x8xf32>
    %36 = arith.mulf %33, %35 : vector<8x8xf32>
    %c0_38 = arith.constant 0 : index
    %c1_39 = arith.constant 1 : index
    %c0_40 = arith.constant 0 : index
    %c0_41 = arith.constant 0 : index
    %37 = vector.load %arg2[%c0_38, %c1_39, %c0_40, %c0_41] : memref<1x4x8x8xf32, #tpu.memory_space<vmem>>, vector<1x1x8x8xf32>
    %38 = vector.shape_cast %37 : vector<1x1x8x8xf32> to vector<8x8xf32>
    %c1_42 = arith.constant 1 : index
    %c1_43 = arith.constant 1 : index
    %39 = memref.load %arg4[%c1_42, %c1_43] : memref<4x4xf32, #tpu.memory_space<smem>>
    %40 = vector.broadcast %39 : f32 to vector<8x8xf32>
    %41 = arith.mulf %38, %40 : vector<8x8xf32>
    %42 = arith.addf %36, %41 : vector<8x8xf32>
    %c0_44 = arith.constant 0 : index
    %c2_45 = arith.constant 2 : index
    %c0_46 = arith.constant 0 : index
    %c0_47 = arith.constant 0 : index
    %43 = vector.load %arg2[%c0_44, %c2_45, %c0_46, %c0_47] : memref<1x4x8x8xf32, #tpu.memory_space<vmem>>, vector<1x1x8x8xf32>
    %44 = vector.shape_cast %43 : vector<1x1x8x8xf32> to vector<8x8xf32>
    %c1_48 = arith.constant 1 : index
    %c2_49 = arith.constant 2 : index
    %45 = memref.load %arg4[%c1_48, %c2_49] : memref<4x4xf32, #tpu.memory_space<smem>>
    %46 = vector.broadcast %45 : f32 to vector<8x8xf32>
    %47 = arith.mulf %44, %46 : vector<8x8xf32>
    %48 = arith.addf %42, %47 : vector<8x8xf32>
    %c0_50 = arith.constant 0 : index
    %c3_51 = arith.constant 3 : index
    %c0_52 = arith.constant 0 : index
    %c0_53 = arith.constant 0 : index
    %49 = vector.load %arg2[%c0_50, %c3_51, %c0_52, %c0_53] : memref<1x4x8x8xf32, #tpu.memory_space<vmem>>, vector<1x1x8x8xf32>
    %50 = vector.shape_cast %49 : vector<1x1x8x8xf32> to vector<8x8xf32>
    %c1_54 = arith.constant 1 : index
    %c3_55 = arith.constant 3 : index
    %51 = memref.load %arg4[%c1_54, %c3_55] : memref<4x4xf32, #tpu.memory_space<smem>>
    %52 = vector.broadcast %51 : f32 to vector<8x8xf32>
    %53 = arith.mulf %50, %52 : vector<8x8xf32>
    %54 = arith.addf %48, %53 : vector<8x8xf32>
    %cst_56 = arith.constant dense<0.000000e+00> : vector<8x16xf32>
    %55 = tpu.matmul %54, %3, %cst_56 {dimension_numbers = #tpu.dot_dimension_numbers<[1], [0], [0], [1], [0, 0, 1, 1], [], []>} : vector<8x8xf32>, vector<8x16xf32>, vector<8x16xf32> -> vector<8x16xf32>
    %cst_57 = arith.constant dense<0.000000e+00> : vector<16x16xf32>
    %56 = tpu.matmul %2, %55, %cst_57 {dimension_numbers = #tpu.dot_dimension_numbers<[1], [0], [0], [1], [0, 0, 1, 1], [], []>} : vector<16x8xf32>, vector<8x16xf32>, vector<16x16xf32> -> vector<16x16xf32>
    %c1_58 = arith.constant 1 : index
    %c1_59 = arith.constant 1 : index
    %c1_60 = arith.constant 1 : index
    %57 = vector.load %arg9[%c1_58, %c1_59, %c1_60] : memref<8x18x18xf32, #tpu.memory_space<vmem>>, vector<1x16x16xf32>
    %58 = vector.shape_cast %57 : vector<1x16x16xf32> to vector<16x16xf32>
    %59 = vector.shape_cast %56 : vector<16x16xf32> to vector<1x16x16xf32>
    tpu.vector_store %arg9[%c1_58, %c1_59, %c1_60], %59 {strides = array<i32>} : memref<8x18x18xf32, #tpu.memory_space<vmem>>, vector<1x16x16xf32>,
    %c0_61 = arith.constant 0 : index
    %c0_62 = arith.constant 0 : index
    %c0_63 = arith.constant 0 : index
    %c0_64 = arith.constant 0 : index
    %60 = vector.load %arg2[%c0_61, %c0_62, %c0_63, %c0_64] : memref<1x4x8x8xf32, #tpu.memory_space<vmem>>, vector<1x1x8x8xf32>
    %61 = vector.shape_cast %60 : vector<1x1x8x8xf32> to vector<8x8xf32>
    %c2_65 = arith.constant 2 : index
    %c0_66 = arith.constant 0 : index
    %62 = memref.load %arg4[%c2_65, %c0_66] : memref<4x4xf32, #tpu.memory_space<smem>>
    %63 = vector.broadcast %62 : f32 to vector<8x8xf32>
    %64 = arith.mulf %61, %63 : vector<8x8xf32>
    %c0_67 = arith.constant 0 : index
    %c1_68 = arith.constant 1 : index
    %c0_69 = arith.constant 0 : index
    %c0_70 = arith.constant 0 : index
    %65 = vector.load %arg2[%c0_67, %c1_68, %c0_69, %c0_70] : memref<1x4x8x8xf32, #tpu.memory_space<vmem>>, vector<1x1x8x8xf32>
    %66 = vector.shape_cast %65 : vector<1x1x8x8xf32> to vector<8x8xf32>
    %c2_71 = arith.constant 2 : index
    %c1_72 = arith.constant 1 : index
    %67 = memref.load %arg4[%c2_71, %c1_72] : memref<4x4xf32, #tpu.memory_space<smem>>
    %68 = vector.broadcast %67 : f32 to vector<8x8xf32>
    %69 = arith.mulf %66, %68 : vector<8x8xf32>
    %70 = arith.addf %64, %69 : vector<8x8xf32>
    %c0_73 = arith.constant 0 : index
    %c2_74 = arith.constant 2 : index
    %c0_75 = arith.constant 0 : index
    %c0_76 = arith.constant 0 : index
    %71 = vector.load %arg2[%c0_73, %c2_74, %c0_75, %c0_76] : memref<1x4x8x8xf32, #tpu.memory_space<vmem>>, vector<1x1x8x8xf32>
    %72 = vector.shape_cast %71 : vector<1x1x8x8xf32> to vector<8x8xf32>
    %c2_77 = arith.constant 2 : index
    %c2_78 = arith.constant 2 : index
    %73 = memref.load %arg4[%c2_77, %c2_78] : memref<4x4xf32, #tpu.memory_space<smem>>
    %74 = vector.broadcast %73 : f32 to vector<8x8xf32>
    %75 = arith.mulf %72, %74 : vector<8x8xf32>
    %76 = arith.addf %70, %75 : vector<8x8xf32>
    %c0_79 = arith.constant 0 : index
    %c3_80 = arith.constant 3 : index
    %c0_81 = arith.constant 0 : index
    %c0_82 = arith.constant 0 : index
    %77 = vector.load %arg2[%c0_79, %c3_80, %c0_81, %c0_82] : memref<1x4x8x8xf32, #tpu.memory_space<vmem>>, vector<1x1x8x8xf32>
    %78 = vector.shape_cast %77 : vector<1x1x8x8xf32> to vector<8x8xf32>
    %c2_83 = arith.constant 2 : index
    %c3_84 = arith.constant 3 : index
    %79 = memref.load %arg4[%c2_83, %c3_84] : memref<4x4xf32, #tpu.memory_space<smem>>
    %80 = vector.broadcast %79 : f32 to vector<8x8xf32>
    %81 = arith.mulf %78, %80 : vector<8x8xf32>
    %82 = arith.addf %76, %81 : vector<8x8xf32>
    %cst_85 = arith.constant dense<0.000000e+00> : vector<8x16xf32>
    %83 = tpu.matmul %82, %3, %cst_85 {dimension_numbers = #tpu.dot_dimension_numbers<[1], [0], [0], [1], [0, 0, 1, 1], [], []>} : vector<8x8xf32>, vector<8x16xf32>, vector<8x16xf32> -> vector<8x16xf32>
    %cst_86 = arith.constant dense<0.000000e+00> : vector<16x16xf32>
    %84 = tpu.matmul %2, %83, %cst_86 {dimension_numbers = #tpu.dot_dimension_numbers<[1], [0], [0], [1], [0, 0, 1, 1], [], []>} : vector<16x8xf32>, vector<8x16xf32>, vector<16x16xf32> -> vector<16x16xf32>
    %c2_87 = arith.constant 2 : index
    %c1_88 = arith.constant 1 : index
    %c1_89 = arith.constant 1 : index
    %85 = vector.load %arg9[%c2_87, %c1_88, %c1_89] : memref<8x18x18xf32, #tpu.memory_space<vmem>>, vector<1x16x16xf32>
    %86 = vector.shape_cast %85 : vector<1x16x16xf32> to vector<16x16xf32>
    %87 = vector.shape_cast %84 : vector<16x16xf32> to vector<1x16x16xf32>
    tpu.vector_store %arg9[%c2_87, %c1_88, %c1_89], %87 {strides = array<i32>} : memref<8x18x18xf32, #tpu.memory_space<vmem>>, vector<1x16x16xf32>,
    %c0_90 = arith.constant 0 : index
    %c0_91 = arith.constant 0 : index
    %c0_92 = arith.constant 0 : index
    %c0_93 = arith.constant 0 : index
    %88 = vector.load %arg2[%c0_90, %c0_91, %c0_92, %c0_93] : memref<1x4x8x8xf32, #tpu.memory_space<vmem>>, vector<1x1x8x8xf32>
    %89 = vector.shape_cast %88 : vector<1x1x8x8xf32> to vector<8x8xf32>
    %c3_94 = arith.constant 3 : index
    %c0_95 = arith.constant 0 : index
    %90 = memref.load %arg4[%c3_94, %c0_95] : memref<4x4xf32, #tpu.memory_space<smem>>
    %91 = vector.broadcast %90 : f32 to vector<8x8xf32>
    %92 = arith.mulf %89, %91 : vector<8x8xf32>
    %c0_96 = arith.constant 0 : index
    %c1_97 = arith.constant 1 : index
    %c0_98 = arith.constant 0 : index
    %c0_99 = arith.constant 0 : index
    %93 = vector.load %arg2[%c0_96, %c1_97, %c0_98, %c0_99] : memref<1x4x8x8xf32, #tpu.memory_space<vmem>>, vector<1x1x8x8xf32>
    %94 = vector.shape_cast %93 : vector<1x1x8x8xf32> to vector<8x8xf32>
    %c3_100 = arith.constant 3 : index
    %c1_101 = arith.constant 1 : index
    %95 = memref.load %arg4[%c3_100, %c1_101] : memref<4x4xf32, #tpu.memory_space<smem>>
    %96 = vector.broadcast %95 : f32 to vector<8x8xf32>
    %97 = arith.mulf %94, %96 : vector<8x8xf32>
    %98 = arith.addf %92, %97 : vector<8x8xf32>
    %c0_102 = arith.constant 0 : index
    %c2_103 = arith.constant 2 : index
    %c0_104 = arith.constant 0 : index
    %c0_105 = arith.constant 0 : index
    %99 = vector.load %arg2[%c0_102, %c2_103, %c0_104, %c0_105] : memref<1x4x8x8xf32, #tpu.memory_space<vmem>>, vector<1x1x8x8xf32>
    %100 = vector.shape_cast %99 : vector<1x1x8x8xf32> to vector<8x8xf32>
    %c3_106 = arith.constant 3 : index
    %c2_107 = arith.constant 2 : index
    %101 = memref.load %arg4[%c3_106, %c2_107] : memref<4x4xf32, #tpu.memory_space<smem>>
    %102 = vector.broadcast %101 : f32 to vector<8x8xf32>
    %103 = arith.mulf %100, %102 : vector<8x8xf32>
    %104 = arith.addf %98, %103 : vector<8x8xf32>
    %c0_108 = arith.constant 0 : index
    %c3_109 = arith.constant 3 : index
    %c0_110 = arith.constant 0 : index
    %c0_111 = arith.constant 0 : index
    %105 = vector.load %arg2[%c0_108, %c3_109, %c0_110, %c0_111] : memref<1x4x8x8xf32, #tpu.memory_space<vmem>>, vector<1x1x8x8xf32>
    %106 = vector.shape_cast %105 : vector<1x1x8x8xf32> to vector<8x8xf32>
    %c3_112 = arith.constant 3 : index
    %c3_113 = arith.constant 3 : index
    %107 = memref.load %arg4[%c3_112, %c3_113] : memref<4x4xf32, #tpu.memory_space<smem>>
    %108 = vector.broadcast %107 : f32 to vector<8x8xf32>
    %109 = arith.mulf %106, %108 : vector<8x8xf32>
    %110 = arith.addf %104, %109 : vector<8x8xf32>
    %cst_114 = arith.constant dense<0.000000e+00> : vector<8x16xf32>
    %111 = tpu.matmul %110, %3, %cst_114 {dimension_numbers = #tpu.dot_dimension_numbers<[1], [0], [0], [1], [0, 0, 1, 1], [], []>} : vector<8x8xf32>, vector<8x16xf32>, vector<8x16xf32> -> vector<8x16xf32>
    %cst_115 = arith.constant dense<0.000000e+00> : vector<16x16xf32>
    %112 = tpu.matmul %2, %111, %cst_115 {dimension_numbers = #tpu.dot_dimension_numbers<[1], [0], [0], [1], [0, 0, 1, 1], [], []>} : vector<16x8xf32>, vector<8x16xf32>, vector<16x16xf32> -> vector<16x16xf32>
    %c3_116 = arith.constant 3 : index
    %c1_117 = arith.constant 1 : index
    %c1_118 = arith.constant 1 : index
    %113 = vector.load %arg9[%c3_116, %c1_117, %c1_118] : memref<8x18x18xf32, #tpu.memory_space<vmem>>, vector<1x16x16xf32>
    %114 = vector.shape_cast %113 : vector<1x16x16xf32> to vector<16x16xf32>
    %115 = vector.shape_cast %112 : vector<16x16xf32> to vector<1x16x16xf32>
    tpu.vector_store %arg9[%c3_116, %c1_117, %c1_118], %115 {strides = array<i32>} : memref<8x18x18xf32, #tpu.memory_space<vmem>>, vector<1x16x16xf32>,
    %c0_119 = arith.constant 0 : index
    %c0_120 = arith.constant 0 : index
    %c0_121 = arith.constant 0 : index
    %c0_122 = arith.constant 0 : index
    %116 = vector.load %arg1[%c0_119, %c0_120, %c0_121, %c0_122] : memref<1x4x16x16xf32, #tpu.memory_space<vmem>>, vector<1x1x16x16xf32>
    %117 = vector.shape_cast %116 : vector<1x1x16x16xf32> to vector<16x16xf32>
    %c0_123 = arith.constant 0 : index
    %c0_124 = arith.constant 0 : index
    %118 = memref.load %arg3[%c0_123, %c0_124] : memref<4x4xf32, #tpu.memory_space<smem>>
    %119 = vector.broadcast %118 : f32 to vector<16x16xf32>
    %120 = arith.mulf %117, %119 : vector<16x16xf32>
    %c0_125 = arith.constant 0 : index
    %c1_126 = arith.constant 1 : index
    %c0_127 = arith.constant 0 : index
    %c0_128 = arith.constant 0 : index
    %121 = vector.load %arg1[%c0_125, %c1_126, %c0_127, %c0_128] : memref<1x4x16x16xf32, #tpu.memory_space<vmem>>, vector<1x1x16x16xf32>
    %122 = vector.shape_cast %121 : vector<1x1x16x16xf32> to vector<16x16xf32>
    %c0_129 = arith.constant 0 : index
    %c1_130 = arith.constant 1 : index
    %123 = memref.load %arg3[%c0_129, %c1_130] : memref<4x4xf32, #tpu.memory_space<smem>>
    %124 = vector.broadcast %123 : f32 to vector<16x16xf32>
    %125 = arith.mulf %122, %124 : vector<16x16xf32>
    %126 = arith.addf %120, %125 : vector<16x16xf32>
    %c0_131 = arith.constant 0 : index
    %c2_132 = arith.constant 2 : index
    %c0_133 = arith.constant 0 : index
    %c0_134 = arith.constant 0 : index
    %127 = vector.load %arg1[%c0_131, %c2_132, %c0_133, %c0_134] : memref<1x4x16x16xf32, #tpu.memory_space<vmem>>, vector<1x1x16x16xf32>
    %128 = vector.shape_cast %127 : vector<1x1x16x16xf32> to vector<16x16xf32>
    %c0_135 = arith.constant 0 : index
    %c2_136 = arith.constant 2 : index
    %129 = memref.load %arg3[%c0_135, %c2_136] : memref<4x4xf32, #tpu.memory_space<smem>>
    %130 = vector.broadcast %129 : f32 to vector<16x16xf32>
    %131 = arith.mulf %128, %130 : vector<16x16xf32>
    %132 = arith.addf %126, %131 : vector<16x16xf32>
    %c0_137 = arith.constant 0 : index
    %c3_138 = arith.constant 3 : index
    %c0_139 = arith.constant 0 : index
    %c0_140 = arith.constant 0 : index
    %133 = vector.load %arg1[%c0_137, %c3_138, %c0_139, %c0_140] : memref<1x4x16x16xf32, #tpu.memory_space<vmem>>, vector<1x1x16x16xf32>
    %134 = vector.shape_cast %133 : vector<1x1x16x16xf32> to vector<16x16xf32>
    %c0_141 = arith.constant 0 : index
    %c3_142 = arith.constant 3 : index
    %135 = memref.load %arg3[%c0_141, %c3_142] : memref<4x4xf32, #tpu.memory_space<smem>>
    %136 = vector.broadcast %135 : f32 to vector<16x16xf32>
    %137 = arith.mulf %134, %136 : vector<16x16xf32>
    %138 = arith.addf %132, %137 : vector<16x16xf32>
    %c4 = arith.constant 4 : index
    %c1_143 = arith.constant 1 : index
    %c1_144 = arith.constant 1 : index
    %139 = vector.load %arg9[%c4, %c1_143, %c1_144] : memref<8x18x18xf32, #tpu.memory_space<vmem>>, vector<1x16x16xf32>
    %140 = vector.shape_cast %139 : vector<1x16x16xf32> to vector<16x16xf32>
    %141 = vector.shape_cast %138 : vector<16x16xf32> to vector<1x16x16xf32>
    tpu.vector_store %arg9[%c4, %c1_143, %c1_144], %141 {strides = array<i32>} : memref<8x18x18xf32, #tpu.memory_space<vmem>>, vector<1x16x16xf32>,
    %c0_145 = arith.constant 0 : index
    %c0_146 = arith.constant 0 : index
    %c0_147 = arith.constant 0 : index
    %c0_148 = arith.constant 0 : index
    %142 = vector.load %arg1[%c0_145, %c0_146, %c0_147, %c0_148] : memref<1x4x16x16xf32, #tpu.memory_space<vmem>>, vector<1x1x16x16xf32>
    %143 = vector.shape_cast %142 : vector<1x1x16x16xf32> to vector<16x16xf32>
    %c1_149 = arith.constant 1 : index
    %c0_150 = arith.constant 0 : index
    %144 = memref.load %arg3[%c1_149, %c0_150] : memref<4x4xf32, #tpu.memory_space<smem>>
    %145 = vector.broadcast %144 : f32 to vector<16x16xf32>
    %146 = arith.mulf %143, %145 : vector<16x16xf32>
    %c0_151 = arith.constant 0 : index
    %c1_152 = arith.constant 1 : index
    %c0_153 = arith.constant 0 : index
    %c0_154 = arith.constant 0 : index
    %147 = vector.load %arg1[%c0_151, %c1_152, %c0_153, %c0_154] : memref<1x4x16x16xf32, #tpu.memory_space<vmem>>, vector<1x1x16x16xf32>
    %148 = vector.shape_cast %147 : vector<1x1x16x16xf32> to vector<16x16xf32>
    %c1_155 = arith.constant 1 : index
    %c1_156 = arith.constant 1 : index
    %149 = memref.load %arg3[%c1_155, %c1_156] : memref<4x4xf32, #tpu.memory_space<smem>>
    %150 = vector.broadcast %149 : f32 to vector<16x16xf32>
    %151 = arith.mulf %148, %150 : vector<16x16xf32>
    %152 = arith.addf %146, %151 : vector<16x16xf32>
    %c0_157 = arith.constant 0 : index
    %c2_158 = arith.constant 2 : index
    %c0_159 = arith.constant 0 : index
    %c0_160 = arith.constant 0 : index
    %153 = vector.load %arg1[%c0_157, %c2_158, %c0_159, %c0_160] : memref<1x4x16x16xf32, #tpu.memory_space<vmem>>, vector<1x1x16x16xf32>
    %154 = vector.shape_cast %153 : vector<1x1x16x16xf32> to vector<16x16xf32>
    %c1_161 = arith.constant 1 : index
    %c2_162 = arith.constant 2 : index
    %155 = memref.load %arg3[%c1_161, %c2_162] : memref<4x4xf32, #tpu.memory_space<smem>>
    %156 = vector.broadcast %155 : f32 to vector<16x16xf32>
    %157 = arith.mulf %154, %156 : vector<16x16xf32>
    %158 = arith.addf %152, %157 : vector<16x16xf32>
    %c0_163 = arith.constant 0 : index
    %c3_164 = arith.constant 3 : index
    %c0_165 = arith.constant 0 : index
    %c0_166 = arith.constant 0 : index
    %159 = vector.load %arg1[%c0_163, %c3_164, %c0_165, %c0_166] : memref<1x4x16x16xf32, #tpu.memory_space<vmem>>, vector<1x1x16x16xf32>
    %160 = vector.shape_cast %159 : vector<1x1x16x16xf32> to vector<16x16xf32>
    %c1_167 = arith.constant 1 : index
    %c3_168 = arith.constant 3 : index
    %161 = memref.load %arg3[%c1_167, %c3_168] : memref<4x4xf32, #tpu.memory_space<smem>>
    %162 = vector.broadcast %161 : f32 to vector<16x16xf32>
    %163 = arith.mulf %160, %162 : vector<16x16xf32>
    %164 = arith.addf %158, %163 : vector<16x16xf32>
    %c5 = arith.constant 5 : index
    %c1_169 = arith.constant 1 : index
    %c1_170 = arith.constant 1 : index
    %165 = vector.load %arg9[%c5, %c1_169, %c1_170] : memref<8x18x18xf32, #tpu.memory_space<vmem>>, vector<1x16x16xf32>
    %166 = vector.shape_cast %165 : vector<1x16x16xf32> to vector<16x16xf32>
    %167 = vector.shape_cast %164 : vector<16x16xf32> to vector<1x16x16xf32>
    tpu.vector_store %arg9[%c5, %c1_169, %c1_170], %167 {strides = array<i32>} : memref<8x18x18xf32, #tpu.memory_space<vmem>>, vector<1x16x16xf32>,
    %c0_171 = arith.constant 0 : index
    %c0_172 = arith.constant 0 : index
    %c0_173 = arith.constant 0 : index
    %c0_174 = arith.constant 0 : index
    %168 = vector.load %arg1[%c0_171, %c0_172, %c0_173, %c0_174] : memref<1x4x16x16xf32, #tpu.memory_space<vmem>>, vector<1x1x16x16xf32>
    %169 = vector.shape_cast %168 : vector<1x1x16x16xf32> to vector<16x16xf32>
    %c2_175 = arith.constant 2 : index
    %c0_176 = arith.constant 0 : index
    %170 = memref.load %arg3[%c2_175, %c0_176] : memref<4x4xf32, #tpu.memory_space<smem>>
    %171 = vector.broadcast %170 : f32 to vector<16x16xf32>
    %172 = arith.mulf %169, %171 : vector<16x16xf32>
    %c0_177 = arith.constant 0 : index
    %c1_178 = arith.constant 1 : index
    %c0_179 = arith.constant 0 : index
    %c0_180 = arith.constant 0 : index
    %173 = vector.load %arg1[%c0_177, %c1_178, %c0_179, %c0_180] : memref<1x4x16x16xf32, #tpu.memory_space<vmem>>, vector<1x1x16x16xf32>
    %174 = vector.shape_cast %173 : vector<1x1x16x16xf32> to vector<16x16xf32>
    %c2_181 = arith.constant 2 : index
    %c1_182 = arith.constant 1 : index
    %175 = memref.load %arg3[%c2_181, %c1_182] : memref<4x4xf32, #tpu.memory_space<smem>>
    %176 = vector.broadcast %175 : f32 to vector<16x16xf32>
    %177 = arith.mulf %174, %176 : vector<16x16xf32>
    %178 = arith.addf %172, %177 : vector<16x16xf32>
    %c0_183 = arith.constant 0 : index
    %c2_184 = arith.constant 2 : index
    %c0_185 = arith.constant 0 : index
    %c0_186 = arith.constant 0 : index
    %179 = vector.load %arg1[%c0_183, %c2_184, %c0_185, %c0_186] : memref<1x4x16x16xf32, #tpu.memory_space<vmem>>, vector<1x1x16x16xf32>
    %180 = vector.shape_cast %179 : vector<1x1x16x16xf32> to vector<16x16xf32>
    %c2_187 = arith.constant 2 : index
    %c2_188 = arith.constant 2 : index
    %181 = memref.load %arg3[%c2_187, %c2_188] : memref<4x4xf32, #tpu.memory_space<smem>>
    %182 = vector.broadcast %181 : f32 to vector<16x16xf32>
    %183 = arith.mulf %180, %182 : vector<16x16xf32>
    %184 = arith.addf %178, %183 : vector<16x16xf32>
    %c0_189 = arith.constant 0 : index
    %c3_190 = arith.constant 3 : index
    %c0_191 = arith.constant 0 : index
    %c0_192 = arith.constant 0 : index
    %185 = vector.load %arg1[%c0_189, %c3_190, %c0_191, %c0_192] : memref<1x4x16x16xf32, #tpu.memory_space<vmem>>, vector<1x1x16x16xf32>
    %186 = vector.shape_cast %185 : vector<1x1x16x16xf32> to vector<16x16xf32>
    %c2_193 = arith.constant 2 : index
    %c3_194 = arith.constant 3 : index
    %187 = memref.load %arg3[%c2_193, %c3_194] : memref<4x4xf32, #tpu.memory_space<smem>>
    %188 = vector.broadcast %187 : f32 to vector<16x16xf32>
    %189 = arith.mulf %186, %188 : vector<16x16xf32>
    %190 = arith.addf %184, %189 : vector<16x16xf32>
    %c6 = arith.constant 6 : index
    %c1_195 = arith.constant 1 : index
    %c1_196 = arith.constant 1 : index
    %191 = vector.load %arg9[%c6, %c1_195, %c1_196] : memref<8x18x18xf32, #tpu.memory_space<vmem>>, vector<1x16x16xf32>
    %192 = vector.shape_cast %191 : vector<1x16x16xf32> to vector<16x16xf32>
    %193 = vector.shape_cast %190 : vector<16x16xf32> to vector<1x16x16xf32>
    tpu.vector_store %arg9[%c6, %c1_195, %c1_196], %193 {strides = array<i32>} : memref<8x18x18xf32, #tpu.memory_space<vmem>>, vector<1x16x16xf32>,
    %c0_197 = arith.constant 0 : index
    %c0_198 = arith.constant 0 : index
    %c0_199 = arith.constant 0 : index
    %c0_200 = arith.constant 0 : index
    %194 = vector.load %arg1[%c0_197, %c0_198, %c0_199, %c0_200] : memref<1x4x16x16xf32, #tpu.memory_space<vmem>>, vector<1x1x16x16xf32>
    %195 = vector.shape_cast %194 : vector<1x1x16x16xf32> to vector<16x16xf32>
    %c3_201 = arith.constant 3 : index
    %c0_202 = arith.constant 0 : index
    %196 = memref.load %arg3[%c3_201, %c0_202] : memref<4x4xf32, #tpu.memory_space<smem>>
    %197 = vector.broadcast %196 : f32 to vector<16x16xf32>
    %198 = arith.mulf %195, %197 : vector<16x16xf32>
    %c0_203 = arith.constant 0 : index
    %c1_204 = arith.constant 1 : index
    %c0_205 = arith.constant 0 : index
    %c0_206 = arith.constant 0 : index
    %199 = vector.load %arg1[%c0_203, %c1_204, %c0_205, %c0_206] : memref<1x4x16x16xf32, #tpu.memory_space<vmem>>, vector<1x1x16x16xf32>
    %200 = vector.shape_cast %199 : vector<1x1x16x16xf32> to vector<16x16xf32>
    %c3_207 = arith.constant 3 : index
    %c1_208 = arith.constant 1 : index
    %201 = memref.load %arg3[%c3_207, %c1_208] : memref<4x4xf32, #tpu.memory_space<smem>>
    %202 = vector.broadcast %201 : f32 to vector<16x16xf32>
    %203 = arith.mulf %200, %202 : vector<16x16xf32>
    %204 = arith.addf %198, %203 : vector<16x16xf32>
    %c0_209 = arith.constant 0 : index
    %c2_210 = arith.constant 2 : index
    %c0_211 = arith.constant 0 : index
    %c0_212 = arith.constant 0 : index
    %205 = vector.load %arg1[%c0_209, %c2_210, %c0_211, %c0_212] : memref<1x4x16x16xf32, #tpu.memory_space<vmem>>, vector<1x1x16x16xf32>
    %206 = vector.shape_cast %205 : vector<1x1x16x16xf32> to vector<16x16xf32>
    %c3_213 = arith.constant 3 : index
    %c2_214 = arith.constant 2 : index
    %207 = memref.load %arg3[%c3_213, %c2_214] : memref<4x4xf32, #tpu.memory_space<smem>>
    %208 = vector.broadcast %207 : f32 to vector<16x16xf32>
    %209 = arith.mulf %206, %208 : vector<16x16xf32>
    %210 = arith.addf %204, %209 : vector<16x16xf32>
    %c0_215 = arith.constant 0 : index
    %c3_216 = arith.constant 3 : index
    %c0_217 = arith.constant 0 : index
    %c0_218 = arith.constant 0 : index
    %211 = vector.load %arg1[%c0_215, %c3_216, %c0_217, %c0_218] : memref<1x4x16x16xf32, #tpu.memory_space<vmem>>, vector<1x1x16x16xf32>
    %212 = vector.shape_cast %211 : vector<1x1x16x16xf32> to vector<16x16xf32>
    %c3_219 = arith.constant 3 : index
    %c3_220 = arith.constant 3 : index
    %213 = memref.load %arg3[%c3_219, %c3_220] : memref<4x4xf32, #tpu.memory_space<smem>>
    %214 = vector.broadcast %213 : f32 to vector<16x16xf32>
    %215 = arith.mulf %212, %214 : vector<16x16xf32>
    %216 = arith.addf %210, %215 : vector<16x16xf32>
    %c7 = arith.constant 7 : index
    %c1_221 = arith.constant 1 : index
    %c1_222 = arith.constant 1 : index
    %217 = vector.load %arg9[%c7, %c1_221, %c1_222] : memref<8x18x18xf32, #tpu.memory_space<vmem>>, vector<1x16x16xf32>
    %218 = vector.shape_cast %217 : vector<1x16x16xf32> to vector<16x16xf32>
    %219 = vector.shape_cast %216 : vector<16x16xf32> to vector<1x16x16xf32>
    tpu.vector_store %arg9[%c7, %c1_221, %c1_222], %219 {strides = array<i32>} : memref<8x18x18xf32, #tpu.memory_space<vmem>>, vector<1x16x16xf32>,
    %cst_223 = arith.constant 0.000000e+00 : f32
    %220 = vector.broadcast %cst_223 : f32 to vector<16x16xf32>
    %cst_224 = arith.constant 0.000000e+00 : f32
    %221 = vector.broadcast %cst_224 : f32 to vector<16x16xf32>
    %c0_225 = arith.constant 0 : index
    %c0_226 = arith.constant 0 : index
    %c0_227 = arith.constant 0 : index
    %222 = vector.load %arg9[%c0_225, %c0_226, %c0_227] : memref<8x18x18xf32, #tpu.memory_space<vmem>>, vector<1x16x16xf32>
    %223 = vector.shape_cast %222 : vector<1x16x16xf32> to vector<16x16xf32>
    %c0_228 = arith.constant 0 : index
    %c0_229 = arith.constant 0 : index
    %224 = memref.load %arg5[%c0_228, %c0_229] : memref<2x72xf32, #tpu.memory_space<smem>>
    %225 = vector.broadcast %224 : f32 to vector<16x16xf32>
    %226 = arith.mulf %223, %225 : vector<16x16xf32>
    %227 = arith.addf %220, %226 : vector<16x16xf32>
    %c1_230 = arith.constant 1 : index
    %c0_231 = arith.constant 0 : index
    %228 = memref.load %arg5[%c1_230, %c0_231] : memref<2x72xf32, #tpu.memory_space<smem>>
    %229 = vector.broadcast %228 : f32 to vector<16x16xf32>
    %230 = arith.mulf %223, %229 : vector<16x16xf32>
    %231 = arith.addf %221, %230 : vector<16x16xf32>
    %c0_232 = arith.constant 0 : index
    %c0_233 = arith.constant 0 : index
    %c1_234 = arith.constant 1 : index
    %232 = vector.load %arg9[%c0_232, %c0_233, %c1_234] : memref<8x18x18xf32, #tpu.memory_space<vmem>>, vector<1x16x16xf32>
    %233 = vector.shape_cast %232 : vector<1x16x16xf32> to vector<16x16xf32>
    %c0_235 = arith.constant 0 : index
    %c1_236 = arith.constant 1 : index
    %234 = memref.load %arg5[%c0_235, %c1_236] : memref<2x72xf32, #tpu.memory_space<smem>>
    %235 = vector.broadcast %234 : f32 to vector<16x16xf32>
    %236 = arith.mulf %233, %235 : vector<16x16xf32>
    %237 = arith.addf %227, %236 : vector<16x16xf32>
    %c1_237 = arith.constant 1 : index
    %c1_238 = arith.constant 1 : index
    %238 = memref.load %arg5[%c1_237, %c1_238] : memref<2x72xf32, #tpu.memory_space<smem>>
    %239 = vector.broadcast %238 : f32 to vector<16x16xf32>
    %240 = arith.mulf %233, %239 : vector<16x16xf32>
    %241 = arith.addf %231, %240 : vector<16x16xf32>
    %c0_239 = arith.constant 0 : index
    %c0_240 = arith.constant 0 : index
    %c2_241 = arith.constant 2 : index
    %242 = vector.load %arg9[%c0_239, %c0_240, %c2_241] : memref<8x18x18xf32, #tpu.memory_space<vmem>>, vector<1x16x16xf32>
    %243 = vector.shape_cast %242 : vector<1x16x16xf32> to vector<16x16xf32>
    %c0_242 = arith.constant 0 : index
    %c2_243 = arith.constant 2 : index
    %244 = memref.load %arg5[%c0_242, %c2_243] : memref<2x72xf32, #tpu.memory_space<smem>>
    %245 = vector.broadcast %244 : f32 to vector<16x16xf32>
    %246 = arith.mulf %243, %245 : vector<16x16xf32>
    %247 = arith.addf %237, %246 : vector<16x16xf32>
    %c1_244 = arith.constant 1 : index
    %c2_245 = arith.constant 2 : index
    %248 = memref.load %arg5[%c1_244, %c2_245] : memref<2x72xf32, #tpu.memory_space<smem>>
    %249 = vector.broadcast %248 : f32 to vector<16x16xf32>
    %250 = arith.mulf %243, %249 : vector<16x16xf32>
    %251 = arith.addf %241, %250 : vector<16x16xf32>
    %c0_246 = arith.constant 0 : index
    %c1_247 = arith.constant 1 : index
    %c0_248 = arith.constant 0 : index
    %252 = vector.load %arg9[%c0_246, %c1_247, %c0_248] : memref<8x18x18xf32, #tpu.memory_space<vmem>>, vector<1x16x16xf32>
    %253 = vector.shape_cast %252 : vector<1x16x16xf32> to vector<16x16xf32>
    %c0_249 = arith.constant 0 : index
    %c3_250 = arith.constant 3 : index
    %254 = memref.load %arg5[%c0_249, %c3_250] : memref<2x72xf32, #tpu.memory_space<smem>>
    %255 = vector.broadcast %254 : f32 to vector<16x16xf32>
    %256 = arith.mulf %253, %255 : vector<16x16xf32>
    %257 = arith.addf %247, %256 : vector<16x16xf32>
    %c1_251 = arith.constant 1 : index
    %c3_252 = arith.constant 3 : index
    %258 = memref.load %arg5[%c1_251, %c3_252] : memref<2x72xf32, #tpu.memory_space<smem>>
    %259 = vector.broadcast %258 : f32 to vector<16x16xf32>
    %260 = arith.mulf %253, %259 : vector<16x16xf32>
    %261 = arith.addf %251, %260 : vector<16x16xf32>
    %c0_253 = arith.constant 0 : index
    %c1_254 = arith.constant 1 : index
    %c1_255 = arith.constant 1 : index
    %262 = vector.load %arg9[%c0_253, %c1_254, %c1_255] : memref<8x18x18xf32, #tpu.memory_space<vmem>>, vector<1x16x16xf32>
    %263 = vector.shape_cast %262 : vector<1x16x16xf32> to vector<16x16xf32>
    %c0_256 = arith.constant 0 : index
    %c4_257 = arith.constant 4 : index
    %264 = memref.load %arg5[%c0_256, %c4_257] : memref<2x72xf32, #tpu.memory_space<smem>>
    %265 = vector.broadcast %264 : f32 to vector<16x16xf32>
    %266 = arith.mulf %263, %265 : vector<16x16xf32>
    %267 = arith.addf %257, %266 : vector<16x16xf32>
    %c1_258 = arith.constant 1 : index
    %c4_259 = arith.constant 4 : index
    %268 = memref.load %arg5[%c1_258, %c4_259] : memref<2x72xf32, #tpu.memory_space<smem>>
    %269 = vector.broadcast %268 : f32 to vector<16x16xf32>
    %270 = arith.mulf %263, %269 : vector<16x16xf32>
    %271 = arith.addf %261, %270 : vector<16x16xf32>
    %c0_260 = arith.constant 0 : index
    %c1_261 = arith.constant 1 : index
    %c2_262 = arith.constant 2 : index
    %272 = vector.load %arg9[%c0_260, %c1_261, %c2_262] : memref<8x18x18xf32, #tpu.memory_space<vmem>>, vector<1x16x16xf32>
    %273 = vector.shape_cast %272 : vector<1x16x16xf32> to vector<16x16xf32>
    %c0_263 = arith.constant 0 : index
    %c5_264 = arith.constant 5 : index
    %274 = memref.load %arg5[%c0_263, %c5_264] : memref<2x72xf32, #tpu.memory_space<smem>>
    %275 = vector.broadcast %274 : f32 to vector<16x16xf32>
    %276 = arith.mulf %273, %275 : vector<16x16xf32>
    %277 = arith.addf %267, %276 : vector<16x16xf32>
    %c1_265 = arith.constant 1 : index
    %c5_266 = arith.constant 5 : index
    %278 = memref.load %arg5[%c1_265, %c5_266] : memref<2x72xf32, #tpu.memory_space<smem>>
    %279 = vector.broadcast %278 : f32 to vector<16x16xf32>
    %280 = arith.mulf %273, %279 : vector<16x16xf32>
    %281 = arith.addf %271, %280 : vector<16x16xf32>
    %c0_267 = arith.constant 0 : index
    %c2_268 = arith.constant 2 : index
    %c0_269 = arith.constant 0 : index
    %282 = vector.load %arg9[%c0_267, %c2_268, %c0_269] : memref<8x18x18xf32, #tpu.memory_space<vmem>>, vector<1x16x16xf32>
    %283 = vector.shape_cast %282 : vector<1x16x16xf32> to vector<16x16xf32>
    %c0_270 = arith.constant 0 : index
    %c6_271 = arith.constant 6 : index
    %284 = memref.load %arg5[%c0_270, %c6_271] : memref<2x72xf32, #tpu.memory_space<smem>>
    %285 = vector.broadcast %284 : f32 to vector<16x16xf32>
    %286 = arith.mulf %283, %285 : vector<16x16xf32>
    %287 = arith.addf %277, %286 : vector<16x16xf32>
    %c1_272 = arith.constant 1 : index
    %c6_273 = arith.constant 6 : index
    %288 = memref.load %arg5[%c1_272, %c6_273] : memref<2x72xf32, #tpu.memory_space<smem>>
    %289 = vector.broadcast %288 : f32 to vector<16x16xf32>
    %290 = arith.mulf %283, %289 : vector<16x16xf32>
    %291 = arith.addf %281, %290 : vector<16x16xf32>
    %c0_274 = arith.constant 0 : index
    %c2_275 = arith.constant 2 : index
    %c1_276 = arith.constant 1 : index
    %292 = vector.load %arg9[%c0_274, %c2_275, %c1_276] : memref<8x18x18xf32, #tpu.memory_space<vmem>>, vector<1x16x16xf32>
    %293 = vector.shape_cast %292 : vector<1x16x16xf32> to vector<16x16xf32>
    %c0_277 = arith.constant 0 : index
    %c7_278 = arith.constant 7 : index
    %294 = memref.load %arg5[%c0_277, %c7_278] : memref<2x72xf32, #tpu.memory_space<smem>>
    %295 = vector.broadcast %294 : f32 to vector<16x16xf32>
    %296 = arith.mulf %293, %295 : vector<16x16xf32>
    %297 = arith.addf %287, %296 : vector<16x16xf32>
    %c1_279 = arith.constant 1 : index
    %c7_280 = arith.constant 7 : index
    %298 = memref.load %arg5[%c1_279, %c7_280] : memref<2x72xf32, #tpu.memory_space<smem>>
    %299 = vector.broadcast %298 : f32 to vector<16x16xf32>
    %300 = arith.mulf %293, %299 : vector<16x16xf32>
    %301 = arith.addf %291, %300 : vector<16x16xf32>
    %c0_281 = arith.constant 0 : index
    %c2_282 = arith.constant 2 : index
    %c2_283 = arith.constant 2 : index
    %302 = vector.load %arg9[%c0_281, %c2_282, %c2_283] : memref<8x18x18xf32, #tpu.memory_space<vmem>>, vector<1x16x16xf32>
    %303 = vector.shape_cast %302 : vector<1x16x16xf32> to vector<16x16xf32>
    %c0_284 = arith.constant 0 : index
    %c8 = arith.constant 8 : index
    %304 = memref.load %arg5[%c0_284, %c8] : memref<2x72xf32, #tpu.memory_space<smem>>
    %305 = vector.broadcast %304 : f32 to vector<16x16xf32>
    %306 = arith.mulf %303, %305 : vector<16x16xf32>
    %307 = arith.addf %297, %306 : vector<16x16xf32>
    %c1_285 = arith.constant 1 : index
    %c8_286 = arith.constant 8 : index
    %308 = memref.load %arg5[%c1_285, %c8_286] : memref<2x72xf32, #tpu.memory_space<smem>>
    %309 = vector.broadcast %308 : f32 to vector<16x16xf32>
    %310 = arith.mulf %303, %309 : vector<16x16xf32>
    %311 = arith.addf %301, %310 : vector<16x16xf32>
    %c1_287 = arith.constant 1 : index
    %c0_288 = arith.constant 0 : index
    %c0_289 = arith.constant 0 : index
    %312 = vector.load %arg9[%c1_287, %c0_288, %c0_289] : memref<8x18x18xf32, #tpu.memory_space<vmem>>, vector<1x16x16xf32>
    %313 = vector.shape_cast %312 : vector<1x16x16xf32> to vector<16x16xf32>
    %c0_290 = arith.constant 0 : index
    %c9 = arith.constant 9 : index
    %314 = memref.load %arg5[%c0_290, %c9] : memref<2x72xf32, #tpu.memory_space<smem>>
    %315 = vector.broadcast %314 : f32 to vector<16x16xf32>
    %316 = arith.mulf %313, %315 : vector<16x16xf32>
    %317 = arith.addf %307, %316 : vector<16x16xf32>
    %c1_291 = arith.constant 1 : index
    %c9_292 = arith.constant 9 : index
    %318 = memref.load %arg5[%c1_291, %c9_292] : memref<2x72xf32, #tpu.memory_space<smem>>
    %319 = vector.broadcast %318 : f32 to vector<16x16xf32>
    %320 = arith.mulf %313, %319 : vector<16x16xf32>
    %321 = arith.addf %311, %320 : vector<16x16xf32>
    %c1_293 = arith.constant 1 : index
    %c0_294 = arith.constant 0 : index
    %c1_295 = arith.constant 1 : index
    %322 = vector.load %arg9[%c1_293, %c0_294, %c1_295] : memref<8x18x18xf32, #tpu.memory_space<vmem>>, vector<1x16x16xf32>
    %323 = vector.shape_cast %322 : vector<1x16x16xf32> to vector<16x16xf32>
    %c0_296 = arith.constant 0 : index
    %c10 = arith.constant 10 : index
    %324 = memref.load %arg5[%c0_296, %c10] : memref<2x72xf32, #tpu.memory_space<smem>>
    %325 = vector.broadcast %324 : f32 to vector<16x16xf32>
    %326 = arith.mulf %323, %325 : vector<16x16xf32>
    %327 = arith.addf %317, %326 : vector<16x16xf32>
    %c1_297 = arith.constant 1 : index
    %c10_298 = arith.constant 10 : index
    %328 = memref.load %arg5[%c1_297, %c10_298] : memref<2x72xf32, #tpu.memory_space<smem>>
    %329 = vector.broadcast %328 : f32 to vector<16x16xf32>
    %330 = arith.mulf %323, %329 : vector<16x16xf32>
    %331 = arith.addf %321, %330 : vector<16x16xf32>
    %c1_299 = arith.constant 1 : index
    %c0_300 = arith.constant 0 : index
    %c2_301 = arith.constant 2 : index
    %332 = vector.load %arg9[%c1_299, %c0_300, %c2_301] : memref<8x18x18xf32, #tpu.memory_space<vmem>>, vector<1x16x16xf32>
    %333 = vector.shape_cast %332 : vector<1x16x16xf32> to vector<16x16xf32>
    %c0_302 = arith.constant 0 : index
    %c11 = arith.constant 11 : index
    %334 = memref.load %arg5[%c0_302, %c11] : memref<2x72xf32, #tpu.memory_space<smem>>
    %335 = vector.broadcast %334 : f32 to vector<16x16xf32>
    %336 = arith.mulf %333, %335 : vector<16x16xf32>
    %337 = arith.addf %327, %336 : vector<16x16xf32>
    %c1_303 = arith.constant 1 : index
    %c11_304 = arith.constant 11 : index
    %338 = memref.load %arg5[%c1_303, %c11_304] : memref<2x72xf32, #tpu.memory_space<smem>>
    %339 = vector.broadcast %338 : f32 to vector<16x16xf32>
    %340 = arith.mulf %333, %339 : vector<16x16xf32>
    %341 = arith.addf %331, %340 : vector<16x16xf32>
    %c1_305 = arith.constant 1 : index
    %c1_306 = arith.constant 1 : index
    %c0_307 = arith.constant 0 : index
    %342 = vector.load %arg9[%c1_305, %c1_306, %c0_307] : memref<8x18x18xf32, #tpu.memory_space<vmem>>, vector<1x16x16xf32>
    %343 = vector.shape_cast %342 : vector<1x16x16xf32> to vector<16x16xf32>
    %c0_308 = arith.constant 0 : index
    %c12 = arith.constant 12 : index
    %344 = memref.load %arg5[%c0_308, %c12] : memref<2x72xf32, #tpu.memory_space<smem>>
    %345 = vector.broadcast %344 : f32 to vector<16x16xf32>
    %346 = arith.mulf %343, %345 : vector<16x16xf32>
    %347 = arith.addf %337, %346 : vector<16x16xf32>
    %c1_309 = arith.constant 1 : index
    %c12_310 = arith.constant 12 : index
    %348 = memref.load %arg5[%c1_309, %c12_310] : memref<2x72xf32, #tpu.memory_space<smem>>
    %349 = vector.broadcast %348 : f32 to vector<16x16xf32>
    %350 = arith.mulf %343, %349 : vector<16x16xf32>
    %351 = arith.addf %341, %350 : vector<16x16xf32>
    %c1_311 = arith.constant 1 : index
    %c1_312 = arith.constant 1 : index
    %c1_313 = arith.constant 1 : index
    %352 = vector.load %arg9[%c1_311, %c1_312, %c1_313] : memref<8x18x18xf32, #tpu.memory_space<vmem>>, vector<1x16x16xf32>
    %353 = vector.shape_cast %352 : vector<1x16x16xf32> to vector<16x16xf32>
    %c0_314 = arith.constant 0 : index
    %c13 = arith.constant 13 : index
    %354 = memref.load %arg5[%c0_314, %c13] : memref<2x72xf32, #tpu.memory_space<smem>>
    %355 = vector.broadcast %354 : f32 to vector<16x16xf32>
    %356 = arith.mulf %353, %355 : vector<16x16xf32>
    %357 = arith.addf %347, %356 : vector<16x16xf32>
    %c1_315 = arith.constant 1 : index
    %c13_316 = arith.constant 13 : index
    %358 = memref.load %arg5[%c1_315, %c13_316] : memref<2x72xf32, #tpu.memory_space<smem>>
    %359 = vector.broadcast %358 : f32 to vector<16x16xf32>
    %360 = arith.mulf %353, %359 : vector<16x16xf32>
    %361 = arith.addf %351, %360 : vector<16x16xf32>
    %c1_317 = arith.constant 1 : index
    %c1_318 = arith.constant 1 : index
    %c2_319 = arith.constant 2 : index
    %362 = vector.load %arg9[%c1_317, %c1_318, %c2_319] : memref<8x18x18xf32, #tpu.memory_space<vmem>>, vector<1x16x16xf32>
    %363 = vector.shape_cast %362 : vector<1x16x16xf32> to vector<16x16xf32>
    %c0_320 = arith.constant 0 : index
    %c14 = arith.constant 14 : index
    %364 = memref.load %arg5[%c0_320, %c14] : memref<2x72xf32, #tpu.memory_space<smem>>
    %365 = vector.broadcast %364 : f32 to vector<16x16xf32>
    %366 = arith.mulf %363, %365 : vector<16x16xf32>
    %367 = arith.addf %357, %366 : vector<16x16xf32>
    %c1_321 = arith.constant 1 : index
    %c14_322 = arith.constant 14 : index
    %368 = memref.load %arg5[%c1_321, %c14_322] : memref<2x72xf32, #tpu.memory_space<smem>>
    %369 = vector.broadcast %368 : f32 to vector<16x16xf32>
    %370 = arith.mulf %363, %369 : vector<16x16xf32>
    %371 = arith.addf %361, %370 : vector<16x16xf32>
    %c1_323 = arith.constant 1 : index
    %c2_324 = arith.constant 2 : index
    %c0_325 = arith.constant 0 : index
    %372 = vector.load %arg9[%c1_323, %c2_324, %c0_325] : memref<8x18x18xf32, #tpu.memory_space<vmem>>, vector<1x16x16xf32>
    %373 = vector.shape_cast %372 : vector<1x16x16xf32> to vector<16x16xf32>
    %c0_326 = arith.constant 0 : index
    %c15 = arith.constant 15 : index
    %374 = memref.load %arg5[%c0_326, %c15] : memref<2x72xf32, #tpu.memory_space<smem>>
    %375 = vector.broadcast %374 : f32 to vector<16x16xf32>
    %376 = arith.mulf %373, %375 : vector<16x16xf32>
    %377 = arith.addf %367, %376 : vector<16x16xf32>
    %c1_327 = arith.constant 1 : index
    %c15_328 = arith.constant 15 : index
    %378 = memref.load %arg5[%c1_327, %c15_328] : memref<2x72xf32, #tpu.memory_space<smem>>
    %379 = vector.broadcast %378 : f32 to vector<16x16xf32>
    %380 = arith.mulf %373, %379 : vector<16x16xf32>
    %381 = arith.addf %371, %380 : vector<16x16xf32>
    %c1_329 = arith.constant 1 : index
    %c2_330 = arith.constant 2 : index
    %c1_331 = arith.constant 1 : index
    %382 = vector.load %arg9[%c1_329, %c2_330, %c1_331] : memref<8x18x18xf32, #tpu.memory_space<vmem>>, vector<1x16x16xf32>
    %383 = vector.shape_cast %382 : vector<1x16x16xf32> to vector<16x16xf32>
    %c0_332 = arith.constant 0 : index
    %c16 = arith.constant 16 : index
    %384 = memref.load %arg5[%c0_332, %c16] : memref<2x72xf32, #tpu.memory_space<smem>>
    %385 = vector.broadcast %384 : f32 to vector<16x16xf32>
    %386 = arith.mulf %383, %385 : vector<16x16xf32>
    %387 = arith.addf %377, %386 : vector<16x16xf32>
    %c1_333 = arith.constant 1 : index
    %c16_334 = arith.constant 16 : index
    %388 = memref.load %arg5[%c1_333, %c16_334] : memref<2x72xf32, #tpu.memory_space<smem>>
    %389 = vector.broadcast %388 : f32 to vector<16x16xf32>
    %390 = arith.mulf %383, %389 : vector<16x16xf32>
    %391 = arith.addf %381, %390 : vector<16x16xf32>
    %c1_335 = arith.constant 1 : index
    %c2_336 = arith.constant 2 : index
    %c2_337 = arith.constant 2 : index
    %392 = vector.load %arg9[%c1_335, %c2_336, %c2_337] : memref<8x18x18xf32, #tpu.memory_space<vmem>>, vector<1x16x16xf32>
    %393 = vector.shape_cast %392 : vector<1x16x16xf32> to vector<16x16xf32>
    %c0_338 = arith.constant 0 : index
    %c17 = arith.constant 17 : index
    %394 = memref.load %arg5[%c0_338, %c17] : memref<2x72xf32, #tpu.memory_space<smem>>
    %395 = vector.broadcast %394 : f32 to vector<16x16xf32>
    %396 = arith.mulf %393, %395 : vector<16x16xf32>
    %397 = arith.addf %387, %396 : vector<16x16xf32>
    %c1_339 = arith.constant 1 : index
    %c17_340 = arith.constant 17 : index
    %398 = memref.load %arg5[%c1_339, %c17_340] : memref<2x72xf32, #tpu.memory_space<smem>>
    %399 = vector.broadcast %398 : f32 to vector<16x16xf32>
    %400 = arith.mulf %393, %399 : vector<16x16xf32>
    %401 = arith.addf %391, %400 : vector<16x16xf32>
    %c2_341 = arith.constant 2 : index
    %c0_342 = arith.constant 0 : index
    %c0_343 = arith.constant 0 : index
    %402 = vector.load %arg9[%c2_341, %c0_342, %c0_343] : memref<8x18x18xf32, #tpu.memory_space<vmem>>, vector<1x16x16xf32>
    %403 = vector.shape_cast %402 : vector<1x16x16xf32> to vector<16x16xf32>
    %c0_344 = arith.constant 0 : index
    %c18 = arith.constant 18 : index
    %404 = memref.load %arg5[%c0_344, %c18] : memref<2x72xf32, #tpu.memory_space<smem>>
    %405 = vector.broadcast %404 : f32 to vector<16x16xf32>
    %406 = arith.mulf %403, %405 : vector<16x16xf32>
    %407 = arith.addf %397, %406 : vector<16x16xf32>
    %c1_345 = arith.constant 1 : index
    %c18_346 = arith.constant 18 : index
    %408 = memref.load %arg5[%c1_345, %c18_346] : memref<2x72xf32, #tpu.memory_space<smem>>
    %409 = vector.broadcast %408 : f32 to vector<16x16xf32>
    %410 = arith.mulf %403, %409 : vector<16x16xf32>
    %411 = arith.addf %401, %410 : vector<16x16xf32>
    %c2_347 = arith.constant 2 : index
    %c0_348 = arith.constant 0 : index
    %c1_349 = arith.constant 1 : index
    %412 = vector.load %arg9[%c2_347, %c0_348, %c1_349] : memref<8x18x18xf32, #tpu.memory_space<vmem>>, vector<1x16x16xf32>
    %413 = vector.shape_cast %412 : vector<1x16x16xf32> to vector<16x16xf32>
    %c0_350 = arith.constant 0 : index
    %c19 = arith.constant 19 : index
    %414 = memref.load %arg5[%c0_350, %c19] : memref<2x72xf32, #tpu.memory_space<smem>>
    %415 = vector.broadcast %414 : f32 to vector<16x16xf32>
    %416 = arith.mulf %413, %415 : vector<16x16xf32>
    %417 = arith.addf %407, %416 : vector<16x16xf32>
    %c1_351 = arith.constant 1 : index
    %c19_352 = arith.constant 19 : index
    %418 = memref.load %arg5[%c1_351, %c19_352] : memref<2x72xf32, #tpu.memory_space<smem>>
    %419 = vector.broadcast %418 : f32 to vector<16x16xf32>
    %420 = arith.mulf %413, %419 : vector<16x16xf32>
    %421 = arith.addf %411, %420 : vector<16x16xf32>
    %c2_353 = arith.constant 2 : index
    %c0_354 = arith.constant 0 : index
    %c2_355 = arith.constant 2 : index
    %422 = vector.load %arg9[%c2_353, %c0_354, %c2_355] : memref<8x18x18xf32, #tpu.memory_space<vmem>>, vector<1x16x16xf32>
    %423 = vector.shape_cast %422 : vector<1x16x16xf32> to vector<16x16xf32>
    %c0_356 = arith.constant 0 : index
    %c20 = arith.constant 20 : index
    %424 = memref.load %arg5[%c0_356, %c20] : memref<2x72xf32, #tpu.memory_space<smem>>
    %425 = vector.broadcast %424 : f32 to vector<16x16xf32>
    %426 = arith.mulf %423, %425 : vector<16x16xf32>
    %427 = arith.addf %417, %426 : vector<16x16xf32>
    %c1_357 = arith.constant 1 : index
    %c20_358 = arith.constant 20 : index
    %428 = memref.load %arg5[%c1_357, %c20_358] : memref<2x72xf32, #tpu.memory_space<smem>>
    %429 = vector.broadcast %428 : f32 to vector<16x16xf32>
    %430 = arith.mulf %423, %429 : vector<16x16xf32>
    %431 = arith.addf %421, %430 : vector<16x16xf32>
    %c2_359 = arith.constant 2 : index
    %c1_360 = arith.constant 1 : index
    %c0_361 = arith.constant 0 : index
    %432 = vector.load %arg9[%c2_359, %c1_360, %c0_361] : memref<8x18x18xf32, #tpu.memory_space<vmem>>, vector<1x16x16xf32>
    %433 = vector.shape_cast %432 : vector<1x16x16xf32> to vector<16x16xf32>
    %c0_362 = arith.constant 0 : index
    %c21 = arith.constant 21 : index
    %434 = memref.load %arg5[%c0_362, %c21] : memref<2x72xf32, #tpu.memory_space<smem>>
    %435 = vector.broadcast %434 : f32 to vector<16x16xf32>
    %436 = arith.mulf %433, %435 : vector<16x16xf32>
    %437 = arith.addf %427, %436 : vector<16x16xf32>
    %c1_363 = arith.constant 1 : index
    %c21_364 = arith.constant 21 : index
    %438 = memref.load %arg5[%c1_363, %c21_364] : memref<2x72xf32, #tpu.memory_space<smem>>
    %439 = vector.broadcast %438 : f32 to vector<16x16xf32>
    %440 = arith.mulf %433, %439 : vector<16x16xf32>
    %441 = arith.addf %431, %440 : vector<16x16xf32>
    %c2_365 = arith.constant 2 : index
    %c1_366 = arith.constant 1 : index
    %c1_367 = arith.constant 1 : index
    %442 = vector.load %arg9[%c2_365, %c1_366, %c1_367] : memref<8x18x18xf32, #tpu.memory_space<vmem>>, vector<1x16x16xf32>
    %443 = vector.shape_cast %442 : vector<1x16x16xf32> to vector<16x16xf32>
    %c0_368 = arith.constant 0 : index
    %c22 = arith.constant 22 : index
    %444 = memref.load %arg5[%c0_368, %c22] : memref<2x72xf32, #tpu.memory_space<smem>>
    %445 = vector.broadcast %444 : f32 to vector<16x16xf32>
    %446 = arith.mulf %443, %445 : vector<16x16xf32>
    %447 = arith.addf %437, %446 : vector<16x16xf32>
    %c1_369 = arith.constant 1 : index
    %c22_370 = arith.constant 22 : index
    %448 = memref.load %arg5[%c1_369, %c22_370] : memref<2x72xf32, #tpu.memory_space<smem>>
    %449 = vector.broadcast %448 : f32 to vector<16x16xf32>
    %450 = arith.mulf %443, %449 : vector<16x16xf32>
    %451 = arith.addf %441, %450 : vector<16x16xf32>
    %c2_371 = arith.constant 2 : index
    %c1_372 = arith.constant 1 : index
    %c2_373 = arith.constant 2 : index
    %452 = vector.load %arg9[%c2_371, %c1_372, %c2_373] : memref<8x18x18xf32, #tpu.memory_space<vmem>>, vector<1x16x16xf32>
    %453 = vector.shape_cast %452 : vector<1x16x16xf32> to vector<16x16xf32>
    %c0_374 = arith.constant 0 : index
    %c23 = arith.constant 23 : index
    %454 = memref.load %arg5[%c0_374, %c23] : memref<2x72xf32, #tpu.memory_space<smem>>
    %455 = vector.broadcast %454 : f32 to vector<16x16xf32>
    %456 = arith.mulf %453, %455 : vector<16x16xf32>
    %457 = arith.addf %447, %456 : vector<16x16xf32>
    %c1_375 = arith.constant 1 : index
    %c23_376 = arith.constant 23 : index
    %458 = memref.load %arg5[%c1_375, %c23_376] : memref<2x72xf32, #tpu.memory_space<smem>>
    %459 = vector.broadcast %458 : f32 to vector<16x16xf32>
    %460 = arith.mulf %453, %459 : vector<16x16xf32>
    %461 = arith.addf %451, %460 : vector<16x16xf32>
    %c2_377 = arith.constant 2 : index
    %c2_378 = arith.constant 2 : index
    %c0_379 = arith.constant 0 : index
    %462 = vector.load %arg9[%c2_377, %c2_378, %c0_379] : memref<8x18x18xf32, #tpu.memory_space<vmem>>, vector<1x16x16xf32>
    %463 = vector.shape_cast %462 : vector<1x16x16xf32> to vector<16x16xf32>
    %c0_380 = arith.constant 0 : index
    %c24 = arith.constant 24 : index
    %464 = memref.load %arg5[%c0_380, %c24] : memref<2x72xf32, #tpu.memory_space<smem>>
    %465 = vector.broadcast %464 : f32 to vector<16x16xf32>
    %466 = arith.mulf %463, %465 : vector<16x16xf32>
    %467 = arith.addf %457, %466 : vector<16x16xf32>
    %c1_381 = arith.constant 1 : index
    %c24_382 = arith.constant 24 : index
    %468 = memref.load %arg5[%c1_381, %c24_382] : memref<2x72xf32, #tpu.memory_space<smem>>
    %469 = vector.broadcast %468 : f32 to vector<16x16xf32>
    %470 = arith.mulf %463, %469 : vector<16x16xf32>
    %471 = arith.addf %461, %470 : vector<16x16xf32>
    %c2_383 = arith.constant 2 : index
    %c2_384 = arith.constant 2 : index
    %c1_385 = arith.constant 1 : index
    %472 = vector.load %arg9[%c2_383, %c2_384, %c1_385] : memref<8x18x18xf32, #tpu.memory_space<vmem>>, vector<1x16x16xf32>
    %473 = vector.shape_cast %472 : vector<1x16x16xf32> to vector<16x16xf32>
    %c0_386 = arith.constant 0 : index
    %c25 = arith.constant 25 : index
    %474 = memref.load %arg5[%c0_386, %c25] : memref<2x72xf32, #tpu.memory_space<smem>>
    %475 = vector.broadcast %474 : f32 to vector<16x16xf32>
    %476 = arith.mulf %473, %475 : vector<16x16xf32>
    %477 = arith.addf %467, %476 : vector<16x16xf32>
    %c1_387 = arith.constant 1 : index
    %c25_388 = arith.constant 25 : index
    %478 = memref.load %arg5[%c1_387, %c25_388] : memref<2x72xf32, #tpu.memory_space<smem>>
    %479 = vector.broadcast %478 : f32 to vector<16x16xf32>
    %480 = arith.mulf %473, %479 : vector<16x16xf32>
    %481 = arith.addf %471, %480 : vector<16x16xf32>
    %c2_389 = arith.constant 2 : index
    %c2_390 = arith.constant 2 : index
    %c2_391 = arith.constant 2 : index
    %482 = vector.load %arg9[%c2_389, %c2_390, %c2_391] : memref<8x18x18xf32, #tpu.memory_space<vmem>>, vector<1x16x16xf32>
    %483 = vector.shape_cast %482 : vector<1x16x16xf32> to vector<16x16xf32>
    %c0_392 = arith.constant 0 : index
    %c26 = arith.constant 26 : index
    %484 = memref.load %arg5[%c0_392, %c26] : memref<2x72xf32, #tpu.memory_space<smem>>
    %485 = vector.broadcast %484 : f32 to vector<16x16xf32>
    %486 = arith.mulf %483, %485 : vector<16x16xf32>
    %487 = arith.addf %477, %486 : vector<16x16xf32>
    %c1_393 = arith.constant 1 : index
    %c26_394 = arith.constant 26 : index
    %488 = memref.load %arg5[%c1_393, %c26_394] : memref<2x72xf32, #tpu.memory_space<smem>>
    %489 = vector.broadcast %488 : f32 to vector<16x16xf32>
    %490 = arith.mulf %483, %489 : vector<16x16xf32>
    %491 = arith.addf %481, %490 : vector<16x16xf32>
    %c3_395 = arith.constant 3 : index
    %c0_396 = arith.constant 0 : index
    %c0_397 = arith.constant 0 : index
    %492 = vector.load %arg9[%c3_395, %c0_396, %c0_397] : memref<8x18x18xf32, #tpu.memory_space<vmem>>, vector<1x16x16xf32>
    %493 = vector.shape_cast %492 : vector<1x16x16xf32> to vector<16x16xf32>
    %c0_398 = arith.constant 0 : index
    %c27 = arith.constant 27 : index
    %494 = memref.load %arg5[%c0_398, %c27] : memref<2x72xf32, #tpu.memory_space<smem>>
    %495 = vector.broadcast %494 : f32 to vector<16x16xf32>
    %496 = arith.mulf %493, %495 : vector<16x16xf32>
    %497 = arith.addf %487, %496 : vector<16x16xf32>
    %c1_399 = arith.constant 1 : index
    %c27_400 = arith.constant 27 : index
    %498 = memref.load %arg5[%c1_399, %c27_400] : memref<2x72xf32, #tpu.memory_space<smem>>
    %499 = vector.broadcast %498 : f32 to vector<16x16xf32>
    %500 = arith.mulf %493, %499 : vector<16x16xf32>
    %501 = arith.addf %491, %500 : vector<16x16xf32>
    %c3_401 = arith.constant 3 : index
    %c0_402 = arith.constant 0 : index
    %c1_403 = arith.constant 1 : index
    %502 = vector.load %arg9[%c3_401, %c0_402, %c1_403] : memref<8x18x18xf32, #tpu.memory_space<vmem>>, vector<1x16x16xf32>
    %503 = vector.shape_cast %502 : vector<1x16x16xf32> to vector<16x16xf32>
    %c0_404 = arith.constant 0 : index
    %c28 = arith.constant 28 : index
    %504 = memref.load %arg5[%c0_404, %c28] : memref<2x72xf32, #tpu.memory_space<smem>>
    %505 = vector.broadcast %504 : f32 to vector<16x16xf32>
    %506 = arith.mulf %503, %505 : vector<16x16xf32>
    %507 = arith.addf %497, %506 : vector<16x16xf32>
    %c1_405 = arith.constant 1 : index
    %c28_406 = arith.constant 28 : index
    %508 = memref.load %arg5[%c1_405, %c28_406] : memref<2x72xf32, #tpu.memory_space<smem>>
    %509 = vector.broadcast %508 : f32 to vector<16x16xf32>
    %510 = arith.mulf %503, %509 : vector<16x16xf32>
    %511 = arith.addf %501, %510 : vector<16x16xf32>
    %c3_407 = arith.constant 3 : index
    %c0_408 = arith.constant 0 : index
    %c2_409 = arith.constant 2 : index
    %512 = vector.load %arg9[%c3_407, %c0_408, %c2_409] : memref<8x18x18xf32, #tpu.memory_space<vmem>>, vector<1x16x16xf32>
    %513 = vector.shape_cast %512 : vector<1x16x16xf32> to vector<16x16xf32>
    %c0_410 = arith.constant 0 : index
    %c29 = arith.constant 29 : index
    %514 = memref.load %arg5[%c0_410, %c29] : memref<2x72xf32, #tpu.memory_space<smem>>
    %515 = vector.broadcast %514 : f32 to vector<16x16xf32>
    %516 = arith.mulf %513, %515 : vector<16x16xf32>
    %517 = arith.addf %507, %516 : vector<16x16xf32>
    %c1_411 = arith.constant 1 : index
    %c29_412 = arith.constant 29 : index
    %518 = memref.load %arg5[%c1_411, %c29_412] : memref<2x72xf32, #tpu.memory_space<smem>>
    %519 = vector.broadcast %518 : f32 to vector<16x16xf32>
    %520 = arith.mulf %513, %519 : vector<16x16xf32>
    %521 = arith.addf %511, %520 : vector<16x16xf32>
    %c3_413 = arith.constant 3 : index
    %c1_414 = arith.constant 1 : index
    %c0_415 = arith.constant 0 : index
    %522 = vector.load %arg9[%c3_413, %c1_414, %c0_415] : memref<8x18x18xf32, #tpu.memory_space<vmem>>, vector<1x16x16xf32>
    %523 = vector.shape_cast %522 : vector<1x16x16xf32> to vector<16x16xf32>
    %c0_416 = arith.constant 0 : index
    %c30 = arith.constant 30 : index
    %524 = memref.load %arg5[%c0_416, %c30] : memref<2x72xf32, #tpu.memory_space<smem>>
    %525 = vector.broadcast %524 : f32 to vector<16x16xf32>
    %526 = arith.mulf %523, %525 : vector<16x16xf32>
    %527 = arith.addf %517, %526 : vector<16x16xf32>
    %c1_417 = arith.constant 1 : index
    %c30_418 = arith.constant 30 : index
    %528 = memref.load %arg5[%c1_417, %c30_418] : memref<2x72xf32, #tpu.memory_space<smem>>
    %529 = vector.broadcast %528 : f32 to vector<16x16xf32>
    %530 = arith.mulf %523, %529 : vector<16x16xf32>
    %531 = arith.addf %521, %530 : vector<16x16xf32>
    %c3_419 = arith.constant 3 : index
    %c1_420 = arith.constant 1 : index
    %c1_421 = arith.constant 1 : index
    %532 = vector.load %arg9[%c3_419, %c1_420, %c1_421] : memref<8x18x18xf32, #tpu.memory_space<vmem>>, vector<1x16x16xf32>
    %533 = vector.shape_cast %532 : vector<1x16x16xf32> to vector<16x16xf32>
    %c0_422 = arith.constant 0 : index
    %c31 = arith.constant 31 : index
    %534 = memref.load %arg5[%c0_422, %c31] : memref<2x72xf32, #tpu.memory_space<smem>>
    %535 = vector.broadcast %534 : f32 to vector<16x16xf32>
    %536 = arith.mulf %533, %535 : vector<16x16xf32>
    %537 = arith.addf %527, %536 : vector<16x16xf32>
    %c1_423 = arith.constant 1 : index
    %c31_424 = arith.constant 31 : index
    %538 = memref.load %arg5[%c1_423, %c31_424] : memref<2x72xf32, #tpu.memory_space<smem>>
    %539 = vector.broadcast %538 : f32 to vector<16x16xf32>
    %540 = arith.mulf %533, %539 : vector<16x16xf32>
    %541 = arith.addf %531, %540 : vector<16x16xf32>
    %c3_425 = arith.constant 3 : index
    %c1_426 = arith.constant 1 : index
    %c2_427 = arith.constant 2 : index
    %542 = vector.load %arg9[%c3_425, %c1_426, %c2_427] : memref<8x18x18xf32, #tpu.memory_space<vmem>>, vector<1x16x16xf32>
    %543 = vector.shape_cast %542 : vector<1x16x16xf32> to vector<16x16xf32>
    %c0_428 = arith.constant 0 : index
    %c32 = arith.constant 32 : index
    %544 = memref.load %arg5[%c0_428, %c32] : memref<2x72xf32, #tpu.memory_space<smem>>
    %545 = vector.broadcast %544 : f32 to vector<16x16xf32>
    %546 = arith.mulf %543, %545 : vector<16x16xf32>
    %547 = arith.addf %537, %546 : vector<16x16xf32>
    %c1_429 = arith.constant 1 : index
    %c32_430 = arith.constant 32 : index
    %548 = memref.load %arg5[%c1_429, %c32_430] : memref<2x72xf32, #tpu.memory_space<smem>>
    %549 = vector.broadcast %548 : f32 to vector<16x16xf32>
    %550 = arith.mulf %543, %549 : vector<16x16xf32>
    %551 = arith.addf %541, %550 : vector<16x16xf32>
    %c3_431 = arith.constant 3 : index
    %c2_432 = arith.constant 2 : index
    %c0_433 = arith.constant 0 : index
    %552 = vector.load %arg9[%c3_431, %c2_432, %c0_433] : memref<8x18x18xf32, #tpu.memory_space<vmem>>, vector<1x16x16xf32>
    %553 = vector.shape_cast %552 : vector<1x16x16xf32> to vector<16x16xf32>
    %c0_434 = arith.constant 0 : index
    %c33 = arith.constant 33 : index
    %554 = memref.load %arg5[%c0_434, %c33] : memref<2x72xf32, #tpu.memory_space<smem>>
    %555 = vector.broadcast %554 : f32 to vector<16x16xf32>
    %556 = arith.mulf %553, %555 : vector<16x16xf32>
    %557 = arith.addf %547, %556 : vector<16x16xf32>
    %c1_435 = arith.constant 1 : index
    %c33_436 = arith.constant 33 : index
    %558 = memref.load %arg5[%c1_435, %c33_436] : memref<2x72xf32, #tpu.memory_space<smem>>
    %559 = vector.broadcast %558 : f32 to vector<16x16xf32>
    %560 = arith.mulf %553, %559 : vector<16x16xf32>
    %561 = arith.addf %551, %560 : vector<16x16xf32>
    %c3_437 = arith.constant 3 : index
    %c2_438 = arith.constant 2 : index
    %c1_439 = arith.constant 1 : index
    %562 = vector.load %arg9[%c3_437, %c2_438, %c1_439] : memref<8x18x18xf32, #tpu.memory_space<vmem>>, vector<1x16x16xf32>
    %563 = vector.shape_cast %562 : vector<1x16x16xf32> to vector<16x16xf32>
    %c0_440 = arith.constant 0 : index
    %c34 = arith.constant 34 : index
    %564 = memref.load %arg5[%c0_440, %c34] : memref<2x72xf32, #tpu.memory_space<smem>>
    %565 = vector.broadcast %564 : f32 to vector<16x16xf32>
    %566 = arith.mulf %563, %565 : vector<16x16xf32>
    %567 = arith.addf %557, %566 : vector<16x16xf32>
    %c1_441 = arith.constant 1 : index
    %c34_442 = arith.constant 34 : index
    %568 = memref.load %arg5[%c1_441, %c34_442] : memref<2x72xf32, #tpu.memory_space<smem>>
    %569 = vector.broadcast %568 : f32 to vector<16x16xf32>
    %570 = arith.mulf %563, %569 : vector<16x16xf32>
    %571 = arith.addf %561, %570 : vector<16x16xf32>
    %c3_443 = arith.constant 3 : index
    %c2_444 = arith.constant 2 : index
    %c2_445 = arith.constant 2 : index
    %572 = vector.load %arg9[%c3_443, %c2_444, %c2_445] : memref<8x18x18xf32, #tpu.memory_space<vmem>>, vector<1x16x16xf32>
    %573 = vector.shape_cast %572 : vector<1x16x16xf32> to vector<16x16xf32>
    %c0_446 = arith.constant 0 : index
    %c35 = arith.constant 35 : index
    %574 = memref.load %arg5[%c0_446, %c35] : memref<2x72xf32, #tpu.memory_space<smem>>
    %575 = vector.broadcast %574 : f32 to vector<16x16xf32>
    %576 = arith.mulf %573, %575 : vector<16x16xf32>
    %577 = arith.addf %567, %576 : vector<16x16xf32>
    %c1_447 = arith.constant 1 : index
    %c35_448 = arith.constant 35 : index
    %578 = memref.load %arg5[%c1_447, %c35_448] : memref<2x72xf32, #tpu.memory_space<smem>>
    %579 = vector.broadcast %578 : f32 to vector<16x16xf32>
    %580 = arith.mulf %573, %579 : vector<16x16xf32>
    %581 = arith.addf %571, %580 : vector<16x16xf32>
    %c4_449 = arith.constant 4 : index
    %c0_450 = arith.constant 0 : index
    %c0_451 = arith.constant 0 : index
    %582 = vector.load %arg9[%c4_449, %c0_450, %c0_451] : memref<8x18x18xf32, #tpu.memory_space<vmem>>, vector<1x16x16xf32>
    %583 = vector.shape_cast %582 : vector<1x16x16xf32> to vector<16x16xf32>
    %c0_452 = arith.constant 0 : index
    %c36 = arith.constant 36 : index
    %584 = memref.load %arg5[%c0_452, %c36] : memref<2x72xf32, #tpu.memory_space<smem>>
    %585 = vector.broadcast %584 : f32 to vector<16x16xf32>
    %586 = arith.mulf %583, %585 : vector<16x16xf32>
    %587 = arith.addf %577, %586 : vector<16x16xf32>
    %c1_453 = arith.constant 1 : index
    %c36_454 = arith.constant 36 : index
    %588 = memref.load %arg5[%c1_453, %c36_454] : memref<2x72xf32, #tpu.memory_space<smem>>
    %589 = vector.broadcast %588 : f32 to vector<16x16xf32>
    %590 = arith.mulf %583, %589 : vector<16x16xf32>
    %591 = arith.addf %581, %590 : vector<16x16xf32>
    %c4_455 = arith.constant 4 : index
    %c0_456 = arith.constant 0 : index
    %c1_457 = arith.constant 1 : index
    %592 = vector.load %arg9[%c4_455, %c0_456, %c1_457] : memref<8x18x18xf32, #tpu.memory_space<vmem>>, vector<1x16x16xf32>
    %593 = vector.shape_cast %592 : vector<1x16x16xf32> to vector<16x16xf32>
    %c0_458 = arith.constant 0 : index
    %c37 = arith.constant 37 : index
    %594 = memref.load %arg5[%c0_458, %c37] : memref<2x72xf32, #tpu.memory_space<smem>>
    %595 = vector.broadcast %594 : f32 to vector<16x16xf32>
    %596 = arith.mulf %593, %595 : vector<16x16xf32>
    %597 = arith.addf %587, %596 : vector<16x16xf32>
    %c1_459 = arith.constant 1 : index
    %c37_460 = arith.constant 37 : index
    %598 = memref.load %arg5[%c1_459, %c37_460] : memref<2x72xf32, #tpu.memory_space<smem>>
    %599 = vector.broadcast %598 : f32 to vector<16x16xf32>
    %600 = arith.mulf %593, %599 : vector<16x16xf32>
    %601 = arith.addf %591, %600 : vector<16x16xf32>
    %c4_461 = arith.constant 4 : index
    %c0_462 = arith.constant 0 : index
    %c2_463 = arith.constant 2 : index
    %602 = vector.load %arg9[%c4_461, %c0_462, %c2_463] : memref<8x18x18xf32, #tpu.memory_space<vmem>>, vector<1x16x16xf32>
    %603 = vector.shape_cast %602 : vector<1x16x16xf32> to vector<16x16xf32>
    %c0_464 = arith.constant 0 : index
    %c38 = arith.constant 38 : index
    %604 = memref.load %arg5[%c0_464, %c38] : memref<2x72xf32, #tpu.memory_space<smem>>
    %605 = vector.broadcast %604 : f32 to vector<16x16xf32>
    %606 = arith.mulf %603, %605 : vector<16x16xf32>
    %607 = arith.addf %597, %606 : vector<16x16xf32>
    %c1_465 = arith.constant 1 : index
    %c38_466 = arith.constant 38 : index
    %608 = memref.load %arg5[%c1_465, %c38_466] : memref<2x72xf32, #tpu.memory_space<smem>>
    %609 = vector.broadcast %608 : f32 to vector<16x16xf32>
    %610 = arith.mulf %603, %609 : vector<16x16xf32>
    %611 = arith.addf %601, %610 : vector<16x16xf32>
    %c4_467 = arith.constant 4 : index
    %c1_468 = arith.constant 1 : index
    %c0_469 = arith.constant 0 : index
    %612 = vector.load %arg9[%c4_467, %c1_468, %c0_469] : memref<8x18x18xf32, #tpu.memory_space<vmem>>, vector<1x16x16xf32>
    %613 = vector.shape_cast %612 : vector<1x16x16xf32> to vector<16x16xf32>
    %c0_470 = arith.constant 0 : index
    %c39 = arith.constant 39 : index
    %614 = memref.load %arg5[%c0_470, %c39] : memref<2x72xf32, #tpu.memory_space<smem>>
    %615 = vector.broadcast %614 : f32 to vector<16x16xf32>
    %616 = arith.mulf %613, %615 : vector<16x16xf32>
    %617 = arith.addf %607, %616 : vector<16x16xf32>
    %c1_471 = arith.constant 1 : index
    %c39_472 = arith.constant 39 : index
    %618 = memref.load %arg5[%c1_471, %c39_472] : memref<2x72xf32, #tpu.memory_space<smem>>
    %619 = vector.broadcast %618 : f32 to vector<16x16xf32>
    %620 = arith.mulf %613, %619 : vector<16x16xf32>
    %621 = arith.addf %611, %620 : vector<16x16xf32>
    %c4_473 = arith.constant 4 : index
    %c1_474 = arith.constant 1 : index
    %c1_475 = arith.constant 1 : index
    %622 = vector.load %arg9[%c4_473, %c1_474, %c1_475] : memref<8x18x18xf32, #tpu.memory_space<vmem>>, vector<1x16x16xf32>
    %623 = vector.shape_cast %622 : vector<1x16x16xf32> to vector<16x16xf32>
    %c0_476 = arith.constant 0 : index
    %c40 = arith.constant 40 : index
    %624 = memref.load %arg5[%c0_476, %c40] : memref<2x72xf32, #tpu.memory_space<smem>>
    %625 = vector.broadcast %624 : f32 to vector<16x16xf32>
    %626 = arith.mulf %623, %625 : vector<16x16xf32>
    %627 = arith.addf %617, %626 : vector<16x16xf32>
    %c1_477 = arith.constant 1 : index
    %c40_478 = arith.constant 40 : index
    %628 = memref.load %arg5[%c1_477, %c40_478] : memref<2x72xf32, #tpu.memory_space<smem>>
    %629 = vector.broadcast %628 : f32 to vector<16x16xf32>
    %630 = arith.mulf %623, %629 : vector<16x16xf32>
    %631 = arith.addf %621, %630 : vector<16x16xf32>
    %c4_479 = arith.constant 4 : index
    %c1_480 = arith.constant 1 : index
    %c2_481 = arith.constant 2 : index
    %632 = vector.load %arg9[%c4_479, %c1_480, %c2_481] : memref<8x18x18xf32, #tpu.memory_space<vmem>>, vector<1x16x16xf32>
    %633 = vector.shape_cast %632 : vector<1x16x16xf32> to vector<16x16xf32>
    %c0_482 = arith.constant 0 : index
    %c41 = arith.constant 41 : index
    %634 = memref.load %arg5[%c0_482, %c41] : memref<2x72xf32, #tpu.memory_space<smem>>
    %635 = vector.broadcast %634 : f32 to vector<16x16xf32>
    %636 = arith.mulf %633, %635 : vector<16x16xf32>
    %637 = arith.addf %627, %636 : vector<16x16xf32>
    %c1_483 = arith.constant 1 : index
    %c41_484 = arith.constant 41 : index
    %638 = memref.load %arg5[%c1_483, %c41_484] : memref<2x72xf32, #tpu.memory_space<smem>>
    %639 = vector.broadcast %638 : f32 to vector<16x16xf32>
    %640 = arith.mulf %633, %639 : vector<16x16xf32>
    %641 = arith.addf %631, %640 : vector<16x16xf32>
    %c4_485 = arith.constant 4 : index
    %c2_486 = arith.constant 2 : index
    %c0_487 = arith.constant 0 : index
    %642 = vector.load %arg9[%c4_485, %c2_486, %c0_487] : memref<8x18x18xf32, #tpu.memory_space<vmem>>, vector<1x16x16xf32>
    %643 = vector.shape_cast %642 : vector<1x16x16xf32> to vector<16x16xf32>
    %c0_488 = arith.constant 0 : index
    %c42 = arith.constant 42 : index
    %644 = memref.load %arg5[%c0_488, %c42] : memref<2x72xf32, #tpu.memory_space<smem>>
    %645 = vector.broadcast %644 : f32 to vector<16x16xf32>
    %646 = arith.mulf %643, %645 : vector<16x16xf32>
    %647 = arith.addf %637, %646 : vector<16x16xf32>
    %c1_489 = arith.constant 1 : index
    %c42_490 = arith.constant 42 : index
    %648 = memref.load %arg5[%c1_489, %c42_490] : memref<2x72xf32, #tpu.memory_space<smem>>
    %649 = vector.broadcast %648 : f32 to vector<16x16xf32>
    %650 = arith.mulf %643, %649 : vector<16x16xf32>
    %651 = arith.addf %641, %650 : vector<16x16xf32>
    %c4_491 = arith.constant 4 : index
    %c2_492 = arith.constant 2 : index
    %c1_493 = arith.constant 1 : index
    %652 = vector.load %arg9[%c4_491, %c2_492, %c1_493] : memref<8x18x18xf32, #tpu.memory_space<vmem>>, vector<1x16x16xf32>
    %653 = vector.shape_cast %652 : vector<1x16x16xf32> to vector<16x16xf32>
    %c0_494 = arith.constant 0 : index
    %c43 = arith.constant 43 : index
    %654 = memref.load %arg5[%c0_494, %c43] : memref<2x72xf32, #tpu.memory_space<smem>>
    %655 = vector.broadcast %654 : f32 to vector<16x16xf32>
    %656 = arith.mulf %653, %655 : vector<16x16xf32>
    %657 = arith.addf %647, %656 : vector<16x16xf32>
    %c1_495 = arith.constant 1 : index
    %c43_496 = arith.constant 43 : index
    %658 = memref.load %arg5[%c1_495, %c43_496] : memref<2x72xf32, #tpu.memory_space<smem>>
    %659 = vector.broadcast %658 : f32 to vector<16x16xf32>
    %660 = arith.mulf %653, %659 : vector<16x16xf32>
    %661 = arith.addf %651, %660 : vector<16x16xf32>
    %c4_497 = arith.constant 4 : index
    %c2_498 = arith.constant 2 : index
    %c2_499 = arith.constant 2 : index
    %662 = vector.load %arg9[%c4_497, %c2_498, %c2_499] : memref<8x18x18xf32, #tpu.memory_space<vmem>>, vector<1x16x16xf32>
    %663 = vector.shape_cast %662 : vector<1x16x16xf32> to vector<16x16xf32>
    %c0_500 = arith.constant 0 : index
    %c44 = arith.constant 44 : index
    %664 = memref.load %arg5[%c0_500, %c44] : memref<2x72xf32, #tpu.memory_space<smem>>
    %665 = vector.broadcast %664 : f32 to vector<16x16xf32>
    %666 = arith.mulf %663, %665 : vector<16x16xf32>
    %667 = arith.addf %657, %666 : vector<16x16xf32>
    %c1_501 = arith.constant 1 : index
    %c44_502 = arith.constant 44 : index
    %668 = memref.load %arg5[%c1_501, %c44_502] : memref<2x72xf32, #tpu.memory_space<smem>>
    %669 = vector.broadcast %668 : f32 to vector<16x16xf32>
    %670 = arith.mulf %663, %669 : vector<16x16xf32>
    %671 = arith.addf %661, %670 : vector<16x16xf32>
    %c5_503 = arith.constant 5 : index
    %c0_504 = arith.constant 0 : index
    %c0_505 = arith.constant 0 : index
    %672 = vector.load %arg9[%c5_503, %c0_504, %c0_505] : memref<8x18x18xf32, #tpu.memory_space<vmem>>, vector<1x16x16xf32>
    %673 = vector.shape_cast %672 : vector<1x16x16xf32> to vector<16x16xf32>
    %c0_506 = arith.constant 0 : index
    %c45 = arith.constant 45 : index
    %674 = memref.load %arg5[%c0_506, %c45] : memref<2x72xf32, #tpu.memory_space<smem>>
    %675 = vector.broadcast %674 : f32 to vector<16x16xf32>
    %676 = arith.mulf %673, %675 : vector<16x16xf32>
    %677 = arith.addf %667, %676 : vector<16x16xf32>
    %c1_507 = arith.constant 1 : index
    %c45_508 = arith.constant 45 : index
    %678 = memref.load %arg5[%c1_507, %c45_508] : memref<2x72xf32, #tpu.memory_space<smem>>
    %679 = vector.broadcast %678 : f32 to vector<16x16xf32>
    %680 = arith.mulf %673, %679 : vector<16x16xf32>
    %681 = arith.addf %671, %680 : vector<16x16xf32>
    %c5_509 = arith.constant 5 : index
    %c0_510 = arith.constant 0 : index
    %c1_511 = arith.constant 1 : index
    %682 = vector.load %arg9[%c5_509, %c0_510, %c1_511] : memref<8x18x18xf32, #tpu.memory_space<vmem>>, vector<1x16x16xf32>
    %683 = vector.shape_cast %682 : vector<1x16x16xf32> to vector<16x16xf32>
    %c0_512 = arith.constant 0 : index
    %c46 = arith.constant 46 : index
    %684 = memref.load %arg5[%c0_512, %c46] : memref<2x72xf32, #tpu.memory_space<smem>>
    %685 = vector.broadcast %684 : f32 to vector<16x16xf32>
    %686 = arith.mulf %683, %685 : vector<16x16xf32>
    %687 = arith.addf %677, %686 : vector<16x16xf32>
    %c1_513 = arith.constant 1 : index
    %c46_514 = arith.constant 46 : index
    %688 = memref.load %arg5[%c1_513, %c46_514] : memref<2x72xf32, #tpu.memory_space<smem>>
    %689 = vector.broadcast %688 : f32 to vector<16x16xf32>
    %690 = arith.mulf %683, %689 : vector<16x16xf32>
    %691 = arith.addf %681, %690 : vector<16x16xf32>
    %c5_515 = arith.constant 5 : index
    %c0_516 = arith.constant 0 : index
    %c2_517 = arith.constant 2 : index
    %692 = vector.load %arg9[%c5_515, %c0_516, %c2_517] : memref<8x18x18xf32, #tpu.memory_space<vmem>>, vector<1x16x16xf32>
    %693 = vector.shape_cast %692 : vector<1x16x16xf32> to vector<16x16xf32>
    %c0_518 = arith.constant 0 : index
    %c47 = arith.constant 47 : index
    %694 = memref.load %arg5[%c0_518, %c47] : memref<2x72xf32, #tpu.memory_space<smem>>
    %695 = vector.broadcast %694 : f32 to vector<16x16xf32>
    %696 = arith.mulf %693, %695 : vector<16x16xf32>
    %697 = arith.addf %687, %696 : vector<16x16xf32>
    %c1_519 = arith.constant 1 : index
    %c47_520 = arith.constant 47 : index
    %698 = memref.load %arg5[%c1_519, %c47_520] : memref<2x72xf32, #tpu.memory_space<smem>>
    %699 = vector.broadcast %698 : f32 to vector<16x16xf32>
    %700 = arith.mulf %693, %699 : vector<16x16xf32>
    %701 = arith.addf %691, %700 : vector<16x16xf32>
    %c5_521 = arith.constant 5 : index
    %c1_522 = arith.constant 1 : index
    %c0_523 = arith.constant 0 : index
    %702 = vector.load %arg9[%c5_521, %c1_522, %c0_523] : memref<8x18x18xf32, #tpu.memory_space<vmem>>, vector<1x16x16xf32>
    %703 = vector.shape_cast %702 : vector<1x16x16xf32> to vector<16x16xf32>
    %c0_524 = arith.constant 0 : index
    %c48 = arith.constant 48 : index
    %704 = memref.load %arg5[%c0_524, %c48] : memref<2x72xf32, #tpu.memory_space<smem>>
    %705 = vector.broadcast %704 : f32 to vector<16x16xf32>
    %706 = arith.mulf %703, %705 : vector<16x16xf32>
    %707 = arith.addf %697, %706 : vector<16x16xf32>
    %c1_525 = arith.constant 1 : index
    %c48_526 = arith.constant 48 : index
    %708 = memref.load %arg5[%c1_525, %c48_526] : memref<2x72xf32, #tpu.memory_space<smem>>
    %709 = vector.broadcast %708 : f32 to vector<16x16xf32>
    %710 = arith.mulf %703, %709 : vector<16x16xf32>
    %711 = arith.addf %701, %710 : vector<16x16xf32>
    %c5_527 = arith.constant 5 : index
    %c1_528 = arith.constant 1 : index
    %c1_529 = arith.constant 1 : index
    %712 = vector.load %arg9[%c5_527, %c1_528, %c1_529] : memref<8x18x18xf32, #tpu.memory_space<vmem>>, vector<1x16x16xf32>
    %713 = vector.shape_cast %712 : vector<1x16x16xf32> to vector<16x16xf32>
    %c0_530 = arith.constant 0 : index
    %c49 = arith.constant 49 : index
    %714 = memref.load %arg5[%c0_530, %c49] : memref<2x72xf32, #tpu.memory_space<smem>>
    %715 = vector.broadcast %714 : f32 to vector<16x16xf32>
    %716 = arith.mulf %713, %715 : vector<16x16xf32>
    %717 = arith.addf %707, %716 : vector<16x16xf32>
    %c1_531 = arith.constant 1 : index
    %c49_532 = arith.constant 49 : index
    %718 = memref.load %arg5[%c1_531, %c49_532] : memref<2x72xf32, #tpu.memory_space<smem>>
    %719 = vector.broadcast %718 : f32 to vector<16x16xf32>
    %720 = arith.mulf %713, %719 : vector<16x16xf32>
    %721 = arith.addf %711, %720 : vector<16x16xf32>
    %c5_533 = arith.constant 5 : index
    %c1_534 = arith.constant 1 : index
    %c2_535 = arith.constant 2 : index
    %722 = vector.load %arg9[%c5_533, %c1_534, %c2_535] : memref<8x18x18xf32, #tpu.memory_space<vmem>>, vector<1x16x16xf32>
    %723 = vector.shape_cast %722 : vector<1x16x16xf32> to vector<16x16xf32>
    %c0_536 = arith.constant 0 : index
    %c50 = arith.constant 50 : index
    %724 = memref.load %arg5[%c0_536, %c50] : memref<2x72xf32, #tpu.memory_space<smem>>
    %725 = vector.broadcast %724 : f32 to vector<16x16xf32>
    %726 = arith.mulf %723, %725 : vector<16x16xf32>
    %727 = arith.addf %717, %726 : vector<16x16xf32>
    %c1_537 = arith.constant 1 : index
    %c50_538 = arith.constant 50 : index
    %728 = memref.load %arg5[%c1_537, %c50_538] : memref<2x72xf32, #tpu.memory_space<smem>>
    %729 = vector.broadcast %728 : f32 to vector<16x16xf32>
    %730 = arith.mulf %723, %729 : vector<16x16xf32>
    %731 = arith.addf %721, %730 : vector<16x16xf32>
    %c5_539 = arith.constant 5 : index
    %c2_540 = arith.constant 2 : index
    %c0_541 = arith.constant 0 : index
    %732 = vector.load %arg9[%c5_539, %c2_540, %c0_541] : memref<8x18x18xf32, #tpu.memory_space<vmem>>, vector<1x16x16xf32>
    %733 = vector.shape_cast %732 : vector<1x16x16xf32> to vector<16x16xf32>
    %c0_542 = arith.constant 0 : index
    %c51 = arith.constant 51 : index
    %734 = memref.load %arg5[%c0_542, %c51] : memref<2x72xf32, #tpu.memory_space<smem>>
    %735 = vector.broadcast %734 : f32 to vector<16x16xf32>
    %736 = arith.mulf %733, %735 : vector<16x16xf32>
    %737 = arith.addf %727, %736 : vector<16x16xf32>
    %c1_543 = arith.constant 1 : index
    %c51_544 = arith.constant 51 : index
    %738 = memref.load %arg5[%c1_543, %c51_544] : memref<2x72xf32, #tpu.memory_space<smem>>
    %739 = vector.broadcast %738 : f32 to vector<16x16xf32>
    %740 = arith.mulf %733, %739 : vector<16x16xf32>
    %741 = arith.addf %731, %740 : vector<16x16xf32>
    %c5_545 = arith.constant 5 : index
    %c2_546 = arith.constant 2 : index
    %c1_547 = arith.constant 1 : index
    %742 = vector.load %arg9[%c5_545, %c2_546, %c1_547] : memref<8x18x18xf32, #tpu.memory_space<vmem>>, vector<1x16x16xf32>
    %743 = vector.shape_cast %742 : vector<1x16x16xf32> to vector<16x16xf32>
    %c0_548 = arith.constant 0 : index
    %c52 = arith.constant 52 : index
    %744 = memref.load %arg5[%c0_548, %c52] : memref<2x72xf32, #tpu.memory_space<smem>>
    %745 = vector.broadcast %744 : f32 to vector<16x16xf32>
    %746 = arith.mulf %743, %745 : vector<16x16xf32>
    %747 = arith.addf %737, %746 : vector<16x16xf32>
    %c1_549 = arith.constant 1 : index
    %c52_550 = arith.constant 52 : index
    %748 = memref.load %arg5[%c1_549, %c52_550] : memref<2x72xf32, #tpu.memory_space<smem>>
    %749 = vector.broadcast %748 : f32 to vector<16x16xf32>
    %750 = arith.mulf %743, %749 : vector<16x16xf32>
    %751 = arith.addf %741, %750 : vector<16x16xf32>
    %c5_551 = arith.constant 5 : index
    %c2_552 = arith.constant 2 : index
    %c2_553 = arith.constant 2 : index
    %752 = vector.load %arg9[%c5_551, %c2_552, %c2_553] : memref<8x18x18xf32, #tpu.memory_space<vmem>>, vector<1x16x16xf32>
    %753 = vector.shape_cast %752 : vector<1x16x16xf32> to vector<16x16xf32>
    %c0_554 = arith.constant 0 : index
    %c53 = arith.constant 53 : index
    %754 = memref.load %arg5[%c0_554, %c53] : memref<2x72xf32, #tpu.memory_space<smem>>
    %755 = vector.broadcast %754 : f32 to vector<16x16xf32>
    %756 = arith.mulf %753, %755 : vector<16x16xf32>
    %757 = arith.addf %747, %756 : vector<16x16xf32>
    %c1_555 = arith.constant 1 : index
    %c53_556 = arith.constant 53 : index
    %758 = memref.load %arg5[%c1_555, %c53_556] : memref<2x72xf32, #tpu.memory_space<smem>>
    %759 = vector.broadcast %758 : f32 to vector<16x16xf32>
    %760 = arith.mulf %753, %759 : vector<16x16xf32>
    %761 = arith.addf %751, %760 : vector<16x16xf32>
    %c6_557 = arith.constant 6 : index
    %c0_558 = arith.constant 0 : index
    %c0_559 = arith.constant 0 : index
    %762 = vector.load %arg9[%c6_557, %c0_558, %c0_559] : memref<8x18x18xf32, #tpu.memory_space<vmem>>, vector<1x16x16xf32>
    %763 = vector.shape_cast %762 : vector<1x16x16xf32> to vector<16x16xf32>
    %c0_560 = arith.constant 0 : index
    %c54 = arith.constant 54 : index
    %764 = memref.load %arg5[%c0_560, %c54] : memref<2x72xf32, #tpu.memory_space<smem>>
    %765 = vector.broadcast %764 : f32 to vector<16x16xf32>
    %766 = arith.mulf %763, %765 : vector<16x16xf32>
    %767 = arith.addf %757, %766 : vector<16x16xf32>
    %c1_561 = arith.constant 1 : index
    %c54_562 = arith.constant 54 : index
    %768 = memref.load %arg5[%c1_561, %c54_562] : memref<2x72xf32, #tpu.memory_space<smem>>
    %769 = vector.broadcast %768 : f32 to vector<16x16xf32>
    %770 = arith.mulf %763, %769 : vector<16x16xf32>
    %771 = arith.addf %761, %770 : vector<16x16xf32>
    %c6_563 = arith.constant 6 : index
    %c0_564 = arith.constant 0 : index
    %c1_565 = arith.constant 1 : index
    %772 = vector.load %arg9[%c6_563, %c0_564, %c1_565] : memref<8x18x18xf32, #tpu.memory_space<vmem>>, vector<1x16x16xf32>
    %773 = vector.shape_cast %772 : vector<1x16x16xf32> to vector<16x16xf32>
    %c0_566 = arith.constant 0 : index
    %c55 = arith.constant 55 : index
    %774 = memref.load %arg5[%c0_566, %c55] : memref<2x72xf32, #tpu.memory_space<smem>>
    %775 = vector.broadcast %774 : f32 to vector<16x16xf32>
    %776 = arith.mulf %773, %775 : vector<16x16xf32>
    %777 = arith.addf %767, %776 : vector<16x16xf32>
    %c1_567 = arith.constant 1 : index
    %c55_568 = arith.constant 55 : index
    %778 = memref.load %arg5[%c1_567, %c55_568] : memref<2x72xf32, #tpu.memory_space<smem>>
    %779 = vector.broadcast %778 : f32 to vector<16x16xf32>
    %780 = arith.mulf %773, %779 : vector<16x16xf32>
    %781 = arith.addf %771, %780 : vector<16x16xf32>
    %c6_569 = arith.constant 6 : index
    %c0_570 = arith.constant 0 : index
    %c2_571 = arith.constant 2 : index
    %782 = vector.load %arg9[%c6_569, %c0_570, %c2_571] : memref<8x18x18xf32, #tpu.memory_space<vmem>>, vector<1x16x16xf32>
    %783 = vector.shape_cast %782 : vector<1x16x16xf32> to vector<16x16xf32>
    %c0_572 = arith.constant 0 : index
    %c56 = arith.constant 56 : index
    %784 = memref.load %arg5[%c0_572, %c56] : memref<2x72xf32, #tpu.memory_space<smem>>
    %785 = vector.broadcast %784 : f32 to vector<16x16xf32>
    %786 = arith.mulf %783, %785 : vector<16x16xf32>
    %787 = arith.addf %777, %786 : vector<16x16xf32>
    %c1_573 = arith.constant 1 : index
    %c56_574 = arith.constant 56 : index
    %788 = memref.load %arg5[%c1_573, %c56_574] : memref<2x72xf32, #tpu.memory_space<smem>>
    %789 = vector.broadcast %788 : f32 to vector<16x16xf32>
    %790 = arith.mulf %783, %789 : vector<16x16xf32>
    %791 = arith.addf %781, %790 : vector<16x16xf32>
    %c6_575 = arith.constant 6 : index
    %c1_576 = arith.constant 1 : index
    %c0_577 = arith.constant 0 : index
    %792 = vector.load %arg9[%c6_575, %c1_576, %c0_577] : memref<8x18x18xf32, #tpu.memory_space<vmem>>, vector<1x16x16xf32>
    %793 = vector.shape_cast %792 : vector<1x16x16xf32> to vector<16x16xf32>
    %c0_578 = arith.constant 0 : index
    %c57 = arith.constant 57 : index
    %794 = memref.load %arg5[%c0_578, %c57] : memref<2x72xf32, #tpu.memory_space<smem>>
    %795 = vector.broadcast %794 : f32 to vector<16x16xf32>
    %796 = arith.mulf %793, %795 : vector<16x16xf32>
    %797 = arith.addf %787, %796 : vector<16x16xf32>
    %c1_579 = arith.constant 1 : index
    %c57_580 = arith.constant 57 : index
    %798 = memref.load %arg5[%c1_579, %c57_580] : memref<2x72xf32, #tpu.memory_space<smem>>
    %799 = vector.broadcast %798 : f32 to vector<16x16xf32>
    %800 = arith.mulf %793, %799 : vector<16x16xf32>
    %801 = arith.addf %791, %800 : vector<16x16xf32>
    %c6_581 = arith.constant 6 : index
    %c1_582 = arith.constant 1 : index
    %c1_583 = arith.constant 1 : index
    %802 = vector.load %arg9[%c6_581, %c1_582, %c1_583] : memref<8x18x18xf32, #tpu.memory_space<vmem>>, vector<1x16x16xf32>
    %803 = vector.shape_cast %802 : vector<1x16x16xf32> to vector<16x16xf32>
    %c0_584 = arith.constant 0 : index
    %c58 = arith.constant 58 : index
    %804 = memref.load %arg5[%c0_584, %c58] : memref<2x72xf32, #tpu.memory_space<smem>>
    %805 = vector.broadcast %804 : f32 to vector<16x16xf32>
    %806 = arith.mulf %803, %805 : vector<16x16xf32>
    %807 = arith.addf %797, %806 : vector<16x16xf32>
    %c1_585 = arith.constant 1 : index
    %c58_586 = arith.constant 58 : index
    %808 = memref.load %arg5[%c1_585, %c58_586] : memref<2x72xf32, #tpu.memory_space<smem>>
    %809 = vector.broadcast %808 : f32 to vector<16x16xf32>
    %810 = arith.mulf %803, %809 : vector<16x16xf32>
    %811 = arith.addf %801, %810 : vector<16x16xf32>
    %c6_587 = arith.constant 6 : index
    %c1_588 = arith.constant 1 : index
    %c2_589 = arith.constant 2 : index
    %812 = vector.load %arg9[%c6_587, %c1_588, %c2_589] : memref<8x18x18xf32, #tpu.memory_space<vmem>>, vector<1x16x16xf32>
    %813 = vector.shape_cast %812 : vector<1x16x16xf32> to vector<16x16xf32>
    %c0_590 = arith.constant 0 : index
    %c59 = arith.constant 59 : index
    %814 = memref.load %arg5[%c0_590, %c59] : memref<2x72xf32, #tpu.memory_space<smem>>
    %815 = vector.broadcast %814 : f32 to vector<16x16xf32>
    %816 = arith.mulf %813, %815 : vector<16x16xf32>
    %817 = arith.addf %807, %816 : vector<16x16xf32>
    %c1_591 = arith.constant 1 : index
    %c59_592 = arith.constant 59 : index
    %818 = memref.load %arg5[%c1_591, %c59_592] : memref<2x72xf32, #tpu.memory_space<smem>>
    %819 = vector.broadcast %818 : f32 to vector<16x16xf32>
    %820 = arith.mulf %813, %819 : vector<16x16xf32>
    %821 = arith.addf %811, %820 : vector<16x16xf32>
    %c6_593 = arith.constant 6 : index
    %c2_594 = arith.constant 2 : index
    %c0_595 = arith.constant 0 : index
    %822 = vector.load %arg9[%c6_593, %c2_594, %c0_595] : memref<8x18x18xf32, #tpu.memory_space<vmem>>, vector<1x16x16xf32>
    %823 = vector.shape_cast %822 : vector<1x16x16xf32> to vector<16x16xf32>
    %c0_596 = arith.constant 0 : index
    %c60 = arith.constant 60 : index
    %824 = memref.load %arg5[%c0_596, %c60] : memref<2x72xf32, #tpu.memory_space<smem>>
    %825 = vector.broadcast %824 : f32 to vector<16x16xf32>
    %826 = arith.mulf %823, %825 : vector<16x16xf32>
    %827 = arith.addf %817, %826 : vector<16x16xf32>
    %c1_597 = arith.constant 1 : index
    %c60_598 = arith.constant 60 : index
    %828 = memref.load %arg5[%c1_597, %c60_598] : memref<2x72xf32, #tpu.memory_space<smem>>
    %829 = vector.broadcast %828 : f32 to vector<16x16xf32>
    %830 = arith.mulf %823, %829 : vector<16x16xf32>
    %831 = arith.addf %821, %830 : vector<16x16xf32>
    %c6_599 = arith.constant 6 : index
    %c2_600 = arith.constant 2 : index
    %c1_601 = arith.constant 1 : index
    %832 = vector.load %arg9[%c6_599, %c2_600, %c1_601] : memref<8x18x18xf32, #tpu.memory_space<vmem>>, vector<1x16x16xf32>
    %833 = vector.shape_cast %832 : vector<1x16x16xf32> to vector<16x16xf32>
    %c0_602 = arith.constant 0 : index
    %c61 = arith.constant 61 : index
    %834 = memref.load %arg5[%c0_602, %c61] : memref<2x72xf32, #tpu.memory_space<smem>>
    %835 = vector.broadcast %834 : f32 to vector<16x16xf32>
    %836 = arith.mulf %833, %835 : vector<16x16xf32>
    %837 = arith.addf %827, %836 : vector<16x16xf32>
    %c1_603 = arith.constant 1 : index
    %c61_604 = arith.constant 61 : index
    %838 = memref.load %arg5[%c1_603, %c61_604] : memref<2x72xf32, #tpu.memory_space<smem>>
    %839 = vector.broadcast %838 : f32 to vector<16x16xf32>
    %840 = arith.mulf %833, %839 : vector<16x16xf32>
    %841 = arith.addf %831, %840 : vector<16x16xf32>
    %c6_605 = arith.constant 6 : index
    %c2_606 = arith.constant 2 : index
    %c2_607 = arith.constant 2 : index
    %842 = vector.load %arg9[%c6_605, %c2_606, %c2_607] : memref<8x18x18xf32, #tpu.memory_space<vmem>>, vector<1x16x16xf32>
    %843 = vector.shape_cast %842 : vector<1x16x16xf32> to vector<16x16xf32>
    %c0_608 = arith.constant 0 : index
    %c62 = arith.constant 62 : index
    %844 = memref.load %arg5[%c0_608, %c62] : memref<2x72xf32, #tpu.memory_space<smem>>
    %845 = vector.broadcast %844 : f32 to vector<16x16xf32>
    %846 = arith.mulf %843, %845 : vector<16x16xf32>
    %847 = arith.addf %837, %846 : vector<16x16xf32>
    %c1_609 = arith.constant 1 : index
    %c62_610 = arith.constant 62 : index
    %848 = memref.load %arg5[%c1_609, %c62_610] : memref<2x72xf32, #tpu.memory_space<smem>>
    %849 = vector.broadcast %848 : f32 to vector<16x16xf32>
    %850 = arith.mulf %843, %849 : vector<16x16xf32>
    %851 = arith.addf %841, %850 : vector<16x16xf32>
    %c7_611 = arith.constant 7 : index
    %c0_612 = arith.constant 0 : index
    %c0_613 = arith.constant 0 : index
    %852 = vector.load %arg9[%c7_611, %c0_612, %c0_613] : memref<8x18x18xf32, #tpu.memory_space<vmem>>, vector<1x16x16xf32>
    %853 = vector.shape_cast %852 : vector<1x16x16xf32> to vector<16x16xf32>
    %c0_614 = arith.constant 0 : index
    %c63 = arith.constant 63 : index
    %854 = memref.load %arg5[%c0_614, %c63] : memref<2x72xf32, #tpu.memory_space<smem>>
    %855 = vector.broadcast %854 : f32 to vector<16x16xf32>
    %856 = arith.mulf %853, %855 : vector<16x16xf32>
    %857 = arith.addf %847, %856 : vector<16x16xf32>
    %c1_615 = arith.constant 1 : index
    %c63_616 = arith.constant 63 : index
    %858 = memref.load %arg5[%c1_615, %c63_616] : memref<2x72xf32, #tpu.memory_space<smem>>
    %859 = vector.broadcast %858 : f32 to vector<16x16xf32>
    %860 = arith.mulf %853, %859 : vector<16x16xf32>
    %861 = arith.addf %851, %860 : vector<16x16xf32>
    %c7_617 = arith.constant 7 : index
    %c0_618 = arith.constant 0 : index
    %c1_619 = arith.constant 1 : index
    %862 = vector.load %arg9[%c7_617, %c0_618, %c1_619] : memref<8x18x18xf32, #tpu.memory_space<vmem>>, vector<1x16x16xf32>
    %863 = vector.shape_cast %862 : vector<1x16x16xf32> to vector<16x16xf32>
    %c0_620 = arith.constant 0 : index
    %c64 = arith.constant 64 : index
    %864 = memref.load %arg5[%c0_620, %c64] : memref<2x72xf32, #tpu.memory_space<smem>>
    %865 = vector.broadcast %864 : f32 to vector<16x16xf32>
    %866 = arith.mulf %863, %865 : vector<16x16xf32>
    %867 = arith.addf %857, %866 : vector<16x16xf32>
    %c1_621 = arith.constant 1 : index
    %c64_622 = arith.constant 64 : index
    %868 = memref.load %arg5[%c1_621, %c64_622] : memref<2x72xf32, #tpu.memory_space<smem>>
    %869 = vector.broadcast %868 : f32 to vector<16x16xf32>
    %870 = arith.mulf %863, %869 : vector<16x16xf32>
    %871 = arith.addf %861, %870 : vector<16x16xf32>
    %c7_623 = arith.constant 7 : index
    %c0_624 = arith.constant 0 : index
    %c2_625 = arith.constant 2 : index
    %872 = vector.load %arg9[%c7_623, %c0_624, %c2_625] : memref<8x18x18xf32, #tpu.memory_space<vmem>>, vector<1x16x16xf32>
    %873 = vector.shape_cast %872 : vector<1x16x16xf32> to vector<16x16xf32>
    %c0_626 = arith.constant 0 : index
    %c65 = arith.constant 65 : index
    %874 = memref.load %arg5[%c0_626, %c65] : memref<2x72xf32, #tpu.memory_space<smem>>
    %875 = vector.broadcast %874 : f32 to vector<16x16xf32>
    %876 = arith.mulf %873, %875 : vector<16x16xf32>
    %877 = arith.addf %867, %876 : vector<16x16xf32>
    %c1_627 = arith.constant 1 : index
    %c65_628 = arith.constant 65 : index
    %878 = memref.load %arg5[%c1_627, %c65_628] : memref<2x72xf32, #tpu.memory_space<smem>>
    %879 = vector.broadcast %878 : f32 to vector<16x16xf32>
    %880 = arith.mulf %873, %879 : vector<16x16xf32>
    %881 = arith.addf %871, %880 : vector<16x16xf32>
    %c7_629 = arith.constant 7 : index
    %c1_630 = arith.constant 1 : index
    %c0_631 = arith.constant 0 : index
    %882 = vector.load %arg9[%c7_629, %c1_630, %c0_631] : memref<8x18x18xf32, #tpu.memory_space<vmem>>, vector<1x16x16xf32>
    %883 = vector.shape_cast %882 : vector<1x16x16xf32> to vector<16x16xf32>
    %c0_632 = arith.constant 0 : index
    %c66 = arith.constant 66 : index
    %884 = memref.load %arg5[%c0_632, %c66] : memref<2x72xf32, #tpu.memory_space<smem>>
    %885 = vector.broadcast %884 : f32 to vector<16x16xf32>
    %886 = arith.mulf %883, %885 : vector<16x16xf32>
    %887 = arith.addf %877, %886 : vector<16x16xf32>
    %c1_633 = arith.constant 1 : index
    %c66_634 = arith.constant 66 : index
    %888 = memref.load %arg5[%c1_633, %c66_634] : memref<2x72xf32, #tpu.memory_space<smem>>
    %889 = vector.broadcast %888 : f32 to vector<16x16xf32>
    %890 = arith.mulf %883, %889 : vector<16x16xf32>
    %891 = arith.addf %881, %890 : vector<16x16xf32>
    %c7_635 = arith.constant 7 : index
    %c1_636 = arith.constant 1 : index
    %c1_637 = arith.constant 1 : index
    %892 = vector.load %arg9[%c7_635, %c1_636, %c1_637] : memref<8x18x18xf32, #tpu.memory_space<vmem>>, vector<1x16x16xf32>
    %893 = vector.shape_cast %892 : vector<1x16x16xf32> to vector<16x16xf32>
    %c0_638 = arith.constant 0 : index
    %c67 = arith.constant 67 : index
    %894 = memref.load %arg5[%c0_638, %c67] : memref<2x72xf32, #tpu.memory_space<smem>>
    %895 = vector.broadcast %894 : f32 to vector<16x16xf32>
    %896 = arith.mulf %893, %895 : vector<16x16xf32>
    %897 = arith.addf %887, %896 : vector<16x16xf32>
    %c1_639 = arith.constant 1 : index
    %c67_640 = arith.constant 67 : index
    %898 = memref.load %arg5[%c1_639, %c67_640] : memref<2x72xf32, #tpu.memory_space<smem>>
    %899 = vector.broadcast %898 : f32 to vector<16x16xf32>
    %900 = arith.mulf %893, %899 : vector<16x16xf32>
    %901 = arith.addf %891, %900 : vector<16x16xf32>
    %c7_641 = arith.constant 7 : index
    %c1_642 = arith.constant 1 : index
    %c2_643 = arith.constant 2 : index
    %902 = vector.load %arg9[%c7_641, %c1_642, %c2_643] : memref<8x18x18xf32, #tpu.memory_space<vmem>>, vector<1x16x16xf32>
    %903 = vector.shape_cast %902 : vector<1x16x16xf32> to vector<16x16xf32>
    %c0_644 = arith.constant 0 : index
    %c68 = arith.constant 68 : index
    %904 = memref.load %arg5[%c0_644, %c68] : memref<2x72xf32, #tpu.memory_space<smem>>
    %905 = vector.broadcast %904 : f32 to vector<16x16xf32>
    %906 = arith.mulf %903, %905 : vector<16x16xf32>
    %907 = arith.addf %897, %906 : vector<16x16xf32>
    %c1_645 = arith.constant 1 : index
    %c68_646 = arith.constant 68 : index
    %908 = memref.load %arg5[%c1_645, %c68_646] : memref<2x72xf32, #tpu.memory_space<smem>>
    %909 = vector.broadcast %908 : f32 to vector<16x16xf32>
    %910 = arith.mulf %903, %909 : vector<16x16xf32>
    %911 = arith.addf %901, %910 : vector<16x16xf32>
    %c7_647 = arith.constant 7 : index
    %c2_648 = arith.constant 2 : index
    %c0_649 = arith.constant 0 : index
    %912 = vector.load %arg9[%c7_647, %c2_648, %c0_649] : memref<8x18x18xf32, #tpu.memory_space<vmem>>, vector<1x16x16xf32>
    %913 = vector.shape_cast %912 : vector<1x16x16xf32> to vector<16x16xf32>
    %c0_650 = arith.constant 0 : index
    %c69 = arith.constant 69 : index
    %914 = memref.load %arg5[%c0_650, %c69] : memref<2x72xf32, #tpu.memory_space<smem>>
    %915 = vector.broadcast %914 : f32 to vector<16x16xf32>
    %916 = arith.mulf %913, %915 : vector<16x16xf32>
    %917 = arith.addf %907, %916 : vector<16x16xf32>
    %c1_651 = arith.constant 1 : index
    %c69_652 = arith.constant 69 : index
    %918 = memref.load %arg5[%c1_651, %c69_652] : memref<2x72xf32, #tpu.memory_space<smem>>
    %919 = vector.broadcast %918 : f32 to vector<16x16xf32>
    %920 = arith.mulf %913, %919 : vector<16x16xf32>
    %921 = arith.addf %911, %920 : vector<16x16xf32>
    %c7_653 = arith.constant 7 : index
    %c2_654 = arith.constant 2 : index
    %c1_655 = arith.constant 1 : index
    %922 = vector.load %arg9[%c7_653, %c2_654, %c1_655] : memref<8x18x18xf32, #tpu.memory_space<vmem>>, vector<1x16x16xf32>
    %923 = vector.shape_cast %922 : vector<1x16x16xf32> to vector<16x16xf32>
    %c0_656 = arith.constant 0 : index
    %c70 = arith.constant 70 : index
    %924 = memref.load %arg5[%c0_656, %c70] : memref<2x72xf32, #tpu.memory_space<smem>>
    %925 = vector.broadcast %924 : f32 to vector<16x16xf32>
    %926 = arith.mulf %923, %925 : vector<16x16xf32>
    %927 = arith.addf %917, %926 : vector<16x16xf32>
    %c1_657 = arith.constant 1 : index
    %c70_658 = arith.constant 70 : index
    %928 = memref.load %arg5[%c1_657, %c70_658] : memref<2x72xf32, #tpu.memory_space<smem>>
    %929 = vector.broadcast %928 : f32 to vector<16x16xf32>
    %930 = arith.mulf %923, %929 : vector<16x16xf32>
    %931 = arith.addf %921, %930 : vector<16x16xf32>
    %c7_659 = arith.constant 7 : index
    %c2_660 = arith.constant 2 : index
    %c2_661 = arith.constant 2 : index
    %932 = vector.load %arg9[%c7_659, %c2_660, %c2_661] : memref<8x18x18xf32, #tpu.memory_space<vmem>>, vector<1x16x16xf32>
    %933 = vector.shape_cast %932 : vector<1x16x16xf32> to vector<16x16xf32>
    %c0_662 = arith.constant 0 : index
    %c71 = arith.constant 71 : index
    %934 = memref.load %arg5[%c0_662, %c71] : memref<2x72xf32, #tpu.memory_space<smem>>
    %935 = vector.broadcast %934 : f32 to vector<16x16xf32>
    %936 = arith.mulf %933, %935 : vector<16x16xf32>
    %937 = arith.addf %927, %936 : vector<16x16xf32>
    %c1_663 = arith.constant 1 : index
    %c71_664 = arith.constant 71 : index
    %938 = memref.load %arg5[%c1_663, %c71_664] : memref<2x72xf32, #tpu.memory_space<smem>>
    %939 = vector.broadcast %938 : f32 to vector<16x16xf32>
    %940 = arith.mulf %933, %939 : vector<16x16xf32>
    %941 = arith.addf %931, %940 : vector<16x16xf32>
    %c0_665 = arith.constant 0 : index
    %c0_666 = arith.constant 0 : index
    %c0_667 = arith.constant 0 : index
    %c0_668 = arith.constant 0 : index
    %942 = vector.load %arg8[%c0_665, %c0_666, %c0_667, %c0_668] : memref<1x2x16x16xf32, #tpu.memory_space<vmem>>, vector<1x1x16x16xf32>
    %943 = vector.shape_cast %942 : vector<1x1x16x16xf32> to vector<16x16xf32>
    %944 = vector.shape_cast %937 : vector<16x16xf32> to vector<1x1x16x16xf32>
    tpu.vector_store %arg8[%c0_665, %c0_666, %c0_667, %c0_668], %944 {strides = array<i32>} : memref<1x2x16x16xf32, #tpu.memory_space<vmem>>, vector<1x1x16x16xf32>,
    %c0_669 = arith.constant 0 : index
    %c1_670 = arith.constant 1 : index
    %c0_671 = arith.constant 0 : index
    %c0_672 = arith.constant 0 : index
    %945 = vector.load %arg8[%c0_669, %c1_670, %c0_671, %c0_672] : memref<1x2x16x16xf32, #tpu.memory_space<vmem>>, vector<1x1x16x16xf32>
    %946 = vector.shape_cast %945 : vector<1x1x16x16xf32> to vector<16x16xf32>
    %947 = vector.shape_cast %941 : vector<16x16xf32> to vector<1x1x16x16xf32>
    tpu.vector_store %arg8[%c0_669, %c1_670, %c0_671, %c0_672], %947 {strides = array<i32>} : memref<1x2x16x16xf32, #tpu.memory_space<vmem>>, vector<1x1x16x16xf32>,
    return
  }
  func.func @transform_0(%arg0: i32) -> (i32, i32, i32, i32) {
    %c0_i32 = arith.constant 0 : i32
    %c0_i32_0 = arith.constant 0 : i32
    %c0_i32_1 = arith.constant 0 : i32
    %c0_i32_2 = arith.constant 0 : i32
    return %arg0, %c0_i32, %c0_i32_0, %c0_i32_1 : i32, i32, i32, i32
  }
  func.func @transform_1(%arg0: i32) -> (i32, i32, i32, i32) {
    %c0_i32 = arith.constant 0 : i32
    %c0_i32_0 = arith.constant 0 : i32
    %c0_i32_1 = arith.constant 0 : i32
    %c0_i32_2 = arith.constant 0 : i32
    return %arg0, %c0_i32, %c0_i32_0, %c0_i32_1 : i32, i32, i32, i32
  }
  func.func @transform_2(%arg0: i32) -> (i32, i32) {
    %c0_i32 = arith.constant 0 : i32
    %c0_i32_0 = arith.constant 0 : i32
    %c0_i32_1 = arith.constant 0 : i32
    return %c0_i32, %c0_i32_0 : i32, i32
  }
  func.func @transform_3(%arg0: i32) -> (i32, i32) {
    %c0_i32 = arith.constant 0 : i32
    %c0_i32_0 = arith.constant 0 : i32
    %c0_i32_1 = arith.constant 0 : i32
    return %c0_i32, %c0_i32_0 : i32, i32
  }
  func.func @transform_4(%arg0: i32) -> (i32, i32) {
    %c0_i32 = arith.constant 0 : i32
    %c0_i32_0 = arith.constant 0 : i32
    %c0_i32_1 = arith.constant 0 : i32
    return %c0_i32, %c0_i32_0 : i32, i32
  }
  func.func @transform_5(%arg0: i32) -> (i32, i32) {
    %c0_i32 = arith.constant 0 : i32
    %c0_i32_0 = arith.constant 0 : i32
    %c0_i32_1 = arith.constant 0 : i32
    return %c0_i32, %c0_i32_0 : i32, i32
  }
  func.func @transform_6(%arg0: i32) -> (i32, i32) {
    %c0_i32 = arith.constant 0 : i32
    %c0_i32_0 = arith.constant 0 : i32
    %c0_i32_1 = arith.constant 0 : i32
    return %c0_i32, %c0_i32_0 : i32, i32
  }
  func.func @transform_7(%arg0: i32) -> (i32, i32, i32, i32) {
    %c0_i32 = arith.constant 0 : i32
    %c0_i32_0 = arith.constant 0 : i32
    %c0_i32_1 = arith.constant 0 : i32
    %c0_i32_2 = arith.constant 0 : i32
    return %arg0, %c0_i32, %c0_i32_0, %c0_i32_1 : i32, i32, i32, i32
  }
}

</mosaic_0001>

<bundles_post_ra>
// kernel: tpu_custom_call.1
= control target key start
LH: loop header
LB: loop body
LE: loop exit
PB: predicated region body
PF: predicated region fallthrough
CT: control target
= control target key end

     0   :  { %s5688_s0 = inlined_call_operand.hbm [shape: f32[2,4,16,16], index: 0, kind: input, shape index: {}]   ;;  %s5689_s1 = inlined_call_operand.hbm [shape: f32[2,4,8,8], index: 1, kind: input, shape index: {}]   ;;  %s5690_s2 = inlined_call_operand.vmem [shape: f32[4,4], index: 2, kind: input, shape index: {}]   ;;  %s5691_s3 = inlined_call_operand.vmem [shape: f32[4,4], index: 3, kind: input, shape index: {}]   ;;  %s5692_s4 = inlined_call_operand.vmem [shape: f32[2,72], index: 4, kind: input, shape index: {}]   ;;  %s5693_s5 = inlined_call_operand.vmem [shape: f32[16,8], index: 5, kind: input, shape index: {}]   ;;  %s5694_s6 = inlined_call_operand.vmem [shape: f32[8,16], index: 6, kind: input, shape index: {}]   ;;  %s5695_s7 = inlined_call_operand.hbm [shape: f32[2,2,16,16], index: 7, kind: output, shape index: {}]  }
   0x1   :  { %5732 = sst [smem:[#allocation61_spill]] %s5688_s0 }
   0x2   :  { %5733 = sst [smem:[#allocation62_spill]] %s5689_s1 }
   0x3   :  { %5734 = sst [smem:[#allocation63_spill]] %s5690_s2 }
   0x4   :  { %5735 = sst [smem:[#allocation64_spill]] %s5691_s3 }
   0x5   :  { %5736 = sst [smem:[#allocation65_spill]] %s5692_s4 }
   0x6   :  { %5737 = sst [smem:[#allocation66_spill]] %s5693_s5 }
   0x7   :  { %5738 = sst [smem:[#allocation67_spill]] %s5694_s6 }
   0x8   :  { %12 = vsyncpa [#allocation4], 0 }
   0x9   :  { %14 = vsyncpa [#allocation4 + $0x1], 0 }
   0xa   :  { %15 = vsyncpa [#allocation8], 0 }
   0xb   :  { %17 = vsyncpa [#allocation8 + $0x1], 0 }
   0xc   :  { %18 = vsyncpa [#allocation6], 0 }
   0xd   :  { %19 = vsyncpa [#allocation11], 0 }
   0xe   :  { %20 = vsyncpa [#allocation5], 0 }
   0xf   :  { %22 = vsyncpa [#allocation5 + $0x1], 0  ;;  %s3777_s24 = smov 0   ;;  %s3779_s25 = smov 0  }
  0x10   :  { %s3781_s26 = smov 0   ;;  %s3783_s27 = smov 0  }
  0x11 LB: > { %5739 = sst [smem:[#allocation19_spill]] %s3712_s25  ;;  %s3798_s28 = sadd.s32 4294967295, %s3720_s27   ;;  %s3720_s27 = sphi %s3783_s27, %s5875_s27   ;;  %s3716_s26 = sphi %s3781_s26, %s5874_s26   ;;  %s3712_s25 = sphi %s3779_s25, %s5873_s25   ;;  %s3708_s24 = sphi %s3777_s24, %s5872_s24  }
  0x12   : > { %5740 = sst [smem:[#allocation20_spill]] %s3716_s26  ;;  %s3121_s29 = sadd.s32 4294967294, %s3720_s27  }
  0x13   : > { %s3802_s30 = sadd.s32 1, %s3720_s27   ;;  %s35_s8 = sadd.s32 1, %s3716_s26 }
  0x14   : > { %s32_s9 = ssub.s32 %s3720_s27, %s3802_s30  ;;  %p42_p0 = scmp.ne.s32.totalorder %s3716_s26, %s3712_s25 }
  0x15   : > { %p33_p1 = scmp.eq.s32.totalorder %s32_s9, 0  ;;  %p43_p2 = scmp.eq.s32.totalorder %s3720_s27, 0 }
  0x16   : > { %p48_p3 = scmp.ne.s32.totalorder %s3712_s25, %s3708_s24  ;;  %p5696_p4 = scmp.eq.s32.totalorder %s3798_s28, 0 }
  0x17   : > { %s3814_s10 = scalar_select %p33_p1, %s3716_s26, %s35_s8  }
  0x18   : > { %p3816_p5 = por %p43_p2, %p42_p0  ;;  %p3822_p6 = por %p5696_p4, %p48_p3 }
  0x19   : > { %5741 = sst [smem:[#allocation21_spill]] %s3814_s10  ;;  %p203_p7 = scmp.eq.s32.totalorder %s3798_s28, 1 }
  0x1a   : > { %s5742_s11 = scalar_select %p3816_p5, 1, 0 }
  0x1b   : > { %s5743_s12 = scalar_select %p3822_p6, 1, 0 }
  0x1c   : > { %p209_p8 = scmp.eq.s32.totalorder %s3121_s29, 1  ;;  %p3122_p9 = scmp.ge.s32.totalorder %s3720_s27, 1 }
  0x1d   : > { %p216_p10 = scmp.lt.s32.totalorder %s3720_s27, 3  ;;  %p3829_p11 = por %p203_p7, %p42_p0 }
  0x1e   : > { %p3833_p12 = por %p209_p8, %p48_p3  ;;  %s5747_s3 = sld [smem:[#allocation64_spill]] }
  0x1f   : > { %s5744_s13 = scalar_select %p3829_p11, 1, 0 }
  0x20   : > { %s5745_s14 = scalar_select %p3833_p12, 1, 0 }
  0x21   : > { %p3837_p13 = pnand %p3122_p9, %p216_p10  ;;  %s5748_s2 = sld [smem:[#allocation63_spill]] }
  0x22   : > { %s5750_s4 = sld [smem:[#allocation65_spill]] }
  0x23   : > { %s5746_s15 = scalar_select %p3837_p13, 1, 0 }
  0x24   : > { %s240_s18 = sshll.u32 %s5747_s3, 4  ;;  %p3449_p1 = pneg %p3837_p13  ;;  %s241_s18 = int_to_ptr.vmem [resolvable:$true] %s240_s18 }
  0x25   : > { %s3537_s9 = scalar_lea.vmem %s241_s18, 64  ;;  %p3545_p10 = scmp.lt.s32.totalorder %s241_s18, %s241_s18 }
  0x26   : > { %p3852_p2 = pnand %p3449_p1, %p5696_p4  ;;  %p3538_p3 = scmp.ne.s32.totalorder %s241_s18, %s3537_s9 }
  0x27   : > { %s229_s21 = sshll.u32 %s5748_s2, 4  ;;  %p3546_p1 = scmp.lt.s32.totalorder %s3537_s9, %s3537_s9  ;;  %s230_s21 = int_to_ptr.vmem [resolvable:$true] %s229_s21 }
  0x28   : > { %s251_s8 = sshll.u32 %s5750_s4, 4  ;;  %p3539_p7 = pneg %p3852_p2  ;;  %s3859_s8 = int_to_ptr.vmem [resolvable:$true] %s251_s8 }
  0x29   : > { %p3547_p0 = por %p3546_p1, %p3545_p10 }
  0x2a   : > { %p3540_p8 = pnand %p3539_p7, %p3538_p3 }
  0x2c   : > { %p3541_p9 = pneg %p3540_p8 }
  0x2e   : > { %p3548_p4 = pnand %p3547_p0, %p3541_p9 }
  0x30   : > { %3551 = shalt.err (!%p3548_p4)
}
  0x31   : > { %s3722_s16 = smov [#allocation10]   ;;  %s3552_s17 = scalar_lea.vmem %s230_s21, 64 }
  0x32   : > { %3455 = dma.vmem_to_smem (!%p3852_p2), %s241_s18, 64, %s3722_s16, [#allocation11]  }
  0x33   : > { %p3553_p12 = scmp.ne.s32.totalorder %s230_s21, %s3552_s17  ;;  %p3560_p13 = scmp.lt.s32.totalorder %s230_s21, %s230_s21 }
  0x34   : > { %p3561_p5 = scmp.lt.s32.totalorder %s3552_s17, %s3552_s17 }
  0x35   : > { %p3555_p11 = pnand %p3553_p12, %p3539_p7 }
  0x36   : > { %p3562_p3 = por %p3561_p5, %p3560_p13 }
  0x37   : > { %p3556_p6 = pneg %p3555_p11 }
  0x39   : > { %p3563_p8 = pnand %p3562_p3, %p3556_p6 }
  0x3b   : > { %3566 = shalt.err (!%p3563_p8)
}
  0x3c   : > { %s3723_s19 = smov [#allocation9]   ;;  %p3473_p4 = scmp.lt.s32.totalorder %s3720_s27, 2 }
  0x3d   : > { %3452 = dma.vmem_to_smem (!%p3852_p2), %s230_s21, 64, %s3723_s19, [#allocation6]  }
  0x3e   : > { %s3567_s18 = scalar_lea.vmem %s3859_s8, 32  ;;  %p3575_p5 = scmp.lt.s32.totalorder %s3859_s8, %s3859_s8 }
  0x3f   : > { %p3568_p0 = scmp.ne.s32.totalorder %s3859_s8, %s3567_s18  ;;  %p3576_p6 = scmp.lt.s32.totalorder %s3567_s18, %s3567_s18 }
  0x41   : > { %p3570_p11 = pnand %p3568_p0, %p3539_p7  ;;  %p3577_p13 = por %p3576_p6, %p3575_p5 }
  0x43   : > { %p3571_p12 = pneg %p3570_p11 }
  0x45   : > { %p3578_p9 = pnand %p3577_p13, %p3571_p12 }
  0x47   : > { %3581 = shalt.err (!%p3578_p9)
}
  0x48   : > { %s3724_s20 = smov [#allocation12]   ;;  %s3885_s21 = sand.u32 1, %s3716_s26  }
  0x49   : > { %3458 = dma.vmem_to_smem (!%p3852_p2), %s3859_s8, 32, %s3724_s20, [#allocation11]  }
  0x4a   : > { %s3368_s23 = sshll.u32 %s3720_s27, 10  ;;  %s3127_s29 = sshll.u32 %s3885_s21, 6 }
  0x4b   : > { %s5751_s0 = sld [smem:[#allocation61_spill]]  ;;  %s272_s22 = scalar_lea.vmem [#allocation3], %s3127_s29 }
  0x4c   : > { %s279_s19 = sshll.u32 %s272_s22, 4  ;;  %p5752_p7 = scmp.ne.s32.totalorder %s5742_s11, 0  ;;  %s3902_s19 = int_to_ptr.vmem [resolvable:$true] %s279_s19 }
  0x4d   : > { %s269_s18 = scalar_lea.sflag [#allocation4], %s3885_s21 }
  0x4e   : > { %p3898_p2 = pnand %p3473_p4, %p5752_p7 }
  0x50   : > { %p3584_p1 = pneg %p3898_p2 }
  0x51   : > { %s3892_s17 = scalar_lea.hbm %s5751_s0, %s3368_s23  ;;  %s3587_s29 = scalar_lea.hbm %s5751_s0, 2048 }
  0x52   : > { %s3582_s20 = scalar_lea.hbm %s3892_s17, 1024  ;;  %p3588_p4 = scmp.lt.u32.totalorder %s3892_s17, %s5751_s0 }
  0x53   : > { %p3583_p10 = scmp.ne.s32.totalorder %s3892_s17, %s3582_s20  ;;  %p3589_p0 = scmp.lt.u32.totalorder %s3587_s29, %s3582_s20 }
  0x54   : > { %p3591_p12 = scmp.lt.u32.totalorder %s3582_s20, %s3892_s17 }
  0x55   : > { %p3585_p3 = pnand %p3584_p1, %p3583_p10  ;;  %p3590_p11 = por %p3589_p0, %p3588_p4 }
  0x57   : > { %p3586_p8 = pneg %p3585_p3  ;;  %p3592_p5 = por %p3591_p12, %p3590_p11 }
  0x59   : > { %p3593_p6 = pnand %p3592_p5, %p3586_p8 }
  0x5b   : > { %3596 = shalt.err (!%p3593_p6)
}
  0x5c   : > { %s3597_s22 = scalar_lea.vmem %s3902_s19, 1024  ;;  %s3725_s23 = smov [#allocation3]  }
  0x5d   : > { %p3598_p13 = scmp.ne.s32.totalorder %s3902_s19, %s3597_s22  ;;  %s3602_s11 = sshll.u32 %s3725_s23, 4  ;;  %s3603_s11 = int_to_ptr.vmem [resolvable:$false] %s3602_s11 }
  0x5e   : > { %s3604_s9 = scalar_lea.vmem %s3603_s11, 2048  ;;  %p3605_p10 = scmp.lt.s32.totalorder %s3902_s19, %s3603_s11 }
  0x5f   : > { %p3600_p9 = pnand %p3598_p13, %p3584_p1  ;;  %p3606_p3 = scmp.lt.s32.totalorder %s3604_s9, %s3597_s22 }
  0x61   : > { %p3601_p7 = pneg %p3600_p9  ;;  %p3607_p4 = por %p3606_p3, %p3605_p10 }
  0x63   : > { %p3608_p0 = pnand %p3607_p4, %p3601_p7 }
  0x65   : > { %3611 = shalt.err (!%p3608_p0)
}
  0x66   : > { %s3726_s20 = smov 128   ;;  %s3727_s29 = smov 8  }
  0x67   : > { %3462 = dma.hbm_to_vmem [thread:$0]  (!%p3898_p2), %s3892_s17, 1024, %s3902_s19, %s269_s18, %s3726_s20, %s3726_s20, %s3727_s29  }
  0x68   : > { %s3130_s16 = sshll.u32 %s3885_s21, 5  ;;  %s3369_s22 = sshll.u32 %s3720_s27, 9 }
  0x69   : > { %s5754_s1 = sld [smem:[#allocation62_spill]]  ;;  %s293_s0 = scalar_lea.vmem [#allocation7], %s3130_s16 }
  0x6a   : > { %s300_s2 = sshll.u32 %s293_s0, 4  ;;  %s290_s3 = scalar_lea.sflag [#allocation8], %s3885_s21  ;;  %s3942_s2 = int_to_ptr.vmem [resolvable:$true] %s300_s2 }
  0x6f   : > { %s3940_s9 = scalar_lea.hbm %s5754_s1, %s3369_s22  ;;  %s3617_s18 = scalar_lea.hbm %s5754_s1, 1024 }
  0x70   : > { %s3612_s4 = scalar_lea.hbm %s3940_s9, 512  ;;  %p3618_p5 = scmp.lt.u32.totalorder %s3940_s9, %s5754_s1 }
  0x71   : > { %p3613_p8 = scmp.ne.s32.totalorder %s3940_s9, %s3612_s4  ;;  %p3619_p6 = scmp.lt.u32.totalorder %s3617_s18, %s3612_s4 }
  0x72   : > { %p3621_p9 = scmp.lt.u32.totalorder %s3612_s4, %s3940_s9 }
  0x73   : > { %p3615_p11 = pnand %p3613_p8, %p3584_p1  ;;  %p3620_p13 = por %p3619_p6, %p3618_p5 }
  0x75   : > { %p3616_p12 = pneg %p3615_p11  ;;  %p3622_p7 = por %p3621_p9, %p3620_p13 }
  0x77   : > { %p3623_p10 = pnand %p3622_p7, %p3616_p12 }
  0x79   : > { %3626 = shalt.err (!%p3623_p10)
}
  0x7a   : > { %s3627_s0 = scalar_lea.vmem %s3942_s2, 512  ;;  %s3728_s16 = smov [#allocation7]  }
  0x7b   : > { %p3628_p3 = scmp.ne.s32.totalorder %s3942_s2, %s3627_s0  ;;  %s3632_s11 = sshll.u32 %s3728_s16, 4  ;;  %s3633_s11 = int_to_ptr.vmem [resolvable:$false] %s3632_s11 }
  0x7c   : > { %s3634_s17 = scalar_lea.vmem %s3633_s11, 1024  ;;  %p3635_p8 = scmp.lt.s32.totalorder %s3942_s2, %s3633_s11 }
  0x7d   : > { %p3630_p4 = pnand %p3628_p3, %p3584_p1  ;;  %p3636_p11 = scmp.lt.s32.totalorder %s3634_s17, %s3627_s0 }
  0x7f   : > { %p3631_p0 = pneg %p3630_p4  ;;  %p3637_p5 = por %p3636_p11, %p3635_p8 }
  0x81   : > { %p3638_p6 = pnand %p3637_p5, %p3631_p0 }
  0x83   : > { %3641 = shalt.err (!%p3638_p6)
}
  0x84   : > { %3465 = dma.hbm_to_vmem [thread:$0]  (!%p3898_p2), %s3940_s9, 512, %s3942_s2, %s290_s3, %s3726_s20, %s3726_s20, %s3727_s29  }
  0x85   : > { %p5755_p1 = scmp.ne.s32.totalorder %s5746_s15, 0 }
  0x87   : > { %312 = sbr.rel (%p5755_p1) target bundleno = 1129 (0x469), region = 48 }
  0x8e   : > { %s3976_s4 = sand.u32 1, %s3712_s25   ;;  %p5756_p12 = scmp.ne.s32.totalorder %s5743_s12, 0 }
  0x8f   : > { %s3134_s19 = sshll.u32 %s3976_s4, 6  ;;  %s315_s18 = scalar_lea.sflag [#allocation4], %s3976_s4 }
  0x90   : > { %s3980_s8 = scalar_lea.vmem [#allocation3], %s3134_s19 }
  0x91   : > { %3687 = dma.done.wait (%p5756_p12), %s315_s18, 1024  }
  0x92   : > { %3689 = vsyncadd (%p5756_p12), %s315_s18, 4294966272  ;;  %s5700_s2 = sshll.u32 %s3976_s4, 5  ;;  %s324_s3 = scalar_lea.sflag [#allocation8], %s3976_s4 }
  0x93   : > { %s3990_s15 = scalar_lea.vmem [#allocation7], %s5700_s2 }
  0x94   : > { %3691 = dma.done.wait (%p5756_p12), %s324_s3, 512  }
  0x95   : > { %3693 = vsyncadd (%p5756_p12), %s324_s3, 4294966784  ;;  %p5757_p2 = scmp.eq.s32.totalorder %s3798_s28, 0 }
  0x97   : > { %3695 = dma.done.wait (%p5757_p2), [#allocation6], 64   ;;  %p5758_p13 = pmov %p5757_p2 }
  0x98   : > { %p5759_p9 = pmov %p5757_p2 }
  0x99   : > { %3697 = vsyncadd (%p5758_p13), [#allocation6], 4294967232 }
  0x9a   : > { %3699 = dma.done.wait (%p5759_p9), [#allocation11], 96   ;;  %p5760_p7 = pmov %p5757_p2 }
  0x9c   : > { %3701 = vsyncadd (%p5760_p7), [#allocation11], 4294967200 }
  0x9d   : > { %344 = sfence }
  0x9e   : > { %s5761_s6 = sld [smem:[#allocation67_spill]]  ;;  %s406_s12 = sld [smem:[#allocation10]]  ;;  %v3729_v1 = vmov 0.0   ;;  %vm3730_vm0 = vmmov 0   ;;  %v405_v2 = vld [vmem:[%s3990_s15] sm:$0xff]  ;;  %v3140_v3 = vld [vmem:[%s3990_s15 + $0x8] sm:$0xff] }
  0x9f   : > { %3391 = vmatprep.subr.mxu0 %v3729_v1  ;;  %3393 = vmatprep.mubr.msk.f32.mxu0 %vm3730_vm0, %v3729_v1  ;;  %s3141_s29 = sld [smem:[#allocation10 + $0x1]]  ;;  %s3143_s9 = sld [smem:[#allocation10 + $0x2]]  ;;  %v3142_v4 = vld [vmem:[%s3990_s15 + $0x10] sm:$0xff]  ;;  %v4030_v6 = vld [vmem:[%s3990_s15 + $0x18] sm:$0xff]  ;;  %vm427_vm1 = vcmask 64512   ;;  %v4067_v38 = vld [vmem:[%s3980_s8] sm:$0xff] }
  0xa0   : > { %s3145_s22 = sld [smem:[#allocation10 + $0x3]]  ;;  %s3149_s23 = sld [smem:[#allocation10 + $0x80]]  ;;  %v4074_v43 = vld [vmem:[%s3980_s8 + $0x10] sm:$0xff]  ;;  %v4077_v44 = vld [vmem:[%s3980_s8 + $0x20] sm:$0xff]  ;;  %v4086_v49 = vld [vmem:[%s3980_s8 + $0x8] sm:$0xff]  ;;  %vm376_vm2 = vcmask 146432  }
  0xa1   : > { %s4014_s0 = sld [smem:[#allocation10 + $0x81]]  ;;  %s4016_s16 = sld [smem:[#allocation10 + $0x82]]  ;;  %v4083_v48 = vld [vmem:[%s3980_s8 + $0x30] sm:$0xff]  ;;  %v4089_v50 = vld [vmem:[%s3980_s8 + $0x18] sm:$0xff]  ;;  %v4098_v55 = vld [vmem:[%s3980_s8 + $0x28] sm:$0xff]  ;;  %390 = vst.msk [vmem:[#allocation2 + $0x60] sm:$0xff] %vm376_vm2, %v3729_v1 }
  0xa2   : > { %s4019_s11 = sld [smem:[#allocation10 + $0x83]]  ;;  %s4021_s17 = sld [smem:[#allocation10 + $0x100]]  ;;  %v4106_v60 = vld [vmem:[%s3980_s8 + $0x38] sm:$0xff]  ;;  %391 = vst.msk [vmem:[#allocation2 + $0x68] sm:$0xff] %vm376_vm2, %v3729_v1  ;;  %377 = vst.msk [vmem:[#allocation2] sm:$0xff] %vm376_vm2, %v3729_v1  ;;  %vm379_vm3 = vcmask 140288  }
  0xa3   : > { %s4025_s19 = sld [smem:[#allocation10 + $0x101]]  ;;  %s4027_s18 = sld [smem:[#allocation10 + $0x102]]  ;;  %378 = vst.msk [vmem:[#allocation2 + $0x8] sm:$0xff] %vm376_vm2, %v3729_v1  ;;  %381 = vst.msk [vmem:[#allocation2 + $0x18] sm:$0xff] %vm376_vm2, %v3729_v1  ;;  %vm590_vm4 = vcmask 138248   ;;  %vm2974_vm5 = vcmask 130048  }
  0xa4   : > { %v4007_v0 = vld [vmem:[%s5761_s6] sm:$0xff]  ;;  %v407_v5 = vstv %s406_s12  ;;  %s4032_s3 = sld [smem:[#allocation10 + $0x103]]  ;;  %s4034_s21 = sld [smem:[#allocation10 + $0x180]]  ;;  %382 = vst.msk [vmem:[#allocation2 + $0x20] sm:$0xff] %vm376_vm2, %v3729_v1  ;;  %384 = vst.msk [vmem:[#allocation2 + $0x30] sm:$0xff] %vm376_vm2, %v3729_v1 }
  0xa5   : > { %3392 = vmatpush3.msra.mxu0 %v4007_v0  ;;  %v408_v7 = vmul.f32 %v407_v5, %v405_v2  ;;  %v412_v8 = vstv %s3141_s29  ;;  %v418_v9 = vstv %s3143_s9  ;;  %s4036_s20 = sld [smem:[#allocation10 + $0x181]]  ;;  %s4038_s2 = sld [smem:[#allocation10 + $0x182]]  ;;  %385 = vst.msk [vmem:[#allocation2 + $0x38] sm:$0xff] %vm376_vm2, %v3729_v1  ;;  %387 = vst.msk [vmem:[#allocation2 + $0x48] sm:$0xff] %vm376_vm2, %v3729_v1 }
  0xa6   : > { %3401 = vmatprep.subr.mxu0 %v3729_v1  ;;  %v413_v10 = vmul.f32 %v3140_v3, %v412_v8  ;;  %v419_v11 = vmul.f32 %v3142_v4, %v418_v9  ;;  %v424_v12 = vstv %s3145_s22  ;;  %v595_v13 = vstv %s3149_s23  ;;  %s4040_s15 = sld [smem:[#allocation10 + $0x183]]  ;;  %s4045_s12 = sld [smem:[#allocation9]]  ;;  %388 = vst.msk [vmem:[#allocation2 + $0x50] sm:$0xff] %vm376_vm2, %v3729_v1  ;;  %393 = vst.msk [vmem:[#allocation2 + $0x78] sm:$0xff] %vm376_vm2, %v3729_v1 }
  0xa7   : > { %v425_v14 = vmul.f32 %v4030_v6, %v424_v12  ;;  %v596_v15 = vmul.f32 %v595_v13, %v405_v2  ;;  %v599_v16 = vstv %s4014_s0  ;;  %v604_v17 = vstv %s4016_s16  ;;  %s4047_s29 = sld [smem:[#allocation9 + $0x1]]  ;;  %s4050_s9 = sld [smem:[#allocation9 + $0x2]]  ;;  %394 = vst.msk [vmem:[#allocation2 + $0x80] sm:$0xff] %vm376_vm2, %v3729_v1  ;;  %396 = vst.msk [vmem:[#allocation2 + $0x90] sm:$0xff] %vm376_vm2, %v3729_v1 }
  0xa8   : > { %v414_v18 = vadd.f32 %v413_v10, %v408_v7  ;;  %v600_v19 = vmul.f32 %v3140_v3, %v599_v16  ;;  %v605_v20 = vmul.f32 %v3142_v4, %v604_v17  ;;  %v609_v21 = vstv %s4019_s11  ;;  %s4056_s22 = sld [smem:[#allocation9 + $0x3]]  ;;  %s4061_s23 = sld [smem:[#allocation9 + $0x80]]  ;;  %397 = vst.msk [vmem:[#allocation2 + $0x98] sm:$0xff] %vm376_vm2, %v3729_v1  ;;  %399 = vst.msk [vmem:[#allocation2 + $0xa8] sm:$0xff] %vm376_vm2, %v3729_v1 }
  0xa9   : > { %v610_v22 = vmul.f32 %v4030_v6, %v609_v21  ;;  %v773_v23 = vstv %s4021_s17  ;;  %v777_v24 = vstv %s4025_s19  ;;  %v782_v25 = vstv %s4027_s18  ;;  %s4063_s0 = sld [smem:[#allocation9 + $0x81]]  ;;  %s4069_s16 = sld [smem:[#allocation9 + $0x82]]  ;;  %400 = vst.msk [vmem:[#allocation2 + $0xb0] sm:$0xff] %vm376_vm2, %v3729_v1 }
  0xaa   : > { %v420_v26 = vadd.f32 %v419_v11, %v414_v18  ;;  %v601_v27 = vadd.f32 %v600_v19, %v596_v15  ;;  %v774_v28 = vmul.f32 %v773_v23, %v405_v2  ;;  %v778_v29 = vmul.f32 %v3140_v3, %v777_v24  ;;  %s4079_s11 = sld [smem:[#allocation9 + $0x83]]  ;;  %s3731_s8 = smov 1   ;;  %392 = vst.msk [vmem:[#allocation2 + $0x70] sm:$0x3] %vm379_vm3, %v3729_v1 }
  0xab   : > { %v783_v30 = vmul.f32 %v3142_v4, %v782_v25  ;;  %v787_v31 = vstv %s4032_s3  ;;  %v951_v32 = vstv %s4034_s21  ;;  %v955_v33 = vstv %s4036_s20  ;;  %s5762_s5 = sld [smem:[#allocation66_spill]]  ;;  %s4146_s19 = sld [smem:[#allocation9 + $0x100]]  ;;  %380 = vst.msk [vmem:[#allocation2 + $0x10] sm:$0x3] %vm379_vm3, %v3729_v1  ;;  %383 = vst.msk [vmem:[#allocation2 + $0x28] sm:$0x3] %vm379_vm3, %v3729_v1 }
  0xac   : > { %v426_v34 = vadd.f32 %v425_v14, %v420_v26  ;;  %v606_v35 = vadd.f32 %v605_v20, %v601_v27  ;;  %v779_v36 = vadd.f32 %v778_v29, %v774_v28  ;;  %v788_v37 = vmul.f32 %v4030_v6, %v787_v31  ;;  %s4148_s18 = sld [smem:[#allocation9 + $0x101]]  ;;  %s4182_s3 = sld [smem:[#allocation9 + $0x102]]  ;;  %386 = vst.msk [vmem:[#allocation2 + $0x40] sm:$0x3] %vm379_vm3, %v3729_v1 }
  0xad   : > { %v952_v39 = vmul.f32 %v951_v32, %v405_v2  ;;  %v956_v40 = vmul.f32 %v3140_v3, %v955_v33  ;;  %v960_v41 = vstv %s4038_s2  ;;  %v965_v42 = vstv %s4040_s15  ;;  %s4184_s21 = sld [smem:[#allocation9 + $0x103]]  ;;  %s4186_s20 = sld [smem:[#allocation9 + $0x180]]  ;;  %389 = vst.msk [vmem:[#allocation2 + $0x58] sm:$0x3] %vm379_vm3, %v3729_v1  ;;  %395 = vst.msk [vmem:[#allocation2 + $0x88] sm:$0x3] %vm379_vm3, %v3729_v1 }
  0xae   : > { %3394 = vmatmul.mubr.msk.f32.vlgmr.msra.gmra.mrb[0].mxu0 %vm427_vm1, %v426_v34  ;;  %v611_v45 = vadd.f32 %v610_v22, %v606_v35  ;;  %v784_v46 = vadd.f32 %v783_v30, %v779_v36  ;;  %v961_v47 = vmul.f32 %v3142_v4, %v960_v41  ;;  %v1130_v52 = vstv %s4045_s12  ;;  %s4188_s15 = sld [smem:[#allocation9 + $0x181]]  ;;  %398 = vst.msk [vmem:[#allocation2 + $0xa0] sm:$0x3] %vm379_vm3, %v3729_v1  ;;  %s4198_s12 = sld [smem:[#allocation9 + $0x182]] }
  0xaf   : > { %3402 = vmatpush3.msra.mxu0 %v4007_v0  ;;  %3403 = vmatprep.mubr.msk.f32.mxu0 %vm3730_vm0, %v3729_v1  ;;  %v957_v51 = vadd.f32 %v956_v40, %v952_v39  ;;  %v1137_v53 = vstv %s4047_s29  ;;  %v1146_v54 = vstv %s4050_s9  ;;  %v966_v56 = vmul.f32 %v4030_v6, %v965_v42  ;;  %401 = vst.msk [vmem:[#allocation2 + $0xb8] sm:$0x3] %vm379_vm3, %v3729_v1  ;;  %s4200_s29 = sld [smem:[#allocation9 + $0x183]]  ;;  %s3291_s9 = sld [smem:[#allocation12 + $0x25]] }
  0xb0   : > { %3411 = vmatprep.subr.mxu0 %v3729_v1  ;;  %v1131_v57 = vmul.f32 %v1130_v52, %v4067_v38  ;;  %v1138_v58 = vmul.f32 %v4074_v43, %v1137_v53  ;;  %v1147_v59 = vmul.f32 %v4077_v44, %v1146_v54  ;;  %v789_v61 = vadd.f32 %v788_v37, %v784_v46  ;;  %s3298_s2 = sld [smem:[#allocation12 + $0xa8]]  ;;  %s5713_s17 = smov 126  }
  0xb1   : > { %v1155_v62 = vstv %s4056_s22  ;;  %v1132_v63 = vmul.f32 %v1130_v52, %v4086_v49  ;;  %v1139_v2 = vmul.f32 %v4089_v50, %v1137_v53  ;;  %v962_v3 = vadd.f32 %v961_v47, %v957_v51  ;;  %v4138_v25 = vld [vmem:[%s5762_s5] sm:$0xff]  ;;  %s3292_s22 = sld [smem:[#allocation12 + $0xa5]]  ;;  %s4914_s1 = sld [smem:[#allocation12 + $0x9]] }
  0xb2   : > { %3404 = vmatmul.mubr.msk.f32.vlgmr.msra.gmra.mrb[2].mxu0 %vm427_vm1, %v611_v45  ;;  %v1140_v4 = vadd.f32 %v1138_v58, %v1131_v57  ;;  %v1156_v5 = vmul.f32 %v4083_v48, %v1155_v62  ;;  %v1148_v6 = vmul.f32 %v4098_v55, %v1146_v54  ;;  %v1157_v8 = vmul.f32 %v4106_v60, %v1155_v62  ;;  %s4924_s6 = sld [smem:[#allocation12 + $0xa2]]  ;;  %s5809_s10 = smov 127  }
  0xb3   : > { %3412 = vmatpush3.msra.mxu0 %v4007_v0  ;;  %3413 = vmatprep.mubr.msk.f32.mxu0 %vm3730_vm0, %v3729_v1  ;;  %v1141_v7 = vadd.f32 %v1139_v2, %v1132_v63  ;;  %v1174_v9 = vstv %s4061_s23  ;;  %v1180_v10 = vstv %s4063_s0  ;;  %v1188_v14 = vstv %s4069_s16  ;;  %s3293_s23 = sld [smem:[#allocation12 + $0x26]]  ;;  %s5715_s16 = smov 127  }
  0xb4   : > { %3421 = vmatprep.subr.mxu0 %v3729_v1  ;;  %v1149_v11 = vadd.f32 %v1147_v59, %v1140_v4  ;;  %v1175_v12 = vmul.f32 %v1174_v9, %v4067_v38  ;;  %v1181_v13 = vmul.f32 %v4074_v43, %v1180_v10  ;;  %v1189_v16 = vmul.f32 %v4077_v44, %v1188_v14  ;;  %s3294_s0 = sld [smem:[#allocation12 + $0xa6]]  ;;  %s4933_s26 = sld [smem:[#allocation12 + $0x89]] }
  0xb5   : > { %v1150_v15 = vadd.f32 %v1148_v6, %v1141_v7  ;;  %v1196_v17 = vstv %s4079_s11  ;;  %v967_v18 = vadd.f32 %v966_v56, %v962_v3  ;;  %3398 = vmatprep.mubr.msk.f32.mxu1 %vm427_vm1, %v4138_v25  ;;  %v1182_v26 = vmul.f32 %v4089_v50, %v1180_v10  ;;  %s3297_s11 = sld [smem:[#allocation12 + $0x28]]  ;;  %s4946_s25 = sld [smem:[#allocation12 + $0xba]] }
  0xb6   : > { %3414 = vmatmul.mubr.msk.f32.vlgmr.msra.gmra.mrb[4].mxu0 %vm427_vm1, %v789_v61  ;;  %v1158_v19 = vadd.f32 %v1156_v5, %v1149_v11  ;;  %v1183_v20 = vadd.f32 %v1181_v13, %v1175_v12  ;;  %v1197_v21 = vmul.f32 %v4083_v48, %v1196_v17  ;;  %v1190_v27 = vmul.f32 %v4098_v55, %v1188_v14  ;;  %p5869_p3 = scmp.ne.s32.totalorder %s5744_s13, 0 }
  0xb7   : > { %3422 = vmatpush3.msra.mxu0 %v4007_v0  ;;  %3423 = vmatprep.mubr.msk.f32.mxu0 %vm3730_vm0, %v3729_v1  ;;  %v1159_v22 = vadd.f32 %v1157_v8, %v1150_v15  ;;  %v1176_v0 = vmul.f32 %v1174_v9, %v4086_v49  ;;  %v1198_v29 = vmul.f32 %v4106_v60, %v1196_v17  ;;  %v1215_v32 = vstv %s4146_s19  ;;  %s3299_s19 = sld [smem:[#allocation12 + $0x29]] }
  0xb8   : > { %1162 = vrot.lane.b32.xlu0 %v1158_v19, %s3731_s8  ;;  %v1191_v23 = vadd.f32 %v1189_v16, %v1183_v20  ;;  %v1221_v33 = vstv %s4148_s18  ;;  %v1216_v34 = vmul.f32 %v1215_v32, %v4067_v38  ;;  %v1229_v36 = vstv %s4182_s3  ;;  %s3300_s18 = sld [smem:[#allocation12 + $0xa9]]  ;;  %s3303_s3 = sld [smem:[#allocation12 + $0x2b]] }
  0xb9   : > { %1164 = vrot.lane.b32.xlu1 %v1159_v22, %s3731_s8  ;;  %v1184_v28 = vadd.f32 %v1182_v26, %v1176_v0  ;;  %v1222_v35 = vmul.f32 %v4074_v43, %v1221_v33  ;;  %v1237_v37 = vstv %s4184_s21  ;;  %v1230_v39 = vmul.f32 %v4077_v44, %v1229_v36  ;;  %s3304_s21 = sld [smem:[#allocation12 + $0xab]] }
  0xba   : > { %3424 = vmatmul.mubr.msk.f32.vlgmr.msra.gmra.mrb[6].mxu0 %vm427_vm1, %v967_v18  ;;  %v1199_v24 = vadd.f32 %v1197_v21, %v1191_v23  ;;  %v1238_v1 = vmul.f32 %v4083_v48, %v1237_v37  ;;  %v1256_v40 = vstv %s4186_s20  ;;  %v1262_v41 = vstv %s4188_s15  ;;  %s3305_s20 = sld [smem:[#allocation12 + $0x2c]] }
  0xbb   : > { %v1192_v30 = vadd.f32 %v1190_v27, %v1184_v28  ;;  %v1224_v42 = vadd.f32 %v1222_v35, %v1216_v34  ;;  %v1257_v45 = vmul.f32 %v1256_v40, %v4067_v38  ;;  %v1263_v46 = vmul.f32 %v4074_v43, %v1262_v41  ;;  %s3306_s15 = sld [smem:[#allocation12 + $0xac]] }
  0xbc   : > { %1203 = vrot.lane.b32.xlu0 %v1199_v24, %s3731_s8  ;;  %v1270_v47 = vstv %s4198_s12  ;;  %v1278_v52 = vstv %s4200_s29  ;;  %v1217_v53 = vmul.f32 %v1215_v32, %v4086_v49  ;;  %v1223_v58 = vmul.f32 %v4089_v50, %v1221_v33  ;;  %s4251_s12 = sld [smem:[#allocation12 + $0x2e]] }
  0xbd   : > { %v1200_v31 = vadd.f32 %v1198_v29, %v1192_v30  ;;  %v1271_v51 = vmul.f32 %v4077_v44, %v1270_v47  ;;  %v1232_v54 = vadd.f32 %v1230_v39, %v1224_v42  ;;  %v1265_v56 = vadd.f32 %v1263_v46, %v1257_v45  ;;  %s4255_s29 = sld [smem:[#allocation12 + $0xae]] }
  0xbe   : > { %v1279_v57 = vmul.f32 %v4083_v48, %v1278_v52  ;;  %v1231_v59 = vmul.f32 %v4098_v55, %v1229_v36  ;;  %v1225_v63 = vadd.f32 %v1223_v58, %v1217_v53  ;;  %v1239_v38 = vmul.f32 %v4106_v60, %v1237_v37 }
  0xbf   : > { %1205 = vrot.lane.b32.xlu1 %v1200_v31, %s3731_s8  ;;  %v1240_v61 = vadd.f32 %v1238_v1, %v1232_v54  ;;  %v1273_v62 = vadd.f32 %v1271_v51, %v1265_v56  ;;  %v1258_v43 = vmul.f32 %v1256_v40, %v4086_v49  ;;  %v1264_v2 = vmul.f32 %v4089_v50, %v1262_v41 }
  0xc0   : > { %v1272_v3 = vmul.f32 %v4098_v55, %v1270_v47  ;;  %v1233_v4 = vadd.f32 %v1231_v59, %v1225_v63  ;;  %v1280_v5 = vmul.f32 %v4106_v60, %v1278_v52  ;;  %v2149_v60 = vstv %s3291_s9  ;;  %s4260_s9 = sld [smem:[#allocation12 + $0x2f]] }
  0xc1   : > { %1244 = vrot.lane.b32.xlu0 %v1240_v61, %s3731_s8  ;;  %v1281_v44 = vadd.f32 %v1279_v57, %v1273_v62  ;;  %v1266_v48 = vadd.f32 %v1264_v2, %v1258_v43  ;;  %v2163_v10 = vstv %s3292_s22  ;;  %v2177_v15 = vstv %s3293_s23  ;;  %s4265_s22 = sld [smem:[#allocation12 + $0xaf]]  ;;  %s4270_s23 = sld [smem:[#allocation12 + $0x31]] }
  0xc2   : > { %v1241_v6 = vadd.f32 %v1239_v38, %v1233_v4  ;;  %v2191_v18 = vstv %s3294_s0  ;;  %v2219_v22 = vstv %s3297_s11  ;;  %v2233_v26 = vstv %s3298_s2  ;;  %s4276_s0 = sld [smem:[#allocation12 + $0xb1]]  ;;  %s4282_s11 = sld [smem:[#allocation12 + $0x32]] }
  0xc3   : > { %v1274_v7 = vadd.f32 %v1272_v3, %v1266_v48  ;;  %v2247_v29 = vstv %s3299_s19  ;;  %v2261_v32 = vstv %s3300_s18  ;;  %v2289_v36 = vstv %s3303_s3  ;;  %s4288_s2 = sld [smem:[#allocation12 + $0xb2]]  ;;  %s4298_s19 = sld [smem:[#allocation12 + $0x34]] }
  0xc4   : > { %1246 = vrot.lane.b32.xlu1 %v1241_v6, %s3731_s8  ;;  %v2303_v40 = vstv %s3304_s21  ;;  %v2317_v45 = vstv %s3305_s20  ;;  %v2331_v51 = vstv %s3306_s15  ;;  %s4304_s18 = sld [smem:[#allocation12 + $0xb4]]  ;;  %s4310_s20 = sld [smem:[#allocation12 + $0x35]] }
  0xc5   : > { %1285 = vrot.lane.b32.xlu0 %v1281_v44, %s3731_s8  ;;  %v1282_v8 = vadd.f32 %v1280_v5, %v1274_v7  ;;  %v2359_v56 = vstv %s4251_s12  ;;  %v2373_v59 = vstv %s4255_s29  ;;  %s4319_s15 = sld [smem:[#allocation12 + $0xb5]]  ;;  %s4330_s12 = sld [smem:[#allocation12 + $0x37]] }
  0xc6   : > { %v2387_v62 = vstv %s4260_s9  ;;  %s4342_s29 = sld [smem:[#allocation12 + $0xb7]]  ;;  %s4350_s9 = sld [smem:[#allocation12 + $0x38]] }
  0xc7   : > { %v2401_v38 = vstv %s4265_s22  ;;  %v2429_v2 = vstv %s4270_s23  ;;  %s4358_s22 = sld [smem:[#allocation12 + $0xb8]]  ;;  %s4510_s23 = sld [smem:[#allocation12 + $0x84]] }
  0xc8   : > { %1287 = vrot.lane.b32.xlu1 %v1282_v8, %s3731_s8  ;;  %v2443_v4 = vstv %s4276_s0  ;;  %v2457_v5 = vstv %s4282_s11  ;;  %s4512_s0 = sld [smem:[#allocation12 + $0x1]]  ;;  %s4517_s11 = sld [smem:[#allocation12 + $0x5]] }
  0xc9   : > { %v2471_v7 = vstv %s4288_s2  ;;  %s4519_s2 = sld [smem:[#allocation12 + $0x81]]  ;;  %s4540_s3 = sld [smem:[#allocation12 + $0x7]] }
  0xca   : > { %s4542_s21 = sld [smem:[#allocation12 + $0x82]] }
 0x12a   : > { %v1163_v49 = vpop.permute.xlu0 %1162 }
 0x12b   : > { %1169 = vst.msk [vmem:[#allocation2 + $0x61] sm:$0xff] %vm590_vm4, %v1163_v49  ;;  %v1165_v50 = vpop.permute.xlu1 %1164 }
 0x12c   : > { %1170 = vst.msk [vmem:[#allocation2 + $0x69] sm:$0xff] %vm590_vm4, %v1165_v50 }
 0x12e   : > { %v1204_v55 = vpop.permute.xlu0 %1203 }
 0x12f   : > { %1210 = vst.msk [vmem:[#allocation2 + $0x79] sm:$0xff] %vm590_vm4, %v1204_v55  ;;  %v403_v55 = vld [vmem:[%s5762_s5 + $0x8] sm:$0xff]  ;;  %s4916_s5 = sld [smem:[#allocation12 + $0x3a]] }
 0x131   : > { %v1206_v49 = vpop.permute.xlu1 %1205 }
 0x132   : > { %v2134_v9 = vld [vmem:[#allocation2 + $0x60] sm:$0xff]  ;;  %1211 = vst.msk [vmem:[#allocation2 + $0x81] sm:$0xff] %vm590_vm4, %v1206_v49 }
 0x133   : > { %v2150_v11 = vmul.f32 %v2149_v60, %v2134_v9  ;;  %v2135_v12 = vld [vmem:[#allocation2 + $0x68] sm:$0xff]  ;;  %v2164_v13 = vmul.f32 %v2163_v10, %v2134_v9  ;;  %v2178_v17 = vmul.f32 %v2177_v15, %v2134_v9  ;;  %v2192_v20 = vmul.f32 %v2191_v18, %v2134_v9 }
 0x134   : > { %v2151_v14 = vmul.f32 %v2149_v60, %v2135_v12  ;;  %v2165_v16 = vmul.f32 %v2163_v10, %v2135_v12  ;;  %v2179_v19 = vmul.f32 %v2177_v15, %v2135_v12  ;;  %v2204_v21 = vld [vmem:[#allocation2 + $0x61] sm:$0xff]  ;;  %v2193_v23 = vmul.f32 %v2191_v18, %v2135_v12  ;;  %v2205_v24 = vld [vmem:[#allocation2 + $0x69] sm:$0xff] }
 0x135   : > { %2154 = vrot.lane.b32.xlu0 %v2150_v11, %s5715_s16  ;;  %v2220_v0 = vmul.f32 %v2219_v22, %v2204_v21  ;;  %v2221_v27 = vmul.f32 %v2219_v22, %v2205_v24  ;;  %v2234_v28 = vmul.f32 %v2233_v26, %v2204_v21  ;;  %v2235_v30 = vmul.f32 %v2233_v26, %v2205_v24  ;;  %v2274_v35 = vld [vmem:[#allocation2 + $0x62] sm:$0xff]  ;;  %v2275_v39 = vld [vmem:[#allocation2 + $0x6a] sm:$0xff] }
 0x136   : > { %2156 = vrot.lane.b32.xlu1 %v2151_v14, %s5715_s16  ;;  %v2248_v31 = vmul.f32 %v2247_v29, %v2204_v21  ;;  %v2249_v33 = vmul.f32 %v2247_v29, %v2205_v24  ;;  %v2262_v34 = vmul.f32 %v2261_v32, %v2204_v21  ;;  %v2263_v37 = vmul.f32 %v2261_v32, %v2205_v24  ;;  %v2344_v54 = vld [vmem:[#allocation2 + $0x78] sm:$0xff] }
 0x137   : > { %v2290_v1 = vmul.f32 %v2289_v36, %v2274_v35  ;;  %v2291_v41 = vmul.f32 %v2289_v36, %v2275_v39  ;;  %v2304_v42 = vmul.f32 %v2303_v40, %v2274_v35  ;;  %v2305_v46 = vmul.f32 %v2303_v40, %v2275_v39  ;;  %v2414_v44 = vld [vmem:[#allocation2 + $0x79] sm:$0xff] }
 0x138   : > { %v2318_v47 = vmul.f32 %v2317_v45, %v2274_v35  ;;  %v2319_v52 = vmul.f32 %v2317_v45, %v2275_v39  ;;  %v2332_v53 = vmul.f32 %v2331_v51, %v2274_v35  ;;  %v2333_v57 = vmul.f32 %v2331_v51, %v2275_v39 }
 0x139   : > { %2168 = vrot.lane.b32.xlu0 %v2164_v13, %s5715_s16  ;;  %v2360_v58 = vmul.f32 %v2359_v56, %v2344_v54  ;;  %v2374_v61 = vmul.f32 %v2373_v59, %v2344_v54  ;;  %v2388_v63 = vmul.f32 %v2387_v62, %v2344_v54  ;;  %v2402_v43 = vmul.f32 %v2401_v38, %v2344_v54  ;;  %v2345_v12 = vld [vmem:[#allocation2 + $0x80] sm:$0xff] }
 0x13a   : > { %2170 = vrot.lane.b32.xlu1 %v2165_v16, %s5715_s16  ;;  %v2430_v3 = vmul.f32 %v2429_v2, %v2414_v44  ;;  %v2444_v48 = vmul.f32 %v2443_v4, %v2414_v44  ;;  %v2458_v6 = vmul.f32 %v2457_v5, %v2414_v44  ;;  %v2472_v8 = vmul.f32 %v2471_v7, %v2414_v44  ;;  %v2484_v13 = vld [vmem:[#allocation2 + $0x7a] sm:$0xff] }
 0x13b   : > { %v2499_v9 = vstv %s4298_s19  ;;  %v2361_v14 = vmul.f32 %v2359_v56, %v2345_v12  ;;  %v2513_v16 = vstv %s4304_s18  ;;  %v2375_v18 = vmul.f32 %v2373_v59, %v2345_v12  ;;  %s4527_s19 = sld [smem:[#allocation12 + $0x85]]  ;;  %s4529_s18 = sld [smem:[#allocation12 + $0x2]] }
 0x13c   : > { %v2500_v15 = vmul.f32 %v2499_v9, %v2484_v13  ;;  %v2514_v21 = vmul.f32 %v2513_v16, %v2484_v13  ;;  %v2527_v22 = vstv %s4310_s20  ;;  %v2389_v24 = vmul.f32 %v2387_v62, %v2345_v12  ;;  %s4552_s20 = sld [smem:[#allocation12 + $0x87]] }
 0x13d   : > { %2182 = vrot.lane.b32.xlu0 %v2178_v17, %s5713_s17  ;;  %v2541_v29 = vstv %s4319_s15  ;;  %v2597_v40 = vstv %s4350_s9  ;;  %v5701_v45 = vstv %s4358_s22  ;;  %s4562_s15 = sld [smem:[#allocation12 + $0x8]]  ;;  %s4605_s9 = sld [smem:[#allocation12 + $0x8d]] }
 0x13e   : > { %2184 = vrot.lane.b32.xlu1 %v2179_v19, %s5713_s17  ;;  %v1245_v19 = vpop.permute.xlu0 %1244 }
 0x13f   : > { %1251 = vst.msk [vmem:[#allocation2 + $0x91] sm:$0xff] %vm590_vm4, %v1245_v19 }
 0x141   : > { %2196 = vrot.lane.b32.xlu0 %v2192_v20, %s5713_s17 }
 0x142   : > { %2198 = vrot.lane.b32.xlu1 %v2193_v23, %s5713_s17 }
 0x145   : > { %2224 = vrot.lane.b32.xlu0 %v2220_v0, %s5715_s16  ;;  %v1286_v0 = vpop.permute.xlu0 %1285 }
 0x146   : > { %2226 = vrot.lane.b32.xlu1 %v2221_v27, %s5715_s16  ;;  %v2528_v27 = vmul.f32 %v2527_v22, %v2484_v13  ;;  %1292 = vst.msk [vmem:[#allocation2 + $0xa9] sm:$0xff] %vm590_vm4, %v1286_v0 }
 0x149   : > { %2238 = vrot.lane.b32.xlu0 %v2234_v28, %s5715_s16  ;;  %v1247_v28 = vpop.permute.xlu1 %1246 }
 0x14a   : > { %2240 = vrot.lane.b32.xlu1 %v2235_v30, %s5715_s16  ;;  %1252 = vst.msk [vmem:[#allocation2 + $0x99] sm:$0xff] %vm590_vm4, %v1247_v28  ;;  %v2542_v30 = vmul.f32 %v2541_v29, %v2484_v13 }
 0x14d   : > { %2252 = vrot.lane.b32.xlu0 %v2248_v31, %s5713_s17  ;;  %v2415_v31 = vld [vmem:[#allocation2 + $0x81] sm:$0xff]  ;;  %v1288_v32 = vpop.permute.xlu1 %1287 }
 0x14e   : > { %2254 = vrot.lane.b32.xlu1 %v2249_v33, %s5713_s17  ;;  %v2554_v33 = vld [vmem:[#allocation2 + $0x90] sm:$0xff]  ;;  %1293 = vst.msk [vmem:[#allocation2 + $0xb1] sm:$0xff] %vm590_vm4, %v1288_v32  ;;  %v2431_v35 = vmul.f32 %v2429_v2, %v2415_v31  ;;  %v2445_v39 = vmul.f32 %v2443_v4, %v2415_v31 }
 0x14f   : > { %v2612_v51 = vmul.f32 %v5701_v45, %v2554_v33  ;;  %v1309_v45 = vstv %s4512_s0  ;;  %s4618_s0 = sld [smem:[#allocation12 + $0x8a]] }
 0x151   : > { %2266 = vrot.lane.b32.xlu0 %v2262_v34, %s5713_s17  ;;  %v2569_v34 = vstv %s4330_s12  ;;  %s4571_s12 = sld [smem:[#allocation12 + $0x88]] }
 0x152   : > { %2268 = vrot.lane.b32.xlu1 %v2263_v37, %s5713_s17  ;;  %v2570_v36 = vmul.f32 %v2569_v34, %v2554_v33  ;;  %v2583_v37 = vstv %s4342_s29  ;;  %s4597_s29 = sld [smem:[#allocation12 + $0xd]] }
 0x155   : > { %2294 = vrot.lane.b32.xlu0 %v2290_v1, %s5715_s16  ;;  %v2584_v1 = vmul.f32 %v2583_v37, %v2554_v33 }
 0x156   : > { %2296 = vrot.lane.b32.xlu1 %v2291_v41, %s5715_s16  ;;  %v2459_v41 = vmul.f32 %v2457_v5, %v2415_v31 }
 0x159   : > { %2308 = vrot.lane.b32.xlu0 %v2304_v42, %s5715_s16  ;;  %v2598_v42 = vmul.f32 %v2597_v40, %v2554_v33 }
 0x15a   : > { %2310 = vrot.lane.b32.xlu1 %v2305_v46, %s5715_s16  ;;  %v2473_v46 = vmul.f32 %v2471_v7, %v2415_v31 }
 0x15d   : > { %2322 = vrot.lane.b32.xlu0 %v2318_v47, %s5713_s17  ;;  %v2485_v47 = vld [vmem:[#allocation2 + $0x82] sm:$0xff] }
 0x15e   : > { %2324 = vrot.lane.b32.xlu1 %v2319_v52, %s5713_s17  ;;  %v2501_v52 = vmul.f32 %v2499_v9, %v2485_v47  ;;  %v2529_v54 = vmul.f32 %v2527_v22, %v2485_v47  ;;  %v2543_v56 = vmul.f32 %v2541_v29, %v2485_v47 }
 0x161   : > { %2336 = vrot.lane.b32.xlu0 %v2332_v53, %s5713_s17  ;;  %v2515_v53 = vmul.f32 %v2513_v16, %v2485_v47 }
 0x162   : > { %2338 = vrot.lane.b32.xlu1 %v2333_v57, %s5713_s17  ;;  %v2555_v57 = vld [vmem:[#allocation2 + $0x98] sm:$0xff] }
 0x163   : > { %v2585_v59 = vmul.f32 %v2583_v37, %v2555_v57 }
 0x165   : > { %2364 = vrot.lane.b32.xlu0 %v2360_v58, %s5715_s16  ;;  %v2571_v58 = vmul.f32 %v2569_v34, %v2555_v57 }
 0x166   : > { %2366 = vrot.lane.b32.xlu1 %v2361_v14, %s5715_s16 }
 0x169   : > { %2378 = vrot.lane.b32.xlu0 %v2374_v61, %s5715_s16  ;;  %v2599_v61 = vmul.f32 %v2597_v40, %v2555_v57 }
 0x16a   : > { %2380 = vrot.lane.b32.xlu1 %v2375_v18, %s5715_s16 }
 0x16d   : > { %2392 = vrot.lane.b32.xlu0 %v2388_v63, %s5713_s17 }
 0x16e   : > { %2394 = vrot.lane.b32.xlu1 %v2389_v24, %s5713_s17 }
 0x171   : > { %2406 = vrot.lane.b32.xlu0 %v2402_v43, %s5713_s17 }
 0x175   : > { %2434 = vrot.lane.b32.xlu0 %v2430_v3, %s5715_s16 }
 0x179   : > { %2448 = vrot.lane.b32.xlu0 %v2444_v48, %s5715_s16 }
 0x17d   : > { %2462 = vrot.lane.b32.xlu0 %v2458_v6, %s5713_s17 }
 0x181   : > { %v497_v50 = vpop.f32.mrb[0].mxu0  ;;  %2476 = vrot.lane.b32.xlu0 %v2472_v8, %s5713_s17 }
 0x182   : > { %v3395_v60 = vpop.f32.mrb[1].mxu0  ;;  %3396 = vmatprep.subr.mxu1 %v497_v50 }
 0x183   : > { %3397 = vmatpush3.msra.mxu1 %v497_v50 }
 0x184   : > { %3399 = vmatmul.mubr.msk.f32.vlgmr.msra.gmra.mrb[0].mxu1 %vm427_vm1, %v403_v55 }
 0x185   : > { %v681_v10 = vpop.f32.mrb[2].mxu0  ;;  %3408 = vmatprep.mubr.msk.f32.mxu1 %vm427_vm1, %v4138_v25  ;;  %2504 = vrot.lane.b32.xlu0 %v2500_v15, %s5715_s16 }
 0x186   : > { %v3405_v11 = vpop.f32.mrb[3].mxu0  ;;  %3406 = vmatprep.subr.mxu1 %v681_v10 }
 0x187   : > { %3407 = vmatpush3.msra.mxu1 %v681_v10 }
 0x188   : > { %3409 = vmatmul.mubr.msk.f32.vlgmr.msra.gmra.mrb[2].mxu1 %vm427_vm1, %v403_v55 }
 0x189   : > { %v859_v17 = vpop.f32.mrb[4].mxu0  ;;  %3418 = vmatprep.mubr.msk.f32.mxu1 %vm427_vm1, %v4138_v25  ;;  %2518 = vrot.lane.b32.xlu0 %v2514_v21, %s5715_s16 }
 0x18a   : > { %v3415_v20 = vpop.f32.mrb[5].mxu0  ;;  %3416 = vmatprep.subr.mxu1 %v859_v17 }
 0x18b   : > { %3417 = vmatpush3.msra.mxu1 %v859_v17 }
 0x18c   : > { %3419 = vmatmul.mubr.msk.f32.vlgmr.msra.gmra.mrb[4].mxu1 %vm427_vm1, %v403_v55 }
 0x18d   : > { %v1037_v23 = vpop.f32.mrb[6].mxu0  ;;  %3428 = vmatprep.mubr.msk.f32.mxu1 %vm427_vm1, %v4138_v25  ;;  %v2403_v25 = vmul.f32 %v2401_v38, %v2345_v12  ;;  %2532 = vrot.lane.b32.xlu0 %v2528_v27, %s5713_s17 }
 0x18e   : > { %v3425_v26 = vpop.f32.mrb[7].mxu0  ;;  %3426 = vmatprep.subr.mxu1 %v1037_v23 }
 0x18f   : > { %3427 = vmatpush3.msra.mxu1 %v1037_v23  ;;  %2408 = vrot.lane.b32.xlu1 %v2403_v25, %s5713_s17 }
 0x190   : > { %3429 = vmatmul.mubr.msk.f32.vlgmr.msra.gmra.mrb[6].mxu1 %vm427_vm1, %v403_v55 }
 0x191   : > { %2546 = vrot.lane.b32.xlu0 %v2542_v30, %s5713_s17 }
 0x193   : > { %2436 = vrot.lane.b32.xlu1 %v2431_v35, %s5715_s16 }
 0x195   : > { %2574 = vrot.lane.b32.xlu0 %v2570_v36, %s5715_s16 }
 0x197   : > { %2450 = vrot.lane.b32.xlu1 %v2445_v39, %s5715_s16 }
 0x199   : > { %2588 = vrot.lane.b32.xlu0 %v2584_v1, %s5715_s16 }
 0x19b   : > { %2464 = vrot.lane.b32.xlu1 %v2459_v41, %s5713_s17 }
 0x19d   : > { %2602 = vrot.lane.b32.xlu0 %v2598_v42, %s5713_s17 }
 0x19f   : > { %2478 = vrot.lane.b32.xlu1 %v2473_v46, %s5713_s17 }
 0x1a1   : > { %2616 = vrot.lane.b32.xlu0 %v2612_v51, %s5713_s17 }
 0x1a3   : > { %2506 = vrot.lane.b32.xlu1 %v2501_v52, %s5715_s16 }
 0x1a7   : > { %2520 = vrot.lane.b32.xlu1 %v2515_v53, %s5715_s16  ;;  %v4389_v62 = vpop.permute.xlu0 %2154 }
 0x1a8   : > { %v4393_v38 = vpop.permute.xlu1 %2156 }
 0x1ab   : > { %2534 = vrot.lane.b32.xlu1 %v2529_v54, %s5713_s17  ;;  %v4391_v63 = vpop.permute.xlu0 %2168 }
 0x1ac   : > { %v4397_v44 = vpop.permute.xlu1 %2170 }
 0x1af   : > { %2548 = vrot.lane.b32.xlu1 %v2543_v56, %s5713_s17  ;;  %v4395_v43 = vpop.permute.xlu0 %2182 }
 0x1b0   : > { %v4401_v3 = vpop.permute.xlu1 %2184 }
 0x1b3   : > { %2576 = vrot.lane.b32.xlu1 %v2571_v58, %s5715_s16  ;;  %v4399_v2 = vpop.permute.xlu0 %2196 }
 0x1b4   : > { %v4405_v48 = vpop.permute.xlu1 %2198 }
 0x1b7   : > { %2590 = vrot.lane.b32.xlu1 %v2585_v59, %s5715_s16  ;;  %v4403_v4 = vpop.permute.xlu0 %2224 }
 0x1b8   : > { %v4409_v6 = vpop.permute.xlu1 %2226 }
 0x1bb   : > { %2604 = vrot.lane.b32.xlu1 %v2599_v61, %s5713_s17  ;;  %v4407_v5 = vpop.permute.xlu0 %2238 }
 0x1bc   : > { %v4413_v8 = vpop.permute.xlu1 %2240 }
 0x1bf   : > { %v4411_v7 = vpop.permute.xlu0 %2252 }
 0x1c0   : > { %v4417_v50 = vpop.permute.xlu1 %2254 }
 0x1c3   : > { %v4415_v49 = vpop.permute.xlu0 %2266 }
 0x1c4   : > { %5763 = vst [vmem:[#allocation22_spill] sm:$0xff] %v4415_v49  ;;  %v4422_v10 = vpop.permute.xlu1 %2268 }
 0x1c7   : > { %v4419_v55 = vpop.permute.xlu0 %2294 }
 0x1c8   : > { %5764 = vst [vmem:[#allocation23_spill] sm:$0xff] %v4419_v55  ;;  %v4428_v15 = vpop.permute.xlu1 %2296  ;;  %v2093_v55 = vstv %s4924_s6  ;;  %s5124_s6 = sld [smem:[#allocation12 + $0xbb]] }
 0x1cb   : > { %v4424_v12 = vpop.permute.xlu0 %2308 }
 0x1cc   : > { %5765 = vst [vmem:[#allocation24_spill] sm:$0xff] %v4424_v12  ;;  %v4436_v20 = vpop.permute.xlu1 %2310 }
 0x1cd   : > { %5767 = vst [vmem:[#allocation26_spill] sm:$0xff] %v4436_v20 }
 0x1cf   : > { %v4432_v17 = vpop.permute.xlu0 %2322 }
 0x1d0   : > { %5766 = vst [vmem:[#allocation25_spill] sm:$0xff] %v4432_v17  ;;  %v4441_v22 = vpop.permute.xlu1 %2324 }
 0x1d1   : > { %5769 = vst [vmem:[#allocation28_spill] sm:$0xff] %v4441_v22  ;;  %v5727_v22 = vstv %s4916_s5 }
 0x1d3   : > { %v4438_v21 = vpop.permute.xlu0 %2336 }
 0x1d4   : > { %5768 = vst [vmem:[#allocation27_spill] sm:$0xff] %v4438_v21  ;;  %v4445_v24 = vpop.permute.xlu1 %2338 }
 0x1d5   : > { %5771 = vst [vmem:[#allocation30_spill] sm:$0xff] %v4445_v24 }
 0x1d7   : > { %v4443_v23 = vpop.permute.xlu0 %2364 }
 0x1d8   : > { %5770 = vst [vmem:[#allocation29_spill] sm:$0xff] %v4443_v23  ;;  %v4449_v26 = vpop.permute.xlu1 %2366 }
 0x1d9   : > { %5773 = vst [vmem:[#allocation32_spill] sm:$0xff] %v4449_v26 }
 0x1db   : > { %v4447_v0 = vpop.permute.xlu0 %2378 }
 0x1dc   : > { %5772 = vst [vmem:[#allocation31_spill] sm:$0xff] %v4447_v0  ;;  %v4453_v28 = vpop.permute.xlu1 %2380 }
 0x1dd   : > { %5775 = vst [vmem:[#allocation34_spill] sm:$0xff] %v4453_v28 }
 0x1df   : > { %v4451_v27 = vpop.permute.xlu0 %2392 }
 0x1e0   : > { %5774 = vst [vmem:[#allocation33_spill] sm:$0xff] %v4451_v27  ;;  %v4457_v25 = vpop.permute.xlu1 %2394 }
 0x1e1   : > { %5777 = vst [vmem:[#allocation36_spill] sm:$0xff] %v4457_v25 }
 0x1e3   : > { %v4455_v29 = vpop.permute.xlu0 %2406 }
 0x1e4   : > { %5776 = vst [vmem:[#allocation35_spill] sm:$0xff] %v4455_v29 }
 0x1e7   : > { %v4459_v30 = vpop.permute.xlu0 %2434 }
 0x1e8   : > { %5778 = vst [vmem:[#allocation37_spill] sm:$0xff] %v4459_v30 }
 0x1eb   : > { %v4463_v32 = vpop.permute.xlu0 %2448 }
 0x1ec   : > { %5780 = vst [vmem:[#allocation39_spill] sm:$0xff] %v4463_v32 }
 0x1ef   : > { %v4467_v34 = vpop.permute.xlu0 %2462 }
 0x1f0   : > { %5782 = vst [vmem:[#allocation41_spill] sm:$0xff] %v4467_v34 }
 0x1f3   : > { %v4471_v36 = vpop.permute.xlu0 %2476 }
 0x1f4   : > { %5784 = vst [vmem:[#allocation43_spill] sm:$0xff] %v4471_v36 }
 0x1f7   : > { %v4475_v39 = vpop.permute.xlu0 %2504 }
 0x1f8   : > { %5786 = vst [vmem:[#allocation45_spill] sm:$0xff] %v4475_v39 }
 0x1fb   : > { %v4479_v40 = vpop.permute.xlu0 %2518 }
 0x1fc   : > { %5788 = vst [vmem:[#allocation47_spill] sm:$0xff] %v4479_v40 }
 0x1ff   : > { %v4483_v42 = vpop.permute.xlu0 %2532 }
 0x200   : > { %5790 = vst [vmem:[#allocation49_spill] sm:$0xff] %v4483_v42 }
 0x201   : > { %v4461_v31 = vpop.permute.xlu1 %2408 }
 0x202   : > { %5779 = vst [vmem:[#allocation38_spill] sm:$0xff] %v4461_v31 }
 0x203   : > { %v4487_v47 = vpop.permute.xlu0 %2546 }
 0x204   : > { %5792 = vst [vmem:[#allocation51_spill] sm:$0xff] %v4487_v47  ;;  %v1337_v47 = vstv %s4529_s18  ;;  %s4640_s18 = sld [smem:[#allocation12 + $0x8b]] }
 0x205   : > { %v4465_v33 = vpop.permute.xlu1 %2436 }
 0x206   : > { %5781 = vst [vmem:[#allocation40_spill] sm:$0xff] %v4465_v33 }
 0x207   : > { %v4491_v52 = vpop.permute.xlu0 %2574 }
 0x208   : > { %5794 = vst [vmem:[#allocation53_spill] sm:$0xff] %v4491_v52  ;;  %v1449_v52 = vstv %s4540_s3  ;;  %s4648_s3 = sld [smem:[#allocation12 + $0x90]] }
 0x209   : > { %v4469_v35 = vpop.permute.xlu1 %2450 }
 0x20a   : > { %5783 = vst [vmem:[#allocation42_spill] sm:$0xff] %v4469_v35 }
 0x20b   : > { %v4495_v54 = vpop.permute.xlu0 %2588 }
 0x20c   : > { %5796 = vst [vmem:[#allocation55_spill] sm:$0xff] %v4495_v54 }
 0x20d   : > { %v4473_v37 = vpop.permute.xlu1 %2464 }
 0x20e   : > { %5785 = vst [vmem:[#allocation44_spill] sm:$0xff] %v4473_v37  ;;  %v1673_v39 = vstv %s4648_s3  ;;  %s4771_s3 = sld [smem:[#allocation12 + $0x9a]] }
 0x20f   : > { %v4499_v57 = vpop.permute.xlu0 %2602 }
 0x210   : > { %5798 = vst [vmem:[#allocation57_spill] sm:$0xff] %v4499_v57  ;;  %v1323_v57 = vstv %s4519_s2  ;;  %s4630_s2 = sld [smem:[#allocation12 + $0xb]] }
 0x211   : > { %v4477_v1 = vpop.permute.xlu1 %2478 }
 0x212   : > { %5787 = vst [vmem:[#allocation46_spill] sm:$0xff] %v4477_v1 }
 0x213   : > { %v4503_v59 = vpop.permute.xlu0 %2616 }
 0x214   : > { %5800 = vst [vmem:[#allocation59_spill] sm:$0xff] %v4503_v59 }
 0x215   : > { %v4481_v41 = vpop.permute.xlu1 %2506 }
 0x216   : > { %5789 = vst [vmem:[#allocation48_spill] sm:$0xff] %v4481_v41 }
 0x219   : > { %v4485_v46 = vpop.permute.xlu1 %2520 }
 0x21a   : > { %5791 = vst [vmem:[#allocation50_spill] sm:$0xff] %v4485_v46  ;;  %v1477_v46 = vstv %s4562_s15  ;;  %s4693_s15 = sld [smem:[#allocation12 + $0x16]] }
 0x21d   : > { %v4489_v51 = vpop.permute.xlu1 %2534 }
 0x21e   : > { %5793 = vst [vmem:[#allocation52_spill] sm:$0xff] %v4489_v51  ;;  %v1491_v51 = vstv %s4571_s12  ;;  %s4701_s12 = sld [smem:[#allocation12 + $0x96]] }
 0x221   : > { %v4493_v53 = vpop.permute.xlu1 %2548 }
 0x222   : > { %5795 = vst [vmem:[#allocation54_spill] sm:$0xff] %v4493_v53 }
 0x225   : > { %v4497_v56 = vpop.permute.xlu1 %2576 }
 0x226   : > { %5797 = vst [vmem:[#allocation56_spill] sm:$0xff] %v4497_v56  ;;  %v1351_v56 = vstv %s4542_s21  ;;  %s4658_s21 = sld [smem:[#allocation12 + $0x11]] }
 0x229   : > { %v4501_v58 = vpop.permute.xlu1 %2590 }
 0x22a   : > { %5799 = vst [vmem:[#allocation58_spill] sm:$0xff] %v4501_v58  ;;  %v1407_v58 = vstv %s4517_s11  ;;  %s4628_s11 = sld [smem:[#allocation12 + $0x8e]] }
 0x22c   : > { %v1687_v1 = vstv %s4658_s21  ;;  %s4775_s21 = sld [smem:[#allocation12]] }
 0x22d   : > { %v4507_v61 = vpop.permute.xlu1 %2604 }
 0x22e   : > { %5801 = vst [vmem:[#allocation60_spill] sm:$0xff] %v4507_v61  ;;  %v1421_v61 = vstv %s4527_s19  ;;  %s4638_s19 = sld [smem:[#allocation12 + $0x10]] }
 0x232   : > { %v5707_v29 = vstv %s4775_s21 }
 0x257   : > { %v3400_v60 = vpop.f32.mrb[0].mxu1 }
 0x258   : > { %v573_v9 = vpop.f32.mrb[1].mxu1  ;;  %586 = vrot.lane.b32.xlu0 %v3400_v60, %s3731_s8 }
 0x25b   : > { %v3410_v11 = vpop.f32.mrb[2].mxu1 }
 0x25c   : > { %584 = vrot.lane.b32.xlu0 %v573_v9, %s3731_s8  ;;  %764 = vrot.lane.b32.xlu1 %v3410_v11, %s3731_s8  ;;  %v751_v13 = vpop.f32.mrb[3].mxu1 }
 0x25f   : > { %v3420_v14 = vpop.f32.mrb[4].mxu1 }
 0x260   : > { %762 = vrot.lane.b32.xlu1 %v751_v13, %s3731_s8  ;;  %v929_v16 = vpop.f32.mrb[5].mxu1 }
 0x261   : > { %940 = vrot.lane.b32.xlu0 %v929_v16, %s3731_s8 }
 0x263   : > { %v3430_v18 = vpop.f32.mrb[6].mxu1 }
 0x264   : > { %942 = vrot.lane.b32.xlu1 %v3420_v14, %s3731_s8  ;;  %v1107_v19 = vpop.f32.mrb[7].mxu1 }
 0x265   : > { %1118 = vrot.lane.b32.xlu0 %v1107_v19, %s3731_s8 }
 0x268   : > { %1120 = vrot.lane.b32.xlu1 %v3430_v18, %s3731_s8  ;;  %s4505_s8 = sld [smem:[#allocation12 + $0x4]] }
 0x26e   : > { %v1379_v13 = vstv %s4505_s8  ;;  %s4607_s8 = sld [smem:[#allocation12 + $0xa]] }
 0x2ca   : > { %v587_v60 = vpop.permute.xlu0 %586 }
 0x2cb   : > { %592 = vst.msk [vmem:[#allocation2 + $0x9] sm:$0xff] %vm590_vm4, %v587_v60  ;;  %v1393_v60 = vstv %s4510_s23  ;;  %s4616_s23 = sld [smem:[#allocation12 + $0xe]] }
 0x2ce   : > { %v585_v9 = vpop.permute.xlu0 %584  ;;  %v765_v11 = vpop.permute.xlu1 %764 }
 0x2cf   : > { %591 = vst.msk [vmem:[#allocation2 + $0x1] sm:$0xff] %vm590_vm4, %v585_v9  ;;  %770 = vst.msk [vmem:[#allocation2 + $0x21] sm:$0xff] %vm590_vm4, %v765_v11 }
 0x2d2   : > { %v4521_v14 = vld [vmem:[#allocation2 + $0x9] sm:$0xff]  ;;  %v763_v16 = vpop.permute.xlu1 %762 }
 0x2d3   : > { %v1381_v18 = vmul.f32 %v1379_v13, %v4521_v14  ;;  %769 = vst.msk [vmem:[#allocation2 + $0x19] sm:$0xff] %vm590_vm4, %v763_v16  ;;  %v941_v19 = vpop.permute.xlu0 %940  ;;  %v1395_v59 = vmul.f32 %v1393_v60, %v4521_v14 }
 0x2d4   : > { %947 = vst.msk [vmem:[#allocation2 + $0x31] sm:$0xff] %vm590_vm4, %v941_v19  ;;  %v1409_v19 = vmul.f32 %v1407_v58, %v4521_v14 }
 0x2d5   : > { %1386 = vrot.lane.b32.xlu1 %v1381_v18, %s5715_s16 }
 0x2d6   : > { %v4533_v9 = vld [vmem:[#allocation2] sm:$0xff]  ;;  %v943_v11 = vpop.permute.xlu1 %942  ;;  %v4587_v36 = vld [vmem:[#allocation2 + $0x8] sm:$0xff] }
 0x2d7   : > { %v1310_v16 = vmul.f32 %v1309_v45, %v4533_v9  ;;  %948 = vst.msk [vmem:[#allocation2 + $0x39] sm:$0xff] %vm590_vm4, %v943_v11  ;;  %v1119_v54 = vpop.permute.xlu0 %1118  ;;  %v1324_v11 = vmul.f32 %v1323_v57, %v4533_v9  ;;  %v4569_v53 = vld [vmem:[#allocation2 + $0x1] sm:$0xff]  ;;  %v1298_v33 = vmul.f32 %v5707_v29, %v4533_v9 }
 0x2d8   : > { %1125 = vst.msk [vmem:[#allocation2 + $0x49] sm:$0xff] %vm590_vm4, %v1119_v54  ;;  %v1423_v54 = vmul.f32 %v1421_v61, %v4521_v14  ;;  %v1394_v42 = vmul.f32 %v1393_v60, %v4569_v53  ;;  %v4593_v60 = vld [vmem:[#allocation2 + $0x2] sm:$0xff] }
 0x2d9   : > { %1400 = vrot.lane.b32.xlu1 %v1395_v59, %s5715_s16  ;;  %1314 = vrot.lane.b32.xlu0 %v1310_v16, %s5715_s16  ;;  %v1338_v59 = vmul.f32 %v1337_v47, %v4533_v9  ;;  %v4558_v16 = vld [vmem:[#allocation2 + $0xa] sm:$0xff] }
 0x2da   : > { %v1121_v18 = vpop.permute.xlu1 %1120 }
 0x2db   : > { %1126 = vst.msk [vmem:[#allocation2 + $0x51] sm:$0xff] %vm590_vm4, %v1121_v18  ;;  %v1451_v18 = vmul.f32 %v1449_v52, %v4558_v16 }
 0x2dd   : > { %1414 = vrot.lane.b32.xlu1 %v1409_v19, %s5713_s17  ;;  %1328 = vrot.lane.b32.xlu0 %v1324_v11, %s5715_s16  ;;  %v1352_v19 = vmul.f32 %v1351_v56, %v4533_v9  ;;  %v1463_v11 = vstv %s4552_s20  ;;  %s4667_s20 = sld [smem:[#allocation12 + $0x91]] }
 0x2de   : > { %v1465_v40 = vmul.f32 %v1463_v11, %v4558_v16  ;;  %v4807_v31 = vld [vmem:[#allocation2 + $0x38] sm:$0xff] }
 0x2df   : > { %v4825_v21 = vld [vmem:[#allocation2 + $0x32] sm:$0xff] }
 0x2e1   : > { %1428 = vrot.lane.b32.xlu1 %v1423_v54, %s5713_s17  ;;  %1342 = vrot.lane.b32.xlu0 %v1338_v59, %s5713_s17  ;;  %v1380_v54 = vmul.f32 %v1379_v13, %v4569_v53  ;;  %v1479_v59 = vmul.f32 %v1477_v46, %v4558_v16  ;;  %v1422_v13 = vmul.f32 %v1421_v61, %v4569_v53 }
 0x2e2   : > { %v1464_v61 = vmul.f32 %v1463_v11, %v4593_v60  ;;  %v1492_v11 = vmul.f32 %v1491_v51, %v4593_v60 }
 0x2e3   : > { %v1701_v35 = vstv %s4667_s20  ;;  %s4784_s20 = sld [smem:[#allocation12 + $0x80]] }
 0x2e5   : > { %1456 = vrot.lane.b32.xlu1 %v1451_v18, %s5715_s16  ;;  %1356 = vrot.lane.b32.xlu0 %v1352_v19, %s5713_s17  ;;  %v1493_v18 = vmul.f32 %v1491_v51, %v4558_v16  ;;  %v1408_v19 = vmul.f32 %v1407_v58, %v4569_v53  ;;  %v1450_v58 = vmul.f32 %v1449_v52, %v4593_v60  ;;  %v1589_v52 = vstv %s4597_s29  ;;  %s4703_s29 = sld [smem:[#allocation12 + $0x13]] }
 0x2e6   : > { %v1533_v51 = vstv %s4618_s0  ;;  %s4726_s0 = sld [smem:[#allocation12 + $0x14]] }
 0x2e9   : > { %1470 = vrot.lane.b32.xlu1 %v1465_v40, %s5715_s16  ;;  %1384 = vrot.lane.b32.xlu0 %v1380_v54, %s5715_s16  ;;  %v1311_v40 = vmul.f32 %v1309_v45, %v4587_v36  ;;  %v1339_v45 = vmul.f32 %v1337_v47, %v4587_v36  ;;  %v1353_v54 = vmul.f32 %v1351_v56, %v4587_v36  ;;  %v1519_v56 = vstv %s4607_s8  ;;  %s4714_s8 = sld [smem:[#allocation12 + $0x93]] }
 0x2ed   : > { %1484 = vrot.lane.b32.xlu1 %v1479_v59, %s5713_s17  ;;  %1398 = vrot.lane.b32.xlu0 %v1394_v42, %s5715_s16  ;;  %v1325_v42 = vmul.f32 %v1323_v57, %v4587_v36  ;;  %v4611_v57 = vld [vmem:[#allocation2 + $0x21] sm:$0xff]  ;;  %v1478_v59 = vmul.f32 %v1477_v46, %v4593_v60 }
 0x2ee   : > { %v1591_v47 = vmul.f32 %v1589_v52, %v4611_v57 }
 0x2ef   : > { %v5803_v26 = vstv %s4714_s8 }
 0x2f1   : > { %1498 = vrot.lane.b32.xlu1 %v1493_v18, %s5713_s17  ;;  %1412 = vrot.lane.b32.xlu0 %v1408_v19, %s5713_s17  ;;  %v1603_v18 = vstv %s4605_s9  ;;  %v4625_v19 = vld [vmem:[#allocation2 + $0x18] sm:$0xff]  ;;  %s4712_s9 = sld [smem:[#allocation12 + $0x17]] }
 0x2f2   : > { %v1605_v46 = vmul.f32 %v1603_v18, %v4611_v57 }
 0x2f5   : > { %1316 = vrot.lane.b32.xlu1 %v1311_v40, %s5715_s16  ;;  %1426 = vrot.lane.b32.xlu0 %v1422_v13, %s5713_s17  ;;  %v1520_v40 = vmul.f32 %v1519_v56, %v4625_v19  ;;  %v1617_v13 = vstv %s4616_s23  ;;  %s4724_s23 = sld [smem:[#allocation12 + $0x97]] }
 0x2f9   : > { %1330 = vrot.lane.b32.xlu1 %v1325_v42, %s5715_s16  ;;  %1454 = vrot.lane.b32.xlu0 %v1450_v58, %s5715_s16  ;;  %v1619_v42 = vmul.f32 %v1617_v13, %v4611_v57  ;;  %v1534_v58 = vmul.f32 %v1533_v51, %v4625_v19 }
 0x2fd   : > { %1344 = vrot.lane.b32.xlu1 %v1339_v45, %s5713_s17  ;;  %1468 = vrot.lane.b32.xlu0 %v1464_v61, %s5715_s16  ;;  %v1631_v45 = vstv %s4628_s11  ;;  %v1547_v61 = vstv %s4630_s2  ;;  %s4736_s11 = sld [smem:[#allocation12 + $0x19]]  ;;  %s4738_s2 = sld [smem:[#allocation12 + $0x94]] }
 0x301   : > { %1358 = vrot.lane.b32.xlu1 %v1353_v54, %s5713_s17  ;;  %1482 = vrot.lane.b32.xlu0 %v1478_v59, %s5713_s17  ;;  %v1633_v54 = vmul.f32 %v1631_v45, %v4611_v57  ;;  %v1548_v59 = vmul.f32 %v1547_v61, %v4625_v19 }
 0x305   : > { %1596 = vrot.lane.b32.xlu1 %v1591_v47, %s5715_s16  ;;  %1496 = vrot.lane.b32.xlu0 %v1492_v11, %s5713_s17  ;;  %v4654_v47 = vld [vmem:[#allocation2 + $0x22] sm:$0xff]  ;;  %v1659_v11 = vstv %s4638_s19  ;;  %s4748_s19 = sld [smem:[#allocation12 + $0x99]] }
 0x306   : > { %v1689_v32 = vmul.f32 %v1687_v1, %v4654_v47 }
 0x309   : > { %1610 = vrot.lane.b32.xlu1 %v1605_v46, %s5715_s16  ;;  %1524 = vrot.lane.b32.xlu0 %v1520_v40, %s5715_s16  ;;  %v1561_v46 = vstv %s4640_s18  ;;  %v1661_v40 = vmul.f32 %v1659_v11, %v4654_v47  ;;  %s4760_s18 = sld [smem:[#allocation12 + $0x1a]] }
 0x30d   : > { %1624 = vrot.lane.b32.xlu1 %v1619_v42, %s5713_s17  ;;  %1538 = vrot.lane.b32.xlu0 %v1534_v58, %s5715_s16  ;;  %v1562_v42 = vmul.f32 %v1561_v46, %v4625_v19  ;;  %v4664_v58 = vld [vmem:[#allocation2 + $0x19] sm:$0xff] }
 0x30e   : > { %v1590_v41 = vmul.f32 %v1589_v52, %v4664_v58  ;;  %v1618_v52 = vmul.f32 %v1617_v13, %v4664_v58 }
 0x311   : > { %1638 = vrot.lane.b32.xlu1 %v1633_v54, %s5713_s17  ;;  %1552 = vrot.lane.b32.xlu0 %v1548_v59, %s5713_s17  ;;  %v1675_v54 = vmul.f32 %v1673_v39, %v4654_v47  ;;  %v1604_v59 = vmul.f32 %v1603_v18, %v4664_v58  ;;  %v1632_v18 = vmul.f32 %v1631_v45, %v4664_v58 }
 0x315   : > { %1666 = vrot.lane.b32.xlu1 %v1661_v40, %s5715_s16  ;;  %1566 = vrot.lane.b32.xlu0 %v1562_v42, %s5713_s17  ;;  %v1703_v40 = vmul.f32 %v1701_v35, %v4654_v47  ;;  %v4683_v42 = vld [vmem:[#allocation2 + $0x20] sm:$0xff] }
 0x319   : > { %1680 = vrot.lane.b32.xlu1 %v1675_v54, %s5715_s16  ;;  %1594 = vrot.lane.b32.xlu0 %v1590_v41, %s5715_s16  ;;  %v1521_v41 = vmul.f32 %v1519_v56, %v4683_v42  ;;  %v4689_v54 = vld [vmem:[#allocation2 + $0x1a] sm:$0xff]  ;;  %v1549_v56 = vmul.f32 %v1547_v61, %v4683_v42 }
 0x31a   : > { %v1660_v13 = vmul.f32 %v1659_v11, %v4689_v54  ;;  %v1674_v45 = vmul.f32 %v1673_v39, %v4689_v54  ;;  %v1799_v11 = vstv %s4693_s15  ;;  %v1688_v61 = vmul.f32 %v1687_v1, %v4689_v54  ;;  %s4790_s15 = sld [smem:[#allocation12 + $0x3]] }
 0x31d   : > { %1694 = vrot.lane.b32.xlu1 %v1689_v32, %s5713_s17  ;;  %1608 = vrot.lane.b32.xlu0 %v1604_v59, %s5715_s16  ;;  %v1535_v32 = vmul.f32 %v1533_v51, %v4683_v42  ;;  %v4707_v51 = vld [vmem:[#allocation2 + $0x39] sm:$0xff]  ;;  %v1563_v59 = vmul.f32 %v1561_v46, %v4683_v42  ;;  %v4721_v46 = vld [vmem:[#allocation2 + $0x30] sm:$0xff] }
 0x31e   : > { %v1801_v39 = vmul.f32 %v1799_v11, %v4707_v51 }
 0x321   : > { %1708 = vrot.lane.b32.xlu1 %v1703_v40, %s5713_s17  ;;  %1622 = vrot.lane.b32.xlu0 %v1618_v52, %s5713_s17  ;;  %v1702_v40 = vmul.f32 %v1701_v35, %v4689_v54  ;;  %v1813_v52 = vstv %s4701_s12  ;;  %s4802_s12 = sld [smem:[#allocation12 + $0x83]] }
 0x322   : > { %v1815_v1 = vmul.f32 %v1813_v52, %v4707_v51 }
 0x325   : > { %1526 = vrot.lane.b32.xlu1 %v1521_v41, %s5715_s16  ;;  %1636 = vrot.lane.b32.xlu0 %v1632_v18, %s5713_s17  ;;  %v5703_v41 = vstv %s4703_s29  ;;  %v1827_v18 = vstv %s4712_s9  ;;  %s4849_s9 = sld [smem:[#allocation12 + $0x6]] }
 0x326   : > { %v1730_v35 = vmul.f32 %v5703_v41, %v4721_v46  ;;  %v4769_v41 = vld [vmem:[#allocation2 + $0x31] sm:$0xff] }
 0x327   : > { %v1814_v37 = vmul.f32 %v1813_v52, %v4769_v41  ;;  %v1828_v52 = vmul.f32 %v1827_v18, %v4769_v41  ;;  %v5812_v49 = vstv %s4802_s12 }
 0x329   : > { %1540 = vrot.lane.b32.xlu1 %v1535_v32, %s5715_s16  ;;  %1664 = vrot.lane.b32.xlu0 %v1660_v13, %s5715_s16  ;;  %v5702_v32 = vstv %s4714_s8  ;;  %v1829_v13 = vmul.f32 %v1827_v18, %v4707_v51  ;;  %v5802_v18 = vstv %s4703_s29  ;;  %s4839_s29 = sld [smem:[#allocation12 + $0x1f]] }
 0x32a   : > { %v1731_v27 = vmul.f32 %v5802_v18, %v4807_v31  ;;  %v5709_v18 = vstv %s4802_s12  ;;  %s4851_s8 = sld [smem:[#allocation12 + $0x9f]] }
 0x32b   : > { %s5081_s12 = sld [smem:[#allocation12 + $0x8f]] }
 0x32d   : > { %1554 = vrot.lane.b32.xlu1 %v1549_v56, %s5713_s17  ;;  %1678 = vrot.lane.b32.xlu0 %v1674_v45, %s5715_s16  ;;  %v1744_v56 = vmul.f32 %v5702_v32, %v4721_v46  ;;  %v1841_v45 = vstv %s4724_s23  ;;  %v1883_v32 = vstv %s4748_s19  ;;  %s4853_s23 = sld [smem:[#allocation12 + $0x1c]] }
 0x32e   : > { %v1842_v29 = vmul.f32 %v1841_v45, %v4769_v41  ;;  %s4870_s19 = sld [smem:[#allocation12 + $0x9c]] }
 0x331   : > { %1568 = vrot.lane.b32.xlu1 %v1563_v59, %s5713_s17  ;;  %1692 = vrot.lane.b32.xlu0 %v1688_v61, %s5713_s17  ;;  %v5704_v59 = vstv %s4726_s0  ;;  %v1843_v61 = vmul.f32 %v1841_v45, %v4707_v51 }
 0x335   : > { %1806 = vrot.lane.b32.xlu1 %v1801_v39, %s5715_s16  ;;  %1706 = vrot.lane.b32.xlu0 %v1702_v40, %s5713_s17  ;;  %v1758_v39 = vmul.f32 %v5704_v59, %v4721_v46  ;;  %v4756_v40 = vld [vmem:[#allocation2 + $0x3a] sm:$0xff]  ;;  %v1800_v59 = vmul.f32 %v1799_v11, %v4769_v41  ;;  %v5706_v11 = vstv %s4771_s3 }
 0x336   : > { %v1913_v30 = vmul.f32 %v5706_v11, %v4756_v40  ;;  %v5711_v11 = vstv %s4790_s15 }
 0x339   : > { %1820 = vrot.lane.b32.xlu1 %v1815_v1, %s5715_s16  ;;  %1734 = vrot.lane.b32.xlu0 %v1730_v35, %s5715_s16  ;;  %v1869_v1 = vstv %s4736_s11  ;;  %v5705_v35 = vstv %s4738_s2  ;;  %s4868_s11 = sld [smem:[#allocation12 + $0x20]] }
 0x33d   : > { %1834 = vrot.lane.b32.xlu1 %v1829_v13, %s5713_s17  ;;  %1748 = vrot.lane.b32.xlu0 %v1744_v56, %s5715_s16  ;;  %v1871_v13 = vmul.f32 %v1869_v1, %v4756_v40  ;;  %v1772_v56 = vmul.f32 %v5705_v35, %v4721_v46  ;;  %v1897_v35 = vstv %s4760_s18  ;;  %s4892_s18 = sld [smem:[#allocation12 + $0x1d]] }
 0x33e   : > { %v1899_v34 = vmul.f32 %v1897_v35, %v4756_v40 }
 0x33f   : > { %v5718_v12 = vstv %s4868_s11 }
 0x341   : > { %1848 = vrot.lane.b32.xlu1 %v1843_v61, %s5713_s17  ;;  %1762 = vrot.lane.b32.xlu0 %v1758_v39, %s5713_s17  ;;  %v1885_v39 = vmul.f32 %v1883_v32, %v4756_v40 }
 0x345   : > { %1876 = vrot.lane.b32.xlu1 %v1871_v13, %s5715_s16  ;;  %1776 = vrot.lane.b32.xlu0 %v1772_v56, %s5713_s17 }
 0x347   : > { %v4777_v61 = vpop.permute.xlu1 %1386 }
 0x349   : > { %1890 = vrot.lane.b32.xlu1 %v1885_v39, %s5715_s16  ;;  %1804 = vrot.lane.b32.xlu0 %v1800_v59, %s5715_s16 }
 0x34b   : > { %v4786_v13 = vpop.permute.xlu1 %1400  ;;  %v1315_v56 = vpop.permute.xlu0 %1314 }
 0x34d   : > { %1904 = vrot.lane.b32.xlu1 %v1899_v34, %s5713_s17  ;;  %1818 = vrot.lane.b32.xlu0 %v1814_v37, %s5715_s16  ;;  %v5708_v34 = vstv %s4784_s20  ;;  %v1320_v37 = vadd.f32 %v1315_v56, %v1298_v33 }
 0x34e   : > { %v1304_v25 = vmul.f32 %v5708_v34, %v4533_v9  ;;  %v1745_v9 = vmul.f32 %v5803_v26, %v4807_v31  ;;  %v1870_v34 = vmul.f32 %v1869_v1, %v4825_v21  ;;  %v5804_v26 = vstv %s4726_s0  ;;  %s4863_s0 = sld [smem:[#allocation12 + $0x86]] }
 0x34f   : > { %v4796_v59 = vpop.permute.xlu1 %1414  ;;  %v1329_v39 = vpop.permute.xlu0 %1328  ;;  %v1884_v1 = vmul.f32 %v1883_v32, %v4825_v21  ;;  %v1898_v32 = vmul.f32 %v1897_v35, %v4825_v21 }
 0x350   : > { %v1334_v33 = vadd.f32 %v1329_v39, %v1304_v25  ;;  %v1759_v39 = vmul.f32 %v5804_v26, %v4807_v31  ;;  %v5806_v26 = vstv %s4771_s3  ;;  %s4908_s3 = sld [smem:[#allocation12 + $0x22]] }
 0x351   : > { %1918 = vrot.lane.b32.xlu1 %v1913_v30, %s5713_s17  ;;  %1832 = vrot.lane.b32.xlu0 %v1828_v52, %s5713_s17  ;;  %v1368_v30 = vmul.f32 %v5711_v11, %v4569_v53 }
 0x353   : > { %v4812_v0 = vpop.permute.xlu1 %1428  ;;  %v1343_v28 = vpop.permute.xlu0 %1342 }
 0x354   : > { %v1348_v52 = vadd.f32 %v1343_v28, %v1320_v37  ;;  %v1374_v28 = vmul.f32 %v5709_v18, %v4569_v53  ;;  %v5720_v18 = vstv %s4851_s8 }
 0x355   : > { %1736 = vrot.lane.b32.xlu1 %v1731_v27, %s5715_s16  ;;  %1846 = vrot.lane.b32.xlu0 %v1842_v29, %s5713_s17 }
 0x356   : > { %v1370_v56 = vadd.f32 %v1368_v30, %v1348_v52  ;;  %v5805_v30 = vstv %s4738_s2  ;;  %s4890_s2 = sld [smem:[#allocation12 + $0xa0]] }
 0x357   : > { %v4829_v23 = vpop.permute.xlu1 %1456  ;;  %v1357_v45 = vpop.permute.xlu0 %1356  ;;  %v1773_v52 = vmul.f32 %v5805_v30, %v4807_v31 }
 0x358   : > { %v1362_v37 = vadd.f32 %v1357_v45, %v1334_v33  ;;  %v4865_v33 = vld [vmem:[#allocation2 + $0x51] sm:$0xff]  ;;  %v5710_v45 = vstv %s4839_s29 }
 0x359   : > { %1750 = vrot.lane.b32.xlu1 %v1745_v9, %s5715_s16  ;;  %1874 = vrot.lane.b32.xlu0 %v1870_v34, %s5715_s16  ;;  %v2011_v35 = vmul.f32 %v5710_v45, %v4865_v33  ;;  %v2025_v45 = vmul.f32 %v5720_v18, %v4865_v33 }
 0x35a   : > { %v1376_v27 = vadd.f32 %v1374_v28, %v1362_v37 }
 0x35b   : > { %v4843_v29 = vpop.permute.xlu1 %1470  ;;  %v1385_v25 = vpop.permute.xlu0 %1384 }
 0x35c   : > { %v1390_v9 = vadd.f32 %v1385_v25, %v1370_v56  ;;  %v5721_v56 = vstv %s4853_s23 }
 0x35d   : > { %1764 = vrot.lane.b32.xlu1 %v1759_v39, %s5713_s17  ;;  %1888 = vrot.lane.b32.xlu0 %v1884_v1, %s5715_s16  ;;  %v1912_v39 = vmul.f32 %v5806_v26, %v4825_v21  ;;  %v5712_v1 = vstv %s4849_s9 }
 0x35e   : > { %v1438_v25 = vmul.f32 %v5712_v1, %v4593_v60  ;;  %v5723_v1 = vstv %s4863_s0 }
 0x35f   : > { %v4857_v53 = vpop.permute.xlu1 %1484  ;;  %v1399_v34 = vpop.permute.xlu0 %1398 }
 0x361   : > { %1778 = vrot.lane.b32.xlu1 %v1773_v52, %s5713_s17  ;;  %1902 = vrot.lane.b32.xlu0 %v1898_v32, %s5713_s17  ;;  %v4884_v52 = vld [vmem:[#allocation2 + $0x48] sm:$0xff]  ;;  %v1404_v32 = vadd.f32 %v1399_v34, %v1376_v27  ;;  %v1444_v27 = vmul.f32 %v5723_v1, %v4593_v60  ;;  %v2039_v60 = vmul.f32 %v5718_v12, %v4865_v33 }
 0x362   : > { %v1940_v11 = vmul.f32 %v5721_v56, %v4884_v52 }
 0x363   : > { %v4874_v28 = vpop.permute.xlu1 %1498  ;;  %v1413_v37 = vpop.permute.xlu0 %1412 }
 0x364   : > { %v1418_v30 = vadd.f32 %v1413_v37, %v1390_v9 }
 0x365   : > { %2016 = vrot.lane.b32.xlu1 %v2011_v35, %s5715_s16  ;;  %1916 = vrot.lane.b32.xlu0 %v1912_v39, %s5713_s17  ;;  %v5719_v35 = vstv %s4870_s19  ;;  %s4910_s17 = sld [smem:[#allocation12 + $0x9d]] }
 0x366   : > { %v1440_v9 = vadd.f32 %v1438_v25, %v1418_v30  ;;  %v1954_v25 = vmul.f32 %v5719_v35, %v4884_v52 }
 0x367   : > { %v1317_v37 = vpop.permute.xlu1 %1316  ;;  %v1427_v26 = vpop.permute.xlu0 %1426 }
 0x368   : > { %v1432_v24 = vadd.f32 %v1427_v26, %v1404_v32  ;;  %v5724_v32 = vstv %s4890_s2 }
 0x369   : > { %2030 = vrot.lane.b32.xlu1 %v2025_v45, %s5715_s16  ;;  %1944 = vrot.lane.b32.xlu0 %v1940_v11, %s5715_s16  ;;  %v5807_v11 = vstv %s4775_s21  ;;  %s5808_s16 = smov 126   ;;  %s4944_s21 = sld [smem:[#allocation12 + $0x23]] }
 0x36a   : > { %v1446_v34 = vadd.f32 %v1444_v27, %v1432_v24  ;;  %v1299_v45 = vmul.f32 %v5807_v11, %v4587_v36  ;;  %v5725_v24 = vstv %s4892_s18  ;;  %v5810_v27 = vstv %s4790_s15  ;;  %s5067_s15 = sld [smem:[#allocation12 + $0xf]] }
 0x36b   : > { %v1331_v39 = vpop.permute.xlu1 %1330  ;;  %v1455_v30 = vpop.permute.xlu0 %1454  ;;  %v1369_v12 = vmul.f32 %v5810_v27, %v4521_v14  ;;  %v2053_v11 = vmul.f32 %v5724_v32, %v4865_v33  ;;  %v1968_v56 = vmul.f32 %v5725_v24, %v4884_v52  ;;  %v5726_v27 = vstv %s4908_s3 }
 0x36c   : > { %v1321_v26 = vadd.f32 %v1317_v37, %v1299_v45  ;;  %v4951_v45 = vld [vmem:[#allocation2 + $0x52] sm:$0xff]  ;;  %v1981_v1 = vstv %s4910_s17  ;;  %v1507_v32 = vstv %s4914_s1  ;;  %v1460_v20 = vadd.f32 %v1455_v30, %v1440_v9  ;;  %s4973_s1 = sld [smem:[#allocation12 + $0xa3]] }
 0x36d   : > { %2044 = vrot.lane.b32.xlu1 %v2039_v60, %s5808_s16  ;;  %1958 = vrot.lane.b32.xlu0 %v1954_v25, %s5809_s10  ;;  %v5811_v60 = vstv %s4784_s20  ;;  %v5813_v30 = vstv %s4849_s9  ;;  %s5018_s20 = sld [smem:[#allocation12 + $0x8c]]  ;;  %s5109_s17 = sld [smem:[#allocation12 + $0x3b]] }
 0x36e   : > { %v1305_v37 = vmul.f32 %v5811_v60, %v4587_v36  ;;  %v1375_v36 = vmul.f32 %v5812_v49, %v4521_v14  ;;  %v2081_v60 = vmul.f32 %v5726_v27, %v4951_v45  ;;  %v1508_v49 = vmul.f32 %v1507_v32, %v4625_v19  ;;  %s5161_s9 = sld [smem:[#allocation12 + $0x3e]] }
 0x36f   : > { %v1345_v35 = vpop.permute.xlu1 %1344  ;;  %v1469_v18 = vpop.permute.xlu0 %1468  ;;  %v1513_v14 = vstv %s4933_s26  ;;  %v2653_v27 = vstv %s4946_s25  ;;  %s4996_s26 = sld [smem:[#allocation12 + $0xc]]  ;;  %s5146_s25 = sld [smem:[#allocation12 + $0xbd]] }
 0x370   : > { %v1349_v25 = vadd.f32 %v1345_v35, %v1321_v26  ;;  %v1335_v24 = vadd.f32 %v1331_v39, %v1305_v37  ;;  %v4970_v39 = vld [vmem:[#allocation2 + $0x91] sm:$0xff] }
 0x371   : > { %2058 = vrot.lane.b32.xlu1 %v2053_v11, %s5808_s16  ;;  %1972 = vrot.lane.b32.xlu0 %v1968_v56, %s5808_s16  ;;  %v1982_v11 = vmul.f32 %v1981_v1, %v4884_v52 }
 0x372   : > { %v1371_v17 = vadd.f32 %v1369_v12, %v1349_v25 }
 0x373   : > { %v1359_v35 = vpop.permute.xlu1 %1358  ;;  %v1483_v26 = vpop.permute.xlu0 %1482 }
 0x374   : > { %v1391_v56 = vadd.f32 %v4777_v61, %v1371_v17  ;;  %v1363_v9 = vadd.f32 %v1359_v35, %v1335_v24  ;;  %v1488_v12 = vadd.f32 %v1483_v26, %v1460_v20  ;;  %v1439_v17 = vmul.f32 %v5813_v30, %v4558_v16 }
 0x375   : > { %2086 = vrot.lane.b32.xlu1 %v2081_v60, %s5809_s10  ;;  %1986 = vrot.lane.b32.xlu0 %v1982_v11, %s5808_s16  ;;  %v1474_v24 = vadd.f32 %v1469_v18, %v1446_v34  ;;  %v2095_v26 = vmul.f32 %v2093_v55, %v4951_v45  ;;  %v2640_v60 = vmul.f32 %v5727_v22, %v4970_v39  ;;  %v2107_v11 = vstv %s4944_s21  ;;  %s5255_s21 = sld [smem:[#allocation12 + $0x43]] }
 0x376   : > { %v1419_v61 = vadd.f32 %v4796_v59, %v1391_v56  ;;  %v1377_v20 = vadd.f32 %v1375_v36, %v1363_v9  ;;  %v1510_v37 = vadd.f32 %v1508_v49, %v1488_v12  ;;  %v1514_v34 = vmul.f32 %v1513_v14, %v4625_v19 }
 0x377   : > { %v4982_v25 = vpop.permute.xlu1 %1596  ;;  %v1497_v35 = vpop.permute.xlu0 %1496  ;;  %v5814_v49 = vstv %s4863_s0  ;;  %v2109_v19 = vmul.f32 %v2107_v11, %v4951_v45  ;;  %s5199_s0 = sld [smem:[#allocation12 + $0x40]] }
 0x378   : > { %v1405_v59 = vadd.f32 %v4786_v13, %v1377_v20  ;;  %v1502_v18 = vadd.f32 %v1497_v35, %v1474_v24  ;;  %v1441_v36 = vadd.f32 %v1439_v17, %v1419_v61  ;;  %v1445_v30 = vmul.f32 %v5814_v49, %v4558_v16  ;;  %v5012_v24 = vld [vmem:[#allocation2 + $0x49] sm:$0xff] }
 0x379   : > { %2100 = vrot.lane.b32.xlu1 %v2095_v26, %s5809_s10  ;;  %2644 = vrot.lane.b32.xlu0 %v2640_v60, %s5809_s10  ;;  %v2654_v17 = vmul.f32 %v2653_v27, %v4970_v39  ;;  %v2121_v61 = vstv %s4973_s1  ;;  %s5259_s1 = sld [smem:[#allocation12 + $0x98]] }
 0x37a   : > { %v1433_v56 = vadd.f32 %v4812_v0, %v1405_v59  ;;  %v1516_v9 = vadd.f32 %v1514_v34, %v1502_v18  ;;  %v1461_v12 = vadd.f32 %v4829_v23, %v1441_v36  ;;  %v1509_v0 = vmul.f32 %v1507_v32, %v4683_v42  ;;  %v5031_v18 = vld [vmem:[#allocation2 + $0x50] sm:$0xff] }
 0x37b   : > { %v5003_v22 = vpop.permute.xlu1 %1610  ;;  %v1525_v13 = vpop.permute.xlu0 %1524  ;;  %v5815_v32 = vstv %s4839_s29  ;;  %v1515_v34 = vmul.f32 %v1513_v14, %v4683_v42  ;;  %v5817_v42 = vstv %s4851_s8  ;;  %s5142_s29 = sld [smem:[#allocation12 + $0x92]]  ;;  %s5183_s8 = sld [smem:[#allocation12 + $0xbe]] }
 0x37c   : > { %v1489_v23 = vadd.f32 %v4857_v53, %v1461_v12  ;;  %v1447_v16 = vadd.f32 %v1445_v30, %v1433_v56  ;;  %v2123_v53 = vmul.f32 %v2121_v61, %v4951_v45  ;;  %v2010_v59 = vmul.f32 %v5815_v32, %v5012_v24 }
 0x37d   : > { %2114 = vrot.lane.b32.xlu1 %v2109_v19, %s5808_s16  ;;  %2658 = vrot.lane.b32.xlu0 %v2654_v17, %s5809_s10  ;;  %v1530_v56 = vadd.f32 %v1525_v13, %v1510_v37  ;;  %v5816_v19 = vstv %s4853_s23  ;;  %v5729_v37 = vstv %s5018_s20  ;;  %s5187_s23 = sld [smem:[#allocation12 + $0x15]] }
 0x37e   : > { %v5020_v20 = vadd.f32 %v1509_v0, %v1489_v23  ;;  %v1475_v35 = vadd.f32 %v4843_v29, %v1447_v16  ;;  %v1577_v29 = vstv %s4996_s26  ;;  %v1941_v17 = vmul.f32 %v5816_v19, %v5031_v18  ;;  %s5265_s26 = sld [smem:[#allocation12 + $0xc3]] }
 0x37f   : > { %v5023_v26 = vpop.permute.xlu1 %1624  ;;  %v1539_v60 = vpop.permute.xlu0 %1538  ;;  %v1578_v0 = vmul.f32 %v1577_v29, %v4664_v58  ;;  %v5820_v19 = vstv %s4892_s18  ;;  %s3348_s18 = sld [smem:[#allocation12 + $0xc1]] }
 0x380   : > { %v1503_v36 = vadd.f32 %v4874_v28, %v1475_v35  ;;  %v2024_v28 = vmul.f32 %v5817_v42, %v5012_v24  ;;  %v1544_v13 = vadd.f32 %v1539_v60, %v1516_v9  ;;  %v5821_v42 = vstv %s4890_s2  ;;  %s3347_s2 = sld [smem:[#allocation12 + $0x41]] }
 0x381   : > { %2128 = vrot.lane.b32.xlu1 %v2123_v53, %s5808_s16  ;;  %2014 = vrot.lane.b32.xlu0 %v2010_v59, %s5809_s10  ;;  %v5818_v53 = vstv %s4870_s19  ;;  %v5819_v59 = vstv %s4868_s11  ;;  %s5205_s11 = sld [smem:[#allocation12 + $0x95]]  ;;  %s5215_s19 = sld [smem:[#allocation12 + $0xc0]] }
 0x382   : > { %v5038_v12 = vadd.f32 %v1515_v34, %v1503_v36  ;;  %v1955_v32 = vmul.f32 %v5818_v53, %v5031_v18  ;;  %v2038_v34 = vmul.f32 %v5819_v59, %v5012_v24 }
 0x383   : > { %v5040_v49 = vpop.permute.xlu1 %1638  ;;  %v1553_v30 = vpop.permute.xlu0 %1552 }
 0x384   : > { %v1558_v14 = vadd.f32 %v1553_v30, %v1530_v56  ;;  %v1584_v56 = vmul.f32 %v5729_v37, %v4664_v58  ;;  %v5077_v58 = vld [vmem:[#allocation2 + $0x4a] sm:$0xff] }
 0x385   : > { %1946 = vrot.lane.b32.xlu1 %v1941_v17, %s5809_s10  ;;  %2028 = vrot.lane.b32.xlu0 %v2024_v28, %s5809_s10  ;;  %v1969_v17 = vmul.f32 %v5820_v19, %v5031_v18  ;;  %v2052_v28 = vmul.f32 %v5821_v42, %v5012_v24 }
 0x386   : > { %v1580_v23 = vadd.f32 %v1578_v0, %v1558_v14 }
 0x387   : > { %v5054_v16 = vpop.permute.xlu1 %1666  ;;  %v1567_v35 = vpop.permute.xlu0 %1566 }
 0x388   : > { %v1572_v36 = vadd.f32 %v1567_v35, %v1544_v13  ;;  %v1983_v13 = vmul.f32 %v1981_v1, %v5031_v18  ;;  %v5822_v35 = vstv %s4908_s3  ;;  %s5249_s3 = sld [smem:[#allocation12 + $0x18]] }
 0x389   : > { %1960 = vrot.lane.b32.xlu1 %v1955_v32, %s5809_s10  ;;  %2042 = vrot.lane.b32.xlu0 %v2038_v34, %s5808_s16  ;;  %v2080_v53 = vmul.f32 %v5822_v35, %v5077_v58  ;;  %v5728_v32 = vstv %s5067_s15  ;;  %v5094_v34 = vld [vmem:[#allocation2 + $0x98] sm:$0xff] }
 0x38a   : > { %v1586_v9 = vadd.f32 %v1584_v56, %v1572_v36  ;;  %v5823_v36 = vstv %s4358_s22  ;;  %s5128_s22 = sld [smem:[#allocation12 + $0x12]] }
 0x38b   : > { %v5069_v60 = vpop.permute.xlu1 %1680  ;;  %v1595_v30 = vpop.permute.xlu0 %1594  ;;  %v2613_v56 = vmul.f32 %v5094_v34, %v5823_v36 }
 0x38c   : > { %v1600_v59 = vadd.f32 %v1595_v30, %v1580_v23  ;;  %v1648_v23 = vmul.f32 %v5728_v32, %v4689_v54  ;;  %v1653_v30 = vstv %s5081_s12  ;;  %s5297_s12 = sld [smem:[#allocation12 + $0x1b]] }
 0x38d   : > { %1974 = vrot.lane.b32.xlu1 %v1969_v17, %s5808_s16  ;;  %2056 = vrot.lane.b32.xlu0 %v2052_v28, %s5808_s16  ;;  %v2094_v17 = vmul.f32 %v2093_v55, %v5077_v58  ;;  %v5104_v28 = vld [vmem:[#allocation2 + $0x99] sm:$0xff] }
 0x38f   : > { %v5083_v14 = vpop.permute.xlu1 %1694  ;;  %v1609_v0 = vpop.permute.xlu0 %1608 }
 0x391   : > { %1988 = vrot.lane.b32.xlu1 %v1983_v13, %s5808_s16  ;;  %2084 = vrot.lane.b32.xlu0 %v2080_v53, %s5809_s10  ;;  %v1614_v13 = vadd.f32 %v1609_v0, %v1586_v9 }
 0x393   : > { %v5099_v19 = vpop.permute.xlu1 %1708  ;;  %v1623_v1 = vpop.permute.xlu0 %1622 }
 0x394   : > { %v1628_v42 = vadd.f32 %v1623_v1, %v1600_v59  ;;  %v5824_v59 = vstv %s4916_s5  ;;  %v2108_v1 = vmul.f32 %v2107_v11, %v5077_v58  ;;  %v2655_v11 = vmul.f32 %v2653_v27, %v5104_v28  ;;  %s5136_s5 = sld [smem:[#allocation12 + $0x3d]] }
 0x395   : > { %2618 = vrot.lane.b32.xlu1 %v2613_v56, %s5808_s16  ;;  %2098 = vrot.lane.b32.xlu0 %v2094_v17, %s5809_s10  ;;  %v2641_v36 = vmul.f32 %v5824_v59, %v5104_v28  ;;  %v1654_v56 = vmul.f32 %v1653_v30, %v4689_v54  ;;  %v1717_v59 = vstv %s5128_s22  ;;  %s5311_s22 = sld [smem:[#allocation12 + $0xc6]] }
 0x396   : > { %v1650_v35 = vadd.f32 %v1648_v23, %v1628_v42  ;;  %v2667_v23 = vstv %s5109_s17  ;;  %s5301_s17 = sld [smem:[#allocation12 + $0x46]] }
 0x397   : > { %v1527_v53 = vpop.permute.xlu1 %1526  ;;  %v1637_v55 = vpop.permute.xlu0 %1636 }
 0x398   : > { %v1531_v32 = vadd.f32 %v1527_v53, %v5020_v20  ;;  %v1642_v37 = vadd.f32 %v1637_v55, %v1614_v13  ;;  %v2122_v20 = vmul.f32 %v2121_v61, %v5077_v58  ;;  %v2669_v13 = vmul.f32 %v2667_v23, %v5104_v28 }
 0x399   : > { %2646 = vrot.lane.b32.xlu1 %v2641_v36, %s5809_s10  ;;  %2112 = vrot.lane.b32.xlu0 %v2108_v1, %s5808_s16  ;;  %v2668_v61 = vmul.f32 %v2667_v23, %v4970_v39  ;;  %v2681_v55 = vstv %s5124_s6  ;;  %v5825_v1 = vstv %s5018_s20  ;;  %s5282_s20 = sld [smem:[#allocation12 + $0x44]]  ;;  %s5306_s6 = sld [smem:[#allocation12 + $0x9b]] }
 0x39a   : > { %v1656_v9 = vadd.f32 %v1654_v56, %v1642_v37  ;;  %v1585_v56 = vmul.f32 %v5825_v1, %v4611_v57  ;;  %v2723_v1 = vstv %s5146_s25  ;;  %s5353_s25 = sld [smem:[#allocation12 + $0x1e]] }
 0x39b   : > { %v1541_v0 = vpop.permute.xlu1 %1540  ;;  %v1665_v17 = vpop.permute.xlu0 %1664 }
 0x39c   : > { %v1545_v54 = vadd.f32 %v1541_v0, %v5038_v12  ;;  %v1670_v42 = vadd.f32 %v1665_v17, %v1650_v35  ;;  %v1579_v12 = vmul.f32 %v1577_v29, %v4611_v57  ;;  %v2682_v29 = vmul.f32 %v2681_v55, %v4970_v39 }
 0x39d   : > { %2660 = vrot.lane.b32.xlu1 %v2655_v11, %s5809_s10  ;;  %2126 = vrot.lane.b32.xlu0 %v2122_v20, %s5808_s16  ;;  %v2683_v11 = vmul.f32 %v2681_v55, %v5104_v28  ;;  %v1718_v57 = vmul.f32 %v1717_v59, %v4721_v46 }
 0x39f   : > { %v1555_v37 = vpop.permute.xlu1 %1554  ;;  %v1679_v27 = vpop.permute.xlu0 %1678 }
 0x3a0   : > { %v1559_v35 = vadd.f32 %v1555_v37, %v1531_v32  ;;  %v1684_v53 = vadd.f32 %v1679_v27, %v1656_v9  ;;  %v2709_v32 = vstv %s5136_s5  ;;  %v5164_v37 = vld [vmem:[#allocation2 + $0x9a] sm:$0xff]  ;;  %v5166_v27 = vld [vmem:[#allocation2 + $0x92] sm:$0xff]  ;;  %s5333_s5 = sld [smem:[#allocation12 + $0x47]] }
 0x3a1   : > { %2674 = vrot.lane.b32.xlu1 %v2669_v13, %s5808_s16  ;;  %2672 = vrot.lane.b32.xlu0 %v2668_v61, %s5808_s16  ;;  %v1723_v13 = vstv %s5142_s29  ;;  %v2711_v55 = vmul.f32 %v2709_v32, %v5164_v37  ;;  %s5349_s29 = sld [smem:[#allocation12 + $0xc7]] }
 0x3a2   : > { %v1581_v36 = vadd.f32 %v1579_v12, %v1559_v35 }
 0x3a3   : > { %v1569_v0 = vpop.permute.xlu1 %1568  ;;  %v1693_v17 = vpop.permute.xlu0 %1692 }
 0x3a4   : > { %v1601_v9 = vadd.f32 %v4982_v25, %v1581_v36  ;;  %v1573_v20 = vadd.f32 %v1569_v0, %v1545_v54  ;;  %v1698_v23 = vadd.f32 %v1693_v17, %v1670_v42  ;;  %v5826_v25 = vstv %s5067_s15  ;;  %s5293_s15 = sld [smem:[#allocation12 + $0xc4]] }
 0x3a5   : > { %2688 = vrot.lane.b32.xlu1 %v2683_v11, %s5808_s16  ;;  %2686 = vrot.lane.b32.xlu0 %v2682_v29, %s5808_s16  ;;  %v1649_v54 = vmul.f32 %v5826_v25, %v4654_v47  ;;  %v2710_v36 = vmul.f32 %v2709_v32, %v5166_v27 }
 0x3a6   : > { %v1629_v39 = vadd.f32 %v5023_v26, %v1601_v9  ;;  %v1587_v61 = vadd.f32 %v1585_v56, %v1573_v20  ;;  %v1720_v12 = vadd.f32 %v1718_v57, %v1698_v23  ;;  %v1724_v26 = vmul.f32 %v1723_v13, %v4721_v46 }
 0x3a7   : > { %v5176_v35 = vpop.permute.xlu1 %1806  ;;  %v1707_v42 = vpop.permute.xlu0 %1706  ;;  %v2725_v9 = vmul.f32 %v2723_v1, %v5164_v37  ;;  %v2724_v20 = vmul.f32 %v2723_v1, %v5166_v27  ;;  %v2737_v23 = vstv %s5161_s9  ;;  %s5369_s9 = sld [smem:[#allocation12 + $0x9e]] }
 0x3a8   : > { %v1615_v0 = vadd.f32 %v5003_v22, %v1587_v61  ;;  %v1712_v17 = vadd.f32 %v1707_v42, %v1684_v53  ;;  %v1651_v56 = vadd.f32 %v1649_v54, %v1629_v39  ;;  %v1655_v22 = vmul.f32 %v1653_v30, %v4654_v47 }
 0x3a9   : > { %2716 = vrot.lane.b32.xlu1 %v2711_v55, %s5809_s10  ;;  %2714 = vrot.lane.b32.xlu0 %v2710_v36, %s5809_s10  ;;  %v2739_v25 = vmul.f32 %v2737_v23, %v5164_v37  ;;  %v2751_v54 = vstv %s5183_s8  ;;  %v1725_v42 = vmul.f32 %v1723_v13, %v4807_v31  ;;  %v5231_v13 = vld [vmem:[#allocation2 + $0xa8] sm:$0xff]  ;;  %s5405_s8 = sld [smem:[#allocation12 + $0x24]] }
 0x3aa   : > { %v1643_v11 = vadd.f32 %v5040_v49, %v1615_v0  ;;  %v1726_v29 = vadd.f32 %v1724_v26, %v1712_v17  ;;  %v1671_v32 = vadd.f32 %v5054_v16, %v1651_v56  ;;  %v1719_v49 = vmul.f32 %v1717_v59, %v4807_v31  ;;  %v5228_v31 = vld [vmem:[#allocation2 + $0xb0] sm:$0xff] }
 0x3ab   : > { %v5194_v53 = vpop.permute.xlu1 %1820  ;;  %v1735_v46 = vpop.permute.xlu0 %1734  ;;  %v2738_v59 = vmul.f32 %v2737_v23, %v5166_v27  ;;  %v2753_v17 = vmul.f32 %v2751_v54, %v5164_v37  ;;  %v2752_v26 = vmul.f32 %v2751_v54, %v5166_v27 }
 0x3ac   : > { %v1740_v57 = vadd.f32 %v1735_v46, %v1720_v12  ;;  %v1699_v39 = vadd.f32 %v5083_v14, %v1671_v32  ;;  %v1657_v16 = vadd.f32 %v1655_v22, %v1643_v11 }
 0x3ad   : > { %2730 = vrot.lane.b32.xlu1 %v2725_v9, %s5809_s10  ;;  %2728 = vrot.lane.b32.xlu0 %v2724_v20, %s5809_s10 }
 0x3ae   : > { %v5207_v47 = vadd.f32 %v1719_v49, %v1699_v39  ;;  %v1685_v30 = vadd.f32 %v5069_v60, %v1657_v16  ;;  %v1787_v60 = vstv %s5187_s23  ;;  %s5408_s23 = sld [smem:[#allocation12 + $0xa4]] }
 0x3af   : > { %v5210_v61 = vpop.permute.xlu1 %1834  ;;  %v1749_v12 = vpop.permute.xlu0 %1748  ;;  %v1788_v11 = vmul.f32 %v1787_v60, %v4769_v41 }
 0x3b0   : > { %v1754_v14 = vadd.f32 %v1749_v12, %v1726_v29  ;;  %v1713_v55 = vadd.f32 %v5099_v19, %v1685_v30  ;;  %v2779_v19 = vstv %s5199_s0  ;;  %v1793_v29 = vstv %s5205_s11  ;;  %s5412_s0 = sld [smem:[#allocation12 + $0x27]] }
 0x3b1   : > { %2744 = vrot.lane.b32.xlu1 %v2739_v25, %s5808_s16  ;;  %2742 = vrot.lane.b32.xlu0 %v2738_v59, %s5808_s16  ;;  %v2781_v9 = vmul.f32 %v2779_v19, %v5228_v31  ;;  %v2780_v20 = vmul.f32 %v2779_v19, %v5231_v13  ;;  %v1794_v49 = vmul.f32 %v1793_v29, %v4769_v41  ;;  %v2807_v59 = vstv %s3347_s2  ;;  %s5420_s11 = sld [smem:[#allocation12 + $0xa7]]  ;;  %s5430_s2 = sld [smem:[#allocation12 + $0xaa]] }
 0x3b2   : > { %v5222_v36 = vadd.f32 %v1725_v42, %v1713_v55  ;;  %v2809_v54 = vmul.f32 %v2807_v59, %v5228_v31  ;;  %v2808_v42 = vmul.f32 %v2807_v59, %v5231_v13  ;;  %v2821_v55 = vstv %s3348_s18  ;;  %s5438_s18 = sld [smem:[#allocation12 + $0x2d]] }
 0x3b3   : > { %v5224_v1 = vpop.permute.xlu1 %1848  ;;  %v1763_v0 = vpop.permute.xlu0 %1762  ;;  %v2823_v19 = vmul.f32 %v2821_v55, %v5228_v31 }
 0x3b4   : > { %v1768_v56 = vadd.f32 %v1763_v0, %v1740_v57  ;;  %v2793_v57 = vstv %s5215_s19  ;;  %v5731_v0 = vstv %s5249_s3  ;;  %s5424_s19 = sld [smem:[#allocation12 + $0x2a]] }
 0x3b5   : > { %2758 = vrot.lane.b32.xlu1 %v2753_v17, %s5808_s16  ;;  %2756 = vrot.lane.b32.xlu0 %v2752_v26, %s5808_s16  ;;  %v2795_v12 = vmul.f32 %v2793_v57, %v5228_v31  ;;  %v2794_v25 = vmul.f32 %v2793_v57, %v5231_v13  ;;  %v1858_v57 = vmul.f32 %v5731_v0, %v4825_v21  ;;  %v5328_v0 = vld [vmem:[#allocation2 + $0xb2] sm:$0xff] }
 0x3b6   : > { %v1790_v32 = vadd.f32 %v1788_v11, %v1768_v56  ;;  %v2822_v11 = vmul.f32 %v2821_v55, %v5231_v13  ;;  %v2863_v55 = vstv %s5265_s26  ;;  %s5478_s26 = sld [smem:[#allocation12 + $0x33]] }
 0x3b7   : > { %v5239_v22 = vpop.permute.xlu1 %1876  ;;  %v1777_v46 = vpop.permute.xlu0 %1776 }
 0x3b8   : > { %v1782_v23 = vadd.f32 %v1777_v46, %v1754_v14 }
 0x3b9   : > { %2786 = vrot.lane.b32.xlu1 %v2781_v9, %s5809_s10  ;;  %2784 = vrot.lane.b32.xlu0 %v2780_v20, %s5809_s10  ;;  %v5274_v9 = vld [vmem:[#allocation2 + $0xb1] sm:$0xff]  ;;  %v2849_v20 = vstv %s5255_s21  ;;  %s5456_s21 = sld [smem:[#allocation12 + $0x30]] }
 0x3ba   : > { %v1796_v39 = vadd.f32 %v1794_v49, %v1782_v23  ;;  %v5277_v23 = vld [vmem:[#allocation2 + $0xa9] sm:$0xff]  ;;  %v2851_v59 = vmul.f32 %v2849_v20, %v5274_v9 }
 0x3bb   : > { %v5251_v16 = vpop.permute.xlu1 %1890  ;;  %v1805_v30 = vpop.permute.xlu0 %1804 }
 0x3bc   : > { %v1810_v17 = vadd.f32 %v1805_v30, %v1790_v32  ;;  %v5730_v32 = vstv %s5259_s1 }
 0x3bd   : > { %2800 = vrot.lane.b32.xlu1 %v2795_v12, %s5809_s10  ;;  %2798 = vrot.lane.b32.xlu0 %v2794_v25, %s5809_s10 }
 0x3bf   : > { %v5261_v41 = vpop.permute.xlu1 %1904  ;;  %v1819_v14 = vpop.permute.xlu0 %1818 }
 0x3c0   : > { %v1824_v49 = vadd.f32 %v1819_v14, %v1796_v39 }
 0x3c1   : > { %2814 = vrot.lane.b32.xlu1 %v2809_v54, %s5808_s16  ;;  %2812 = vrot.lane.b32.xlu0 %v2808_v42, %s5808_s16  ;;  %v2850_v54 = vmul.f32 %v2849_v20, %v5277_v23 }
 0x3c3   : > { %v5270_v26 = vpop.permute.xlu1 %1918  ;;  %v1833_v56 = vpop.permute.xlu0 %1832 }
 0x3c4   : > { %v1838_v46 = vadd.f32 %v1833_v56, %v1810_v17  ;;  %v1864_v17 = vmul.f32 %v5730_v32, %v4825_v21  ;;  %v2877_v21 = vstv %s5282_s20  ;;  %s5489_s20 = sld [smem:[#allocation12 + $0xb3]] }
 0x3c5   : > { %2828 = vrot.lane.b32.xlu1 %v2823_v19, %s5808_s16  ;;  %2826 = vrot.lane.b32.xlu0 %v2822_v11, %s5808_s16  ;;  %v2865_v19 = vmul.f32 %v2863_v55, %v5274_v9  ;;  %v2864_v11 = vmul.f32 %v2863_v55, %v5277_v23  ;;  %v1927_v55 = vstv %s5297_s12  ;;  %s5507_s12 = sld [smem:[#allocation12 + $0xb6]] }
 0x3c6   : > { %v1860_v30 = vadd.f32 %v1858_v57, %v1838_v46 }
 0x3c7   : > { %v1737_v12 = vpop.permute.xlu1 %1736  ;;  %v1847_v25 = vpop.permute.xlu0 %1846 }
 0x3c8   : > { %v1852_v42 = vadd.f32 %v1847_v25, %v1824_v49  ;;  %v1741_v46 = vadd.f32 %v1737_v12, %v5207_v47  ;;  %v2879_v49 = vmul.f32 %v2877_v21, %v5274_v9  ;;  %v2878_v25 = vmul.f32 %v2877_v21, %v5277_v23 }
 0x3c9   : > { %2856 = vrot.lane.b32.xlu1 %v2851_v59, %s5809_s10  ;;  %2854 = vrot.lane.b32.xlu0 %v2850_v54, %s5809_s10  ;;  %v1789_v59 = vmul.f32 %v1787_v60, %v4707_v51 }
 0x3ca   : > { %v1866_v39 = vadd.f32 %v1864_v17, %v1852_v42  ;;  %v2891_v42 = vstv %s5293_s15  ;;  %s5496_s15 = sld [smem:[#allocation12 + $0x36]] }
 0x3cb   : > { %v1751_v14 = vpop.permute.xlu1 %1750  ;;  %v1875_v56 = vpop.permute.xlu0 %1874  ;;  %v2893_v60 = vmul.f32 %v2891_v42, %v5274_v9 }
 0x3cc   : > { %v1755_v47 = vadd.f32 %v1751_v14, %v5222_v36  ;;  %v1880_v12 = vadd.f32 %v1875_v56, %v1860_v30  ;;  %v5330_v36 = vld [vmem:[#allocation2 + $0xaa] sm:$0xff]  ;;  %v1928_v30 = vmul.f32 %v1927_v55, %v4884_v52 }
 0x3cd   : > { %2870 = vrot.lane.b32.xlu1 %v2865_v19, %s5809_s10  ;;  %2868 = vrot.lane.b32.xlu0 %v2864_v11, %s5809_s10  ;;  %v1795_v19 = vmul.f32 %v1793_v29, %v4707_v51  ;;  %v1933_v51 = vstv %s5306_s6  ;;  %v5827_v29 = vstv %s5249_s3  ;;  %s5449_s3 = sld [smem:[#allocation12 + $0xad]]  ;;  %s5529_s6 = sld [smem:[#allocation12 + $0xb9]] }
 0x3ce   : > { %v1859_v14 = vmul.f32 %v5827_v29, %v4756_v40  ;;  %v1929_v29 = vmul.f32 %v1927_v55, %v5031_v18 }
 0x3cf   : > { %v1765_v20 = vpop.permute.xlu1 %1764  ;;  %v1889_v57 = vpop.permute.xlu0 %1888 }
 0x3d0   : > { %v1769_v54 = vadd.f32 %v1765_v20, %v1741_v46  ;;  %v2892_v46 = vmul.f32 %v2891_v42, %v5277_v23  ;;  %v2919_v20 = vstv %s5301_s17  ;;  %v1894_v56 = vadd.f32 %v1889_v57, %v1866_v39  ;;  %s5518_s17 = sld [smem:[#allocation12 + $0x39]] }
 0x3d1   : > { %2884 = vrot.lane.b32.xlu1 %v2879_v49, %s5808_s16  ;;  %2882 = vrot.lane.b32.xlu0 %v2878_v25, %s5808_s16 }
 0x3d2   : > { %v1791_v17 = vadd.f32 %v1789_v59, %v1769_v54 }
 0x3d3   : > { %v1779_v11 = vpop.permute.xlu1 %1778  ;;  %v1903_v21 = vpop.permute.xlu0 %1902 }
 0x3d4   : > { %v1811_v49 = vadd.f32 %v5176_v35, %v1791_v17  ;;  %v1783_v25 = vadd.f32 %v1779_v11, %v1755_v47  ;;  %v1908_v32 = vadd.f32 %v1903_v21, %v1880_v12  ;;  %v2921_v12 = vmul.f32 %v2919_v20, %v5328_v0 }
 0x3d5   : > { %2898 = vrot.lane.b32.xlu1 %v2893_v60, %s5808_s16  ;;  %2896 = vrot.lane.b32.xlu0 %v2892_v46, %s5808_s16  ;;  %v2920_v17 = vmul.f32 %v2919_v20, %v5330_v36  ;;  %v2933_v11 = vstv %s5311_s22  ;;  %v1934_v46 = vmul.f32 %v1933_v51, %v4884_v52  ;;  %s5537_s22 = sld [smem:[#allocation12 + $0x3c]] }
 0x3d6   : > { %v1839_v35 = vadd.f32 %v5210_v61, %v1811_v49  ;;  %v1797_v59 = vadd.f32 %v1795_v19, %v1783_v25  ;;  %v1930_v54 = vadd.f32 %v1928_v30, %v1908_v32  ;;  %v2935_v49 = vmul.f32 %v2933_v11, %v5328_v0 }
 0x3d7   : > { %v5342_v42 = vpop.permute.xlu1 %2016  ;;  %v1917_v47 = vpop.permute.xlu0 %1916  ;;  %v2934_v25 = vmul.f32 %v2933_v11, %v5330_v36  ;;  %v2947_v30 = vstv %s5333_s5  ;;  %s5549_s5 = sld [smem:[#allocation12 + $0xbc]] }
 0x3d8   : > { %v1825_v21 = vadd.f32 %v5194_v53, %v1797_v59  ;;  %v1922_v60 = vadd.f32 %v1917_v47, %v1894_v56  ;;  %v1861_v61 = vadd.f32 %v1859_v14, %v1839_v35  ;;  %v5828_v53 = vstv %s5259_s1  ;;  %s5467_s1 = sld [smem:[#allocation12 + $0xb0]] }
 0x3d9   : > { %2926 = vrot.lane.b32.xlu1 %v2921_v12, %s5809_s10  ;;  %2924 = vrot.lane.b32.xlu0 %v2920_v17, %s5809_s10  ;;  %v1865_v19 = vmul.f32 %v5828_v53, %v4756_v40  ;;  %v2949_v59 = vmul.f32 %v2947_v30, %v5328_v0  ;;  %v2948_v55 = vmul.f32 %v2947_v30, %v5330_v36  ;;  %v2961_v47 = vstv %s5349_s29  ;;  %s5561_s29 = sld [smem:[#allocation12 + $0x3f]] }
 0x3da   : > { %v1853_v32 = vadd.f32 %v5224_v1, %v1825_v21  ;;  %v1936_v39 = vadd.f32 %v1934_v46, %v1922_v60  ;;  %v1881_v57 = vadd.f32 %v5239_v22, %v1861_v61  ;;  %v1997_v17 = vstv %s5353_s25  ;;  %s5573_s25 = sld [smem:[#allocation12 + $0xbf]] }
 0x3db   : > { %v5360_v20 = vpop.permute.xlu1 %2030  ;;  %v1945_v52 = vpop.permute.xlu0 %1944  ;;  %v2963_v46 = vmul.f32 %v2961_v47, %v5328_v0  ;;  %v2962_v61 = vmul.f32 %v2961_v47, %v5330_v36 }
 0x3dc   : > { %v1909_v14 = vadd.f32 %v5261_v41, %v1881_v57  ;;  %v1867_v1 = vadd.f32 %v1865_v19, %v1853_v32  ;;  %v1935_v41 = vmul.f32 %v1933_v51, %v5031_v18  ;;  %v1950_v11 = vadd.f32 %v1945_v52, %v1930_v54 }
 0x3dd   : > { %2940 = vrot.lane.b32.xlu1 %v2935_v49, %s5809_s10  ;;  %2938 = vrot.lane.b32.xlu0 %v2934_v25, %s5809_s10  ;;  %v1998_v57 = vmul.f32 %v1997_v17, %v5012_v24  ;;  %v2003_v18 = vstv %s5369_s9  ;;  %s5395_s10 = sld [smem:[#allocation12 + $0x21]]  ;;  %s5582_s9 = sld [smem:[#allocation12 + $0x42]] }
 0x3de   : > { %v1931_v40 = vadd.f32 %v1929_v29, %v1909_v14  ;;  %v1895_v22 = vadd.f32 %v5251_v16, %v1867_v1  ;;  %v2004_v52 = vmul.f32 %v2003_v18, %v5012_v24 }
 0x3df   : > { %v5372_v35 = vpop.permute.xlu1 %2044  ;;  %v1959_v56 = vpop.permute.xlu0 %1958 }
 0x3e0   : > { %v1923_v12 = vadd.f32 %v5270_v26, %v1895_v22  ;;  %v1964_v26 = vadd.f32 %v1959_v56, %v1936_v39 }
 0x3e1   : > { %2954 = vrot.lane.b32.xlu1 %v2949_v59, %s5808_s16  ;;  %2952 = vrot.lane.b32.xlu0 %v2948_v55, %s5808_s16 }
 0x3e2   : > { %v1937_v16 = vadd.f32 %v1935_v41, %v1923_v12 }
 0x3e3   : > { %v5382_v21 = vpop.permute.xlu1 %2058  ;;  %v1973_v60 = vpop.permute.xlu0 %1972  ;;  %v2067_v59 = vstv %s5395_s10  ;;  %s5591_s10 = sld [smem:[#allocation12 + $0xc2]] }
 0x3e4   : > { %v1978_v32 = vadd.f32 %v1973_v60, %v1950_v11  ;;  %v2068_v12 = vmul.f32 %v2067_v59, %v5077_v58 }
 0x3e5   : > { %2968 = vrot.lane.b32.xlu1 %v2963_v46, %s5808_s16  ;;  %2966 = vrot.lane.b32.xlu0 %v2962_v61, %s5808_s16  ;;  %s5399_s16 = sld [smem:[#allocation12 + $0xa1]] }
 0x3e6   : > { %v2000_v51 = vadd.f32 %v1998_v57, %v1978_v32 }
 0x3e7   : > { %v2087_v53 = vpop.permute.xlu1 %2086  ;;  %v1987_v54 = vpop.permute.xlu0 %1986 }
 0x3e8   : > { %v1992_v19 = vadd.f32 %v1987_v54, %v1964_v26  ;;  %v1999_v26 = vmul.f32 %v1997_v17, %v4865_v33 }
 0x3ea   : > { %v2006_v49 = vadd.f32 %v2004_v52, %v1992_v19 }
 0x3eb   : > { %v2101_v25 = vpop.permute.xlu1 %2100  ;;  %v5391_v30 = vpop.permute.xlu0 %2644  ;;  %v2073_v11 = vstv %s5399_s16  ;;  %s5600_s16 = sld [smem:[#allocation12 + $0x45]] }
 0x3ec   : > { %v2074_v52 = vmul.f32 %v2073_v11, %v5077_v58  ;;  %v2069_v58 = vmul.f32 %v2067_v59, %v4951_v45  ;;  %v3523_v59 = vld [vmem:[#allocation2 + $0x68] sm:$0xff] }
 0x3ef   : > { %v2115_v29 = vpop.permute.xlu1 %2114  ;;  %v5393_v14 = vpop.permute.xlu0 %2658 }
 0x3f3   : > { %v5397_v1 = vpop.permute.xlu1 %2128  ;;  %v2015_v22 = vpop.permute.xlu0 %2014 }
 0x3f4   : > { %v2020_v24 = vadd.f32 %v2015_v22, %v2000_v51 }
 0x3f7   : > { %v1947_v39 = vpop.permute.xlu1 %1946  ;;  %v2029_v56 = vpop.permute.xlu0 %2028 }
 0x3f8   : > { %v1951_v60 = vadd.f32 %v1947_v39, %v1931_v40  ;;  %v2034_v46 = vadd.f32 %v2029_v56, %v2006_v49  ;;  %v2005_v39 = vmul.f32 %v2003_v18, %v4865_v33  ;;  %v2075_v33 = vmul.f32 %v2073_v11, %v4951_v45 }
 0x3fb   : > { %v1961_v55 = vpop.permute.xlu1 %1960  ;;  %v2043_v47 = vpop.permute.xlu0 %2042 }
 0x3fc   : > { %v2048_v41 = vadd.f32 %v2043_v47, %v2020_v24  ;;  %v1965_v51 = vadd.f32 %v1961_v55, %v1937_v16 }
 0x3fe   : > { %v2070_v61 = vadd.f32 %v2068_v12, %v2048_v41 }
 0x3ff   : > { %v1975_v32 = vpop.permute.xlu1 %1974  ;;  %v2057_v57 = vpop.permute.xlu0 %2056 }
 0x400   : > { %v1979_v54 = vadd.f32 %v1975_v32, %v1951_v60  ;;  %v2062_v19 = vadd.f32 %v2057_v57, %v2034_v46  ;;  %v2137_v46 = vstv %s5405_s8  ;;  %s5609_s8 = sld [smem:[#allocation12 + $0xc5]] }
 0x401   : > { %v2139_v57 = vmul.f32 %v3523_v59, %v2137_v46 }
 0x402   : > { %v2001_v22 = vadd.f32 %v1999_v26, %v1979_v54  ;;  %v2076_v24 = vadd.f32 %v2074_v52, %v2062_v19  ;;  %v3524_v52 = vld [vmem:[#allocation2 + $0x60] sm:$0xff] }
 0x403   : > { %v1989_v47 = vpop.permute.xlu1 %1988  ;;  %v2085_v40 = vpop.permute.xlu0 %2084 }
 0x404   : > { %v2021_v49 = vadd.f32 %v5342_v42, %v2001_v22  ;;  %v1993_v56 = vadd.f32 %v1989_v47, %v1965_v51  ;;  %v2090_v32 = vadd.f32 %v2085_v40, %v2070_v61  ;;  %v2138_v51 = vmul.f32 %v3524_v52, %v2137_v46 }
 0x405   : > { %v2207_v47 = vstv %s5412_s0 }
 0x406   : > { %v2049_v17 = vadd.f32 %v5372_v35, %v2021_v49  ;;  %v2007_v41 = vadd.f32 %v2005_v39, %v1993_v56  ;;  %v2143_v35 = vstv %s5408_s23  ;;  %s5868_s23 = sshll.u32 %s3976_s4, 5 }
 0x407   : > { %v5416_v16 = vpop.permute.xlu1 %2618  ;;  %v2099_v55 = vpop.permute.xlu0 %2098  ;;  %v2145_v61 = vmul.f32 %v3523_v59, %v2143_v35  ;;  %v2144_v49 = vmul.f32 %v3524_v52, %v2143_v35  ;;  %v3527_v52 = vld [vmem:[#allocation2 + $0x6a] sm:$0xff]  ;;  %s375_s0 = scalar_lea.vmem [#allocation13], %s5868_s23 }
 0x408   : > { %v2035_v12 = vadd.f32 %v5360_v20, %v2007_v41  ;;  %v2071_v60 = vadd.f32 %v2069_v58, %v2049_v17  ;;  %v3525_v58 = vld [vmem:[#allocation2 + $0x69] sm:$0xff] }
 0x40a   : > { %v2063_v42 = vadd.f32 %v5382_v21, %v2035_v12  ;;  %v2091_v18 = vadd.f32 %v2087_v53, %v2071_v60  ;;  %v2104_v21 = vadd.f32 %v2099_v55, %v2076_v24  ;;  %v2213_v12 = vstv %s5420_s11  ;;  %v3526_v24 = vld [vmem:[#allocation2 + $0x61] sm:$0xff]  ;;  %s2994_s11 = sshll.u32 %s375_s0, 4  ;;  %s5636_s11 = int_to_ptr.vmem [resolvable:$true] %s2994_s11 }
 0x40b   : > { %v5427_v26 = vpop.permute.xlu1 %2646  ;;  %v2113_v54 = vpop.permute.xlu0 %2112  ;;  %v2208_v55 = vmul.f32 %v3526_v24, %v2207_v47 }
 0x40c   : > { %v2077_v20 = vadd.f32 %v2075_v33, %v2063_v42  ;;  %v2119_v19 = vadd.f32 %v2115_v29, %v2091_v18  ;;  %v2118_v22 = vadd.f32 %v2113_v54, %v2090_v32  ;;  %v2277_v18 = vstv %s5424_s19  ;;  %s3370_s19 = sshll.u32 %s3798_s28, 9  ;;  %s2981_s28 = scalar_lea.sflag [#allocation5], %s3976_s4 }
 0x40d   : > { %v2214_v54 = vmul.f32 %v3526_v24, %v2213_v12 }
 0x40e   : > { %v2105_v45 = vadd.f32 %v2101_v25, %v2077_v20  ;;  %v2141_v11 = vadd.f32 %v2139_v57, %v2119_v19  ;;  %v2140_v53 = vadd.f32 %v2138_v51, %v2118_v22  ;;  %v2209_v25 = vmul.f32 %v3525_v58, %v2207_v47  ;;  %v3528_v22 = vld [vmem:[#allocation2 + $0x62] sm:$0xff] }
 0x40f   : > { %v5432_v40 = vpop.permute.xlu1 %2660  ;;  %v2127_v39 = vpop.permute.xlu0 %2126  ;;  %v2215_v57 = vmul.f32 %v3525_v58, %v2213_v12  ;;  %v2279_v51 = vmul.f32 %v3527_v52, %v2277_v18  ;;  %v3529_v12 = vld [vmem:[#allocation2 + $0x78] sm:$0xff] }
 0x410   : > { %v2133_v56 = vadd.f32 %v5397_v1, %v2105_v45  ;;  %v2161_v29 = vadd.f32 %v4393_v38, %v2141_v11  ;;  %v2160_v17 = vadd.f32 %v4389_v62, %v2140_v53  ;;  %v2132_v41 = vadd.f32 %v2127_v39, %v2104_v21 }
 0x412   : > { %v2147_v60 = vadd.f32 %v2145_v61, %v2133_v56  ;;  %v2189_v46 = vadd.f32 %v4401_v3, %v2161_v29  ;;  %v2188_v33 = vadd.f32 %v4395_v43, %v2160_v17  ;;  %v2146_v42 = vadd.f32 %v2144_v49, %v2132_v41  ;;  %v5829_v41 = vld [vmem:[#allocation23_spill] sm:$0xff] }
 0x413   : > { %v5443_v1 = vpop.permute.xlu1 %2674  ;;  %v5445_v38 = vpop.permute.xlu0 %2672 }
 0x414   : > { %v2175_v62 = vadd.f32 %v4397_v44, %v2147_v60  ;;  %v2211_v32 = vadd.f32 %v2209_v25, %v2189_v46  ;;  %v2210_v35 = vadd.f32 %v2208_v55, %v2188_v33  ;;  %v2174_v59 = vadd.f32 %v4391_v63, %v2146_v42  ;;  %v3530_v55 = vld [vmem:[#allocation2 + $0x80] sm:$0xff]  ;;  %v5831_v33 = vld [vmem:[#allocation28_spill] sm:$0xff] }
 0x415   : > { %v2283_v44 = vstv %s5430_s2  ;;  %v2278_v63 = vmul.f32 %v3528_v22, %v2277_v18  ;;  %v5832_v18 = vld [vmem:[#allocation25_spill] sm:$0xff] }
 0x416   : > { %v2203_v3 = vadd.f32 %v4405_v48, %v2175_v62  ;;  %v2231_v43 = vadd.f32 %v4409_v6, %v2211_v32  ;;  %v2230_v20 = vadd.f32 %v4403_v4, %v2210_v35  ;;  %v2202_v19 = vadd.f32 %v4399_v2, %v2174_v59  ;;  %v5833_v59 = vld [vmem:[#allocation26_spill] sm:$0xff] }
 0x417   : > { %v5458_v47 = vpop.permute.xlu1 %2688  ;;  %v5460_v45 = vpop.permute.xlu0 %2686  ;;  %v2347_v4 = vstv %s5438_s18  ;;  %v2285_v39 = vmul.f32 %v3527_v52, %v2283_v44  ;;  %v2284_v56 = vmul.f32 %v3528_v22, %v2283_v44  ;;  %v5836_v22 = vld [vmem:[#allocation32_spill] sm:$0xff] }
 0x418   : > { %v2217_v11 = vadd.f32 %v2215_v57, %v2203_v3  ;;  %v2259_v48 = vadd.f32 %v4417_v50, %v2231_v43  ;;  %v2258_v6 = vadd.f32 %v4411_v7, %v2230_v20  ;;  %v2216_v21 = vadd.f32 %v2214_v54, %v2202_v19  ;;  %v5834_v43 = vld [vmem:[#allocation24_spill] sm:$0xff] }
 0x419   : > { %v2348_v24 = vmul.f32 %v3529_v12, %v2347_v4  ;;  %v2349_v60 = vmul.f32 %v3530_v55, %v2347_v4  ;;  %v3531_v4 = vld [vmem:[#allocation2 + $0x79] sm:$0xff] }
 0x41a   : > { %v2245_v2 = vadd.f32 %v4413_v8, %v2217_v11  ;;  %v2281_v53 = vadd.f32 %v2279_v51, %v2259_v48  ;;  %v2280_v61 = vadd.f32 %v2278_v63, %v2258_v6  ;;  %v2244_v49 = vadd.f32 %v4407_v5, %v2216_v21  ;;  %v5830_v8 = vld [vmem:[#allocation22_spill] sm:$0xff]  ;;  %v5837_v11 = vld [vmem:[#allocation29_spill] sm:$0xff]  ;;  %v5838_v6 = vld [vmem:[#allocation27_spill] sm:$0xff] }
 0x41b   : > { %v5469_v29 = vpop.permute.xlu1 %2716  ;;  %v5471_v17 = vpop.permute.xlu0 %2714  ;;  %v2353_v5 = vstv %s5449_s3  ;;  %v5835_v51 = vld [vmem:[#allocation30_spill] sm:$0xff]  ;;  %s5642_s3 = scalar_lea.hbm %s5695_s7, %s3370_s19 }
 0x41c   : > { %v2273_v7 = vadd.f32 %v4422_v10, %v2245_v2  ;;  %v2301_v50 = vadd.f32 %v4428_v15, %v2281_v53  ;;  %v2300_v58 = vadd.f32 %v5829_v41, %v2280_v61  ;;  %v2272_v25 = vadd.f32 %v5830_v8, %v2244_v49  ;;  %v3532_v53 = vld [vmem:[#allocation2 + $0x81] sm:$0xff]  ;;  %v5840_v8 = vld [vmem:[#allocation33_spill] sm:$0xff] }
 0x41d   : > { %v2417_v10 = vstv %s5456_s21  ;;  %v2354_v19 = vmul.f32 %v3529_v12, %v2353_v5  ;;  %v2355_v52 = vmul.f32 %v3530_v55, %v2353_v5  ;;  %v2423_v49 = vstv %s5467_s1  ;;  %s3642_s21 = scalar_lea.vmem %s5636_s11, 512  ;;  %s3734_s1 = smov [#allocation13]  }
 0x41e   : > { %v2287_v46 = vadd.f32 %v2285_v39, %v2273_v7  ;;  %v2329_v42 = vadd.f32 %v5831_v33, %v2301_v50  ;;  %v2328_v62 = vadd.f32 %v5832_v18, %v2300_v58  ;;  %v2286_v32 = vadd.f32 %v2284_v56, %v2272_v25  ;;  %v5839_v50 = vld [vmem:[#allocation36_spill] sm:$0xff]  ;;  %p3643_p10 = scmp.ne.s32.totalorder %s5636_s11, %s3642_s21 }
 0x41f   : > { %v5483_v35 = vpop.permute.xlu1 %2730  ;;  %v5485_v15 = vpop.permute.xlu0 %2728  ;;  %v2418_v2 = vmul.f32 %v3531_v4, %v2417_v10  ;;  %v2419_v61 = vmul.f32 %v3532_v53, %v2417_v10  ;;  %v2487_v12 = vstv %s5478_s26  ;;  %v2425_v18 = vmul.f32 %v3532_v53, %v2423_v49  ;;  %v5843_v10 = vld [vmem:[#allocation38_spill] sm:$0xff]  ;;  %s3646_s26 = sshll.u32 %s3734_s1, 4  ;;  %s3647_s26 = int_to_ptr.vmem [resolvable:$false] %s3646_s26 }
 0x420   : > { %v2315_v57 = vadd.f32 %v5833_v59, %v2287_v46  ;;  %v2351_v54 = vadd.f32 %v2349_v60, %v2329_v42  ;;  %v2350_v3 = vadd.f32 %v2348_v24, %v2328_v62  ;;  %v2314_v20 = vadd.f32 %v5834_v43, %v2286_v32  ;;  %v5841_v24 = vld [vmem:[#allocation34_spill] sm:$0xff]  ;;  %v5842_v60 = vld [vmem:[#allocation31_spill] sm:$0xff]  ;;  %p3644_p4 = pnand %p3643_p10, %p5869_p3  ;;  %p3649_p8 = scmp.lt.s32.totalorder %s5636_s11, %s3647_s26 }
 0x421   : > { %v2424_v42 = vmul.f32 %v3531_v4, %v2423_v49  ;;  %v2557_v53 = vstv %s5496_s15 }
 0x422   : > { %v2343_v44 = vadd.f32 %v5835_v51, %v2315_v57  ;;  %v2371_v63 = vadd.f32 %v5836_v22, %v2351_v54  ;;  %v2370_v48 = vadd.f32 %v5837_v11, %v2350_v3  ;;  %v2342_v21 = vadd.f32 %v5838_v6, %v2314_v20  ;;  %v5844_v57 = vld [vmem:[#allocation40_spill] sm:$0xff]  ;;  %v5845_v3 = vld [vmem:[#allocation37_spill] sm:$0xff]  ;;  %v5846_v20 = vld [vmem:[#allocation35_spill] sm:$0xff]  ;;  %p3645_p0 = pneg %p3644_p4 }
 0x423   : > { %v5498_v39 = vpop.permute.xlu1 %2744  ;;  %v5500_v56 = vpop.permute.xlu0 %2742  ;;  %v3533_v51 = vld [vmem:[#allocation2 + $0x82] sm:$0xff]  ;;  %v3534_v22 = vld [vmem:[#allocation2 + $0x7a] sm:$0xff] }
 0x424   : > { %v2357_v7 = vadd.f32 %v2355_v52, %v2343_v44  ;;  %v2399_v41 = vadd.f32 %v5839_v50, %v2371_v63  ;;  %v2356_v58 = vadd.f32 %v2354_v19, %v2342_v21  ;;  %v2398_v25 = vadd.f32 %v5840_v8, %v2370_v48  ;;  %v5847_v48 = vld [vmem:[#allocation44_spill] sm:$0xff]  ;;  %v5848_v21 = vld [vmem:[#allocation41_spill] sm:$0xff]  ;;  %v5850_v8 = vld [vmem:[#allocation39_spill] sm:$0xff] }
 0x425   : > { %v2493_v52 = vstv %s5489_s20  ;;  %v2489_v44 = vmul.f32 %v3533_v51, %v2487_v12  ;;  %v2488_v63 = vmul.f32 %v3534_v22, %v2487_v12  ;;  %s3648_s20 = scalar_lea.vmem %s3647_s26, 1024 }
 0x426   : > { %v2385_v5 = vadd.f32 %v5841_v24, %v2357_v7  ;;  %v2421_v55 = vadd.f32 %v2419_v61, %v2399_v41  ;;  %v2384_v46 = vadd.f32 %v5842_v60, %v2356_v58  ;;  %v2420_v33 = vadd.f32 %v2418_v2, %v2398_v25  ;;  %v5849_v7 = vld [vmem:[#allocation42_spill] sm:$0xff]  ;;  %v5852_v60 = vld [vmem:[#allocation48_spill] sm:$0xff]  ;;  %p3650_p11 = scmp.lt.s32.totalorder %s3648_s20, %s3642_s21 }
 0x427   : > { %v5509_v62 = vpop.permute.xlu1 %2758  ;;  %v5511_v32 = vpop.permute.xlu0 %2756  ;;  %v2494_v24 = vmul.f32 %v3534_v22, %v2493_v52  ;;  %v2495_v12 = vmul.f32 %v3533_v51, %v2493_v52  ;;  %v5855_v52 = vld [vmem:[#allocation52_spill] sm:$0xff] }
 0x428   : > { %v2413_v59 = vadd.f32 %v5843_v10, %v2385_v5  ;;  %v2441_v54 = vadd.f32 %v5844_v57, %v2421_v55  ;;  %v2440_v43 = vadd.f32 %v5845_v3, %v2420_v33  ;;  %v2412_v19 = vadd.f32 %v5846_v20, %v2384_v46  ;;  %v5851_v5 = vld [vmem:[#allocation46_spill] sm:$0xff]  ;;  %v5853_v33 = vld [vmem:[#allocation45_spill] sm:$0xff]  ;;  %p3651_p5 = por %p3650_p11, %p3649_p8 }
 0x429   : > { %v2559_v57 = vmul.f32 %v5094_v34, %v2557_v53 }
 0x42a   : > { %v2427_v11 = vadd.f32 %v2425_v18, %v2413_v59  ;;  %v2469_v6 = vadd.f32 %v5847_v48, %v2441_v54  ;;  %v2468_v4 = vadd.f32 %v5848_v21, %v2440_v43  ;;  %v2426_v2 = vadd.f32 %v2424_v42, %v2412_v19  ;;  %v5854_v18 = vld [vmem:[#allocation43_spill] sm:$0xff]  ;;  %v3535_v54 = vld [vmem:[#allocation2 + $0x90] sm:$0xff]  ;;  %v5857_v48 = vld [vmem:[#allocation50_spill] sm:$0xff]  ;;  %p3652_p6 = pnand %p3651_p5, %p3645_p0 }
 0x42b   : > { %v5523_v61 = vpop.permute.xlu1 %2786  ;;  %v5525_v49 = vpop.permute.xlu0 %2784  ;;  %v2563_v59 = vstv %s5507_s12  ;;  %v2558_v3 = vmul.f32 %v3535_v54, %v2557_v53 }
 0x42c   : > { %v2455_v50 = vadd.f32 %v5849_v7, %v2427_v11  ;;  %v2491_v41 = vadd.f32 %v2489_v44, %v2469_v6  ;;  %v2490_v58 = vadd.f32 %v2488_v63, %v2468_v4  ;;  %v2454_v25 = vadd.f32 %v5850_v8, %v2426_v2  ;;  %v5856_v44 = vld [vmem:[#allocation49_spill] sm:$0xff]  ;;  %v5858_v2 = vld [vmem:[#allocation47_spill] sm:$0xff]  ;;  %v5859_v8 = vld [vmem:[#allocation54_spill] sm:$0xff] }
 0x42d   : > { %v2627_v11 = vstv %s5518_s17  ;;  %v2564_v7 = vmul.f32 %v3535_v54, %v2563_v59  ;;  %v5864_v54 = vld [vmem:[#allocation57_spill] sm:$0xff] }
 0x42e   : > { %v2483_v55 = vadd.f32 %v5851_v5, %v2455_v50  ;;  %v2511_v46 = vadd.f32 %v5852_v60, %v2491_v41  ;;  %v2510_v42 = vadd.f32 %v5853_v33, %v2490_v58  ;;  %v2482_v10 = vadd.f32 %v5854_v18, %v2454_v25  ;;  %v5861_v5 = vld [vmem:[#allocation53_spill] sm:$0xff]  ;;  %v5862_v60 = vld [vmem:[#allocation51_spill] sm:$0xff] }
 0x42f   : > { %v5539_v43 = vpop.permute.xlu1 %2800  ;;  %v5541_v20 = vpop.permute.xlu0 %2798  ;;  %v2565_v50 = vmul.f32 %v5094_v34, %v2563_v59  ;;  %v2629_v33 = vmul.f32 %v2627_v11, %v5104_v28  ;;  %v3536_v18 = vld [vmem:[#allocation2 + $0x91] sm:$0xff] }
 0x430   : > { %v2497_v19 = vadd.f32 %v2495_v12, %v2483_v55  ;;  %v2539_v51 = vadd.f32 %v5855_v52, %v2511_v46  ;;  %v2538_v22 = vadd.f32 %v5856_v44, %v2510_v42  ;;  %v2496_v63 = vadd.f32 %v2494_v24, %v2482_v10  ;;  %v5860_v24 = vld [vmem:[#allocation56_spill] sm:$0xff] }
 0x431   : > { %v2633_v42 = vstv %s5529_s6  ;;  %v2628_v34 = vmul.f32 %v3536_v18, %v2627_v11  ;;  %v5863_v59 = vld [vmem:[#allocation60_spill] sm:$0xff]  ;;  %v2697_v52 = vstv %s5537_s22 }
 0x432   : > { %v2525_v6 = vadd.f32 %v5857_v48, %v2497_v19  ;;  %v2561_v21 = vadd.f32 %v2559_v57, %v2539_v51  ;;  %v2560_v4 = vadd.f32 %v2558_v3, %v2538_v22  ;;  %v2524_v53 = vadd.f32 %v5858_v2, %v2496_v63  ;;  %v5865_v22 = vld [vmem:[#allocation58_spill] sm:$0xff] }
 0x433   : > { %v5551_v41 = vpop.permute.xlu1 %2814  ;;  %v5553_v58 = vpop.permute.xlu0 %2812  ;;  %v2634_v2 = vmul.f32 %v3536_v18, %v2633_v42 }
 0x434   : > { %v2553_v25 = vadd.f32 %v5859_v8, %v2525_v6  ;;  %v2581_v12 = vadd.f32 %v5860_v24, %v2561_v21  ;;  %v2580_v55 = vadd.f32 %v5861_v5, %v2560_v4  ;;  %v2552_v46 = vadd.f32 %v5862_v60, %v2524_v53  ;;  %v5866_v21 = vld [vmem:[#allocation55_spill] sm:$0xff] }
 0x435   : > { %v2635_v4 = vmul.f32 %v2633_v42, %v5104_v28  ;;  %v5867_v8 = vld [vmem:[#allocation59_spill] sm:$0xff]  ;;  %v2699_v24 = vmul.f32 %v2697_v52, %v5164_v37  ;;  %v2703_v5 = vstv %s5549_s5 }
 0x436   : > { %v2567_v10 = vadd.f32 %v2565_v50, %v2553_v25  ;;  %v2609_v57 = vadd.f32 %v5863_v59, %v2581_v12  ;;  %v2608_v3 = vadd.f32 %v5864_v54, %v2580_v55  ;;  %v2566_v19 = vadd.f32 %v2564_v7, %v2552_v46 }
 0x437   : > { %v5566_v51 = vpop.permute.xlu1 %2828  ;;  %v5568_v44 = vpop.permute.xlu0 %2826  ;;  %v2698_v12 = vmul.f32 %v2697_v52, %v5166_v27  ;;  %v2704_v59 = vmul.f32 %v2703_v5, %v5166_v27 }
 0x438   : > { %v2595_v63 = vadd.f32 %v5865_v22, %v2567_v10  ;;  %v2631_v48 = vadd.f32 %v2629_v33, %v2609_v57  ;;  %v2630_v6 = vadd.f32 %v2628_v34, %v2608_v3  ;;  %v2594_v11 = vadd.f32 %v5866_v21, %v2566_v19 }
 0x439   : > { %v2705_v10 = vmul.f32 %v2703_v5, %v5164_v37  ;;  %v2773_v37 = vstv %s5573_s25 }
 0x43a   : > { %v2623_v53 = vadd.f32 %v5416_v16, %v2595_v63  ;;  %v2651_v7 = vadd.f32 %v5427_v26, %v2631_v48  ;;  %v2650_v50 = vadd.f32 %v5391_v30, %v2630_v6  ;;  %v2622_v25 = vadd.f32 %v5867_v8, %v2594_v11 }
 0x43b   : > { %v2857_v28 = vpop.permute.xlu1 %2856  ;;  %v2855_v55 = vpop.permute.xlu0 %2854  ;;  %v2767_v26 = vstv %s5561_s29  ;;  %v2775_v11 = vmul.f32 %v2773_v37, %v5228_v31 }
 0x43c   : > { %v2637_v60 = vadd.f32 %v2635_v4, %v2623_v53  ;;  %v2679_v46 = vadd.f32 %v5443_v1, %v2651_v7  ;;  %v2678_v16 = vadd.f32 %v5445_v38, %v2650_v50  ;;  %v2636_v33 = vadd.f32 %v2634_v2, %v2622_v25 }
 0x43d   : > { %v2768_v19 = vmul.f32 %v2767_v26, %v5231_v13  ;;  %v2774_v4 = vmul.f32 %v2773_v37, %v5231_v13  ;;  %v2843_v7 = vstv %s5591_s10 }
 0x43e   : > { %v2665_v30 = vadd.f32 %v5432_v40, %v2637_v60  ;;  %v2664_v42 = vadd.f32 %v5393_v14, %v2636_v33  ;;  %v2701_v18 = vadd.f32 %v2699_v24, %v2679_v46  ;;  %v2700_v34 = vadd.f32 %v2698_v12, %v2678_v16 }
 0x43f   : > { %v2871_v57 = vpop.permute.xlu1 %2870  ;;  %v2869_v1 = vpop.permute.xlu0 %2868  ;;  %v2769_v14 = vmul.f32 %v2767_v26, %v5228_v31  ;;  %v2845_v5 = vmul.f32 %v2843_v7, %v5274_v9  ;;  %v2844_v60 = vmul.f32 %v2843_v7, %v5277_v23 }
 0x440   : > { %v2693_v38 = vadd.f32 %v5458_v47, %v2665_v30  ;;  %v2692_v54 = vadd.f32 %v5460_v45, %v2664_v42  ;;  %v2721_v3 = vadd.f32 %v5469_v29, %v2701_v18  ;;  %v2720_v40 = vadd.f32 %v5471_v17, %v2700_v34 }
 0x441   : > { %v2837_v47 = vstv %s5582_s9  ;;  %v2913_v42 = vstv %s5609_s8 }
 0x442   : > { %v2707_v27 = vadd.f32 %v2705_v10, %v2693_v38  ;;  %v2706_v52 = vadd.f32 %v2704_v59, %v2692_v54  ;;  %v2749_v22 = vadd.f32 %v5498_v39, %v2721_v3  ;;  %v2748_v63 = vadd.f32 %v5500_v56, %v2720_v40 }
 0x443   : > { %v2885_v45 = vpop.permute.xlu1 %2884  ;;  %v2883_v48 = vpop.permute.xlu0 %2882 }
 0x444   : > { %v2735_v29 = vadd.f32 %v5483_v35, %v2707_v27  ;;  %v2734_v17 = vadd.f32 %v5485_v15, %v2706_v52  ;;  %v2771_v6 = vadd.f32 %v2769_v14, %v2749_v22  ;;  %v2770_v21 = vadd.f32 %v2768_v19, %v2748_v63 }
 0x445   : > { %v2839_v35 = vmul.f32 %v2837_v47, %v5274_v9  ;;  %v2838_v15 = vmul.f32 %v2837_v47, %v5277_v23 }
 0x446   : > { %v2763_v39 = vadd.f32 %v5509_v62, %v2735_v29  ;;  %v2762_v56 = vadd.f32 %v5511_v32, %v2734_v17  ;;  %v2791_v2 = vadd.f32 %v5523_v61, %v2771_v6  ;;  %v2790_v53 = vadd.f32 %v5525_v49, %v2770_v21 }
 0x447   : > { %v2899_v50 = vpop.permute.xlu1 %2898  ;;  %v2897_v31 = vpop.permute.xlu0 %2896  ;;  %v2907_v62 = vstv %s5600_s16 }
 0x448   : > { %v2777_v8 = vadd.f32 %v2775_v11, %v2763_v39  ;;  %v2776_v25 = vadd.f32 %v2774_v4, %v2762_v56  ;;  %v2819_v13 = vadd.f32 %v5551_v41, %v2791_v2  ;;  %v2818_v24 = vadd.f32 %v5553_v58, %v2790_v53 }
 0x449   : > { %v2909_v30 = vmul.f32 %v2907_v62, %v5328_v0 }
 0x44a   : > { %v2805_v32 = vadd.f32 %v5539_v43, %v2777_v8  ;;  %v2804_v61 = vadd.f32 %v5541_v20, %v2776_v25  ;;  %v2841_v49 = vadd.f32 %v2839_v35, %v2819_v13  ;;  %v2840_v12 = vadd.f32 %v2838_v15, %v2818_v24 }
 0x44b   : > { %v2927_v46 = vpop.permute.xlu1 %2926  ;;  %v2925_v16 = vpop.permute.xlu0 %2924  ;;  %v2908_v43 = vmul.f32 %v2907_v62, %v5330_v36 }
 0x44c   : > { %v2833_v33 = vadd.f32 %v5566_v51, %v2805_v32  ;;  %v2832_v41 = vadd.f32 %v5568_v44, %v2804_v61  ;;  %v2861_v26 = vadd.f32 %v2857_v28, %v2841_v49  ;;  %v2860_v58 = vadd.f32 %v2855_v55, %v2840_v12 }
 0x44d   : > { %v2915_v44 = vmul.f32 %v2913_v42, %v5328_v0  ;;  %v2914_v28 = vmul.f32 %v2913_v42, %v5330_v36 }
 0x44e   : > { %v2847_v20 = vadd.f32 %v2845_v5, %v2833_v33  ;;  %v2846_v18 = vadd.f32 %v2844_v60, %v2832_v41  ;;  %v2889_v34 = vadd.f32 %v2885_v45, %v2861_v26  ;;  %v2888_v9 = vadd.f32 %v2883_v48, %v2860_v58 }
 0x44f   : > { %v2941_v10 = vpop.permute.xlu1 %2940  ;;  %v2939_v23 = vpop.permute.xlu0 %2938 }
 0x450   : > { %v2875_v59 = vadd.f32 %v2871_v57, %v2847_v20  ;;  %v2874_v38 = vadd.f32 %v2869_v1, %v2846_v18  ;;  %v2911_v54 = vadd.f32 %v2909_v30, %v2889_v34  ;;  %v2910_v51 = vadd.f32 %v2908_v43, %v2888_v9 }
 0x452   : > { %v2903_v55 = vadd.f32 %v2899_v50, %v2875_v59  ;;  %v2902_v3 = vadd.f32 %v2897_v31, %v2874_v38  ;;  %v2931_v40 = vadd.f32 %v2927_v46, %v2911_v54  ;;  %v2930_v14 = vadd.f32 %v2925_v16, %v2910_v51 }
 0x453   : > { %v2955_v19 = vpop.permute.xlu1 %2954  ;;  %v2953_v37 = vpop.permute.xlu0 %2952 }
 0x454   : > { %v2917_v27 = vadd.f32 %v2915_v44, %v2903_v55  ;;  %v2916_v57 = vadd.f32 %v2914_v28, %v2902_v3  ;;  %v2959_v1 = vadd.f32 %v2955_v19, %v2931_v40  ;;  %v2958_v52 = vadd.f32 %v2953_v37, %v2930_v14 }
 0x456   : > { %v2945_v0 = vadd.f32 %v2941_v10, %v2917_v27  ;;  %v2944_v22 = vadd.f32 %v2939_v23, %v2916_v57  ;;  %2976 = vst.msk [vmem:[%s375_s0 + $0x8] sm:$0xff] %vm2974_vm5, %v2959_v1  ;;  %2975 = vst.msk [vmem:[%s375_s0] sm:$0xff] %vm2974_vm5, %v2958_v52 }
 0x457   : > { %v2969_v36 = vpop.permute.xlu1 %2968  ;;  %v2967_v63 = vpop.permute.xlu0 %2966 }
 0x458   : > { %v2973_v47 = vadd.f32 %v2969_v36, %v2945_v0  ;;  %v2972_v45 = vadd.f32 %v2967_v63, %v2944_v22 }
 0x45a   : > { %3362 = vst.msk [vmem:[%s375_s0 + $0x18] sm:$0xff] %vm2974_vm5, %v2973_v47  ;;  %3361 = vst.msk [vmem:[%s375_s0 + $0x10] sm:$0xff] %vm2974_vm5, %v2972_v45 }
 0x45b   : > { %3655 = shalt.err (!%p3652_p6)
}
 0x45c   : > { %s3656_s15 = scalar_lea.hbm %s5642_s3, 512  ;;  %s3660_s6 = scalar_lea.hbm %s5695_s7, 1024 }
 0x45d   : > { %p3657_p1 = scmp.ne.s32.totalorder %s5642_s3, %s3656_s15  ;;  %p3661_p13 = scmp.lt.u32.totalorder %s5642_s3, %s5695_s7 }
 0x45e   : > { %p3662_p9 = scmp.lt.u32.totalorder %s3660_s6, %s3656_s15  ;;  %p3664_p10 = scmp.lt.u32.totalorder %s3656_s15, %s5642_s3 }
 0x45f   : > { %p3658_p12 = pnand %p3657_p1, %p5869_p3 }
 0x460   : > { %p3663_p7 = por %p3662_p9, %p3661_p13 }
 0x461   : > { %p3659_p2 = pneg %p3658_p12 }
 0x462   : > { %p3665_p4 = por %p3664_p10, %p3663_p7 }
 0x464   : > { %p3666_p0 = pnand %p3665_p4, %p3659_p2 }
 0x466   : > { %3669 = shalt.err (!%p3666_p0)
}
 0x467   : > { %s3735_s29 = smov 128   ;;  %s3736_s25 = smov 8  }
 0x468   : > { %3447 = dma.vmem_to_hbm [thread:$0]  (%p5869_p3), %s5636_s11, 512, %s5642_s3, %s2981_s28, %s3735_s29, %s3735_s29, %s3736_s25  }
 0x469 PF: > { %s3009_s9 = sand.u32 1, %s3708_s24   ;;  %p5870_p8 = scmp.ne.s32.totalorder %s5745_s14, 0 }
 0x46a   : > { %p5871_p11 = scmp.ge.s32.totalorder %s3720_s27, 2  ;;  %s3010_s10 = scalar_lea.sflag [#allocation5], %s3009_s9 }
 0x46c   : > { %p3467_p5 = pnand %p5871_p11, %p5870_p8 }
 0x46e   : > { %3703 = dma.done.wait (!%p3467_p5), %s3010_s10, 512  }
 0x46f   : > { %3705 = vsyncadd (!%p3467_p5), %s3010_s10, 4294966784  ;;  %s5872_s24 = sld [smem:[#allocation19_spill]]  ;;  %s5873_s25 = sld [smem:[#allocation20_spill]] }
 0x470   : > { %s5874_s26 = sld [smem:[#allocation21_spill]]  ;;  %p25_p6 = scmp.ge.s32.totalorder %s3802_s30, 4  }
 0x471   : > { %s5875_s27 = smov %s3802_s30 }
 0x472   :  { %27 = sbr.rel (!%p25_p6) target bundleno = 17 (0x11), region = 133 }
 0x479   :  { %3015 = vsyncpa [#allocation4], 1 }
 0x47a   :  { %3017 = vsyncpa [#allocation4 + $0x1], 1 }
 0x47b   :  { %3018 = vsyncpa [#allocation8], 1 }
 0x47c   :  { %3020 = vsyncpa [#allocation8 + $0x1], 1 }
 0x47d   :  { %3021 = vsyncpa [#allocation5], 1 }
 0x47e   :  { %3023 = vsyncpa [#allocation5 + $0x1], 1 }
 0x47f   :  { %3024 = vsyncpa [#allocation6], 1 }
 0x480   :  { %3026 = vsyncpa [#allocation6 + $0x1], 1 }
 0x481   :  { %3027 = vsyncpa [#allocation11], 1 }

</bundles_post_ra>
